<compile_context>
chip_gen: v6e
topology: v6e:2x2x1
jax: 0.10.0
libtpu: 0.0.40
codegen_flags: <defaults>
</compile_context>

<pallas_src>
import functools

import numpy as np

import jax
import jax.numpy as jnp
from jax.experimental import pallas as pl
from jax.experimental.pallas import tpu as pltpu

LANE = 128


def _round_up(x, m):
    return ((x + m - 1) // m) * m


@functools.lru_cache(maxsize=None)
def _vmem_limit_bytes():
    """Generation-aware VMEM cap: ~85% of physical (128 MiB v5e/v6e, 64 MiB v7x)."""
    try:
        cap = int(pltpu.get_tpu_info().vmem_capacity_bytes)
    except Exception:
        cap = 64 * 1024 * 1024
    return int(cap * 0.85)


def _pick_tile(n, candidates, max_tile=None):
    cap = n if max_tile is None else min(n, max_tile)
    for t in candidates:
        if t <= cap and n % t == 0:
            return t
    return n  # n is a multiple of 128 and 128 is in candidates -> unreachable


def sage_tiling(n_pad):
    # Destination-row (parallel) tile: <= n_pad//2 so both v7x TCs get work.
    tm = _pick_tile(n_pad, (512, 256, 128),
                    max_tile=n_pad // 2 if n_pad >= 2 * LANE else None)
    # Source / K (reduction) tile: as large as VMEM comfortably allows.
    tk = _pick_tile(n_pad, (2048, 1024, 512, 256, 128))
    return tm, tk


def _pad2(x, rows, cols):
    return jnp.zeros((rows, cols), x.dtype).at[: x.shape[0], : x.shape[1]].set(x)


# ----------------------------------------------------------------------------
# Pallas kernels
# ----------------------------------------------------------------------------
def _sage_conv_kernel(nnz_ref, kidx_ref, a_ref, hsrc_ref, hself_ref, ws_ref,
                      wn_ref, b_ref, o_ref, acc_ref, *, apply_relu):
    """Mean SAGEConv tile: out = H_self @ W_self + (A @ H_src) @ W_neigh + b.

    Grid = (dst row strips [parallel], nonzero-src-block steps [arbitrary]).
    Block sparsity: kidx_ref[i, k] is the k-th nonzero src block of row strip i
    (clamped to the last valid one for padding); nnz_ref[i] is its true count.
    """
    i = pl.program_id(0)
    k = pl.program_id(1)

    @pl.when(k == 0)
    def _():
        acc_ref[...] = jnp.zeros_like(acc_ref)

    @pl.when(k < nnz_ref[i])
    def _():
        acc_ref[...] += jnp.dot(a_ref[...], hsrc_ref[...],
                                preferred_element_type=jnp.float32)

    @pl.when(k == pl.num_programs(1) - 1)
    def _():
        out = (jnp.dot(hself_ref[...], ws_ref[...],
                       preferred_element_type=jnp.float32)
               + jnp.dot(acc_ref[...].astype(jnp.bfloat16), wn_ref[...],
                         preferred_element_type=jnp.float32)
               + b_ref[...])
        if apply_relu:
            out = jnp.maximum(out, 0.0)
        o_ref[...] = out.astype(o_ref.dtype)


def _edge_mlp_kernel(hu_ref, hv_ref, w1u_ref, w1v_ref, b1_ref,
                     w2_ref, b2_ref, w3_ref, b3_ref, o_ref):
    """MLPPredictor.apply_edges: W3(lrelu(W2(lrelu(W1(cat[h_u, h_v])))))."""
    # cat([h_u, h_v]) @ W1  ==  h_u @ W1[:F] + h_v @ W1[F:]
    s = (jnp.dot(hu_ref[...], w1u_ref[...], preferred_element_type=jnp.float32)
         + jnp.dot(hv_ref[...], w1v_ref[...], preferred_element_type=jnp.float32)
         + b1_ref[...])
    s = jnp.maximum(s, 0.01 * s)                     # F.leaky_relu, slope 0.01
    s = jnp.dot(s.astype(jnp.bfloat16), w2_ref[...],
                preferred_element_type=jnp.float32) + b2_ref[...]
    s = jnp.maximum(s, 0.01 * s)
    s = jnp.dot(s.astype(jnp.bfloat16), w3_ref[...],
                preferred_element_type=jnp.float32) + b3_ref[...]
    o_ref[...] = s.astype(o_ref.dtype)               # bf16 store (softmax=False)


# ----------------------------------------------------------------------------
# Wrappers
# ----------------------------------------------------------------------------
def sage_conv(a_pad, h_pad, w_self, w_neigh, bias, nnz, kidx, *, apply_relu,
              out_dtype=jnp.bfloat16):
    n_pad = a_pad.shape[0]
    f_in = h_pad.shape[1]
    f_out = w_self.shape[1]
    tm, tk = sage_tiling(n_pad)
    nbi, max_k = kidx.shape
    assert nbi == n_pad // tm, "block table must be built with sage_tiling(n_pad)"
    grid = (nbi, max_k)
    kernel = functools.partial(_sage_conv_kernel, apply_relu=apply_relu)
    return pl.pallas_call(
        kernel,
        out_shape=jax.ShapeDtypeStruct((n_pad, f_out), out_dtype),
        grid_spec=pltpu.PrefetchScalarGridSpec(
            num_scalar_prefetch=2,            # nnz, kidx -> SMEM
            grid=grid,
            in_specs=[
                # A row strip: only nonzero (tm, tk) blocks are visited.
                pl.BlockSpec((tm, tk), lambda i, k, nnz, kidx: (i, kidx[i, k])),
                # H source rows matching the selected src block.
                pl.BlockSpec((tk, f_in), lambda i, k, nnz, kidx: (kidx[i, k], 0)),
                # H self rows.
                pl.BlockSpec((tm, f_in), lambda i, k, nnz, kidx: (i, 0)),
                pl.BlockSpec((f_in, f_out), lambda i, k, nnz, kidx: (0, 0)),   # W_self
                pl.BlockSpec((f_in, f_out), lambda i, k, nnz, kidx: (0, 0)),   # W_neigh
                pl.BlockSpec((1, f_out), lambda i, k, nnz, kidx: (0, 0)),      # bias
            ],
            out_specs=pl.BlockSpec((tm, f_out), lambda i, k, nnz, kidx: (i, 0)),
            scratch_shapes=[pltpu.VMEM((tm, f_in), jnp.float32)],
        ),
        compiler_params=pltpu.CompilerParams(
            dimension_semantics=("parallel", "arbitrary"),
            vmem_limit_bytes=_vmem_limit_bytes(),
        ),
    )(nnz, kidx, a_pad, h_pad, h_pad, w_self, w_neigh, bias)


def edge_mlp(hu_pad, hv_pad, w1u, w1v, b1, w2, b2, w3, b3):
    e_pad, f = hu_pad.shape
    c_pad = w3.shape[1]
    te = _pick_tile(e_pad, (1024, 512, 256, 128),
                    max_tile=e_pad // 2 if e_pad >= 2 * LANE else None)
    grid = (e_pad // te,)
    const = lambda shape: pl.BlockSpec(shape, lambda i: (0,) * len(shape))
    return pl.pallas_call(
        _edge_mlp_kernel,
        out_shape=jax.ShapeDtypeStruct((e_pad, c_pad), jnp.bfloat16),
        grid_spec=pltpu.PrefetchScalarGridSpec(
            num_scalar_prefetch=0,
            grid=grid,
            in_specs=[
                pl.BlockSpec((te, f), lambda i: (i, 0)),   # h_u tile
                pl.BlockSpec((te, f), lambda i: (i, 0)),   # h_v tile
                const(w1u.shape), const(w1v.shape), const(b1.shape),
                const(w2.shape), const(b2.shape),
                const(w3.shape), const(b3.shape),
            ],
            out_specs=pl.BlockSpec((te, c_pad), lambda i: (i, 0)),
        ),
        compiler_params=pltpu.CompilerParams(
            dimension_semantics=("parallel",),
            vmem_limit_bytes=_vmem_limit_bytes(),
        ),
    )(hu_pad, hv_pad, w1u, w1v, b1, w2, b2, w3, b3)


# ----------------------------------------------------------------------------
# Parameter init (PyTorch Linear-style uniform bounds, zero-padded to lanes)
# ----------------------------------------------------------------------------
def _linear(key, fan_in, fan_out, pad_in, pad_out):
    kw, kb = jax.random.split(key)
    bound = 1.0 / float(fan_in) ** 0.5
    w = jax.random.uniform(kw, (fan_in, fan_out), jnp.float32, -bound, bound)
    b = jax.random.uniform(kb, (1, fan_out), jnp.float32, -bound, bound)
    return _pad2(w, pad_in, pad_out).astype(jnp.bfloat16), _pad2(b, 1, pad_out)


def _sage_params(key, f_in, f_out):
    k1, k2 = jax.random.split(key)
    p_in, p_out = _round_up(f_in, LANE), _round_up(f_out, LANE)
    w_self, _ = _linear(k1, f_in, f_out, p_in, p_out)
    w_neigh, bias = _linear(k2, f_in, f_out, p_in, p_out)
    return w_self, w_neigh, bias


def init_params(key, in_features, hidden_features, out_features, out_classes):
    keys = jax.random.split(key, 6)
    params = {}
    # TODO(synk): GraphSAGEBlock source not provided; implemented as a 2-layer
    # mean-aggregator SAGEConv block (in->hidden, ReLU, hidden->out).
    params["sage_l1"] = _sage_params(keys[0], in_features, hidden_features)
    params["sage_l2"] = _sage_params(keys[1], hidden_features, out_features)
    params["sage2"] = _sage_params(keys[2], out_features, out_features)
    # MLPPredictor: Linear(2*F, 256) -> Linear(256, 128) -> Linear(128, C)
    f_pad = _round_up(out_features, LANE)
    kw, kb = jax.random.split(keys[3])
    bound = 1.0 / float(2 * out_features) ** 0.5
    w1 = jax.random.uniform(kw, (2 * out_features, 256), jnp.float32, -bound, bound)
    b1 = jax.random.uniform(kb, (1, 256), jnp.float32, -bound, bound)
    w1u = _pad2(w1[:out_features], f_pad, 256).astype(jnp.bfloat16)
    w1v = _pad2(w1[out_features:], f_pad, 256).astype(jnp.bfloat16)
    w2, b2 = _linear(keys[4], 256, 128, 256, 128)
    w3, b3 = _linear(keys[5], 128, out_classes, 128, _round_up(out_classes, LANE))
    params["pred"] = (w1u, w1v, b1, w2, b2, w3, b3)
    return params


def build_mean_adj(src, dst, n_pad):
    """Dense row-normalized adjacency (padded), streamed as bf16."""
    a = jnp.zeros((n_pad, n_pad), jnp.float32).at[dst, src].add(1.0)
    deg = a.sum(axis=1, keepdims=True)
    return (a / jnp.maximum(deg, 1.0)).astype(jnp.bfloat16)


def build_block_table(a_pad, tm, tk):
    """Per row-strip list of nonzero (tm, tk) A blocks for block-sparse skip.

    Runs eagerly (outside jit): the table shapes (nbi, max_nnz) become the
    static Pallas grid; padded entries are clamped to the last valid block so
    the pipeline revisits the same tile and issues no extra DMA.
    """
    n_dst, n_src = a_pad.shape
    nbi, nbk = n_dst // tm, n_src // tk
    blk = (jnp.abs(a_pad.astype(jnp.float32))
           .reshape(nbi, tm, nbk, tk).sum(axis=(1, 3)) > 0)
    blk = np.asarray(jax.device_get(blk))
    nnz = blk.sum(axis=1).astype(np.int32)
    max_k = max(int(nnz.max()) if nnz.size else 1, 1)
    kidx = np.zeros((nbi, max_k), np.int32)
    for i in range(nbi):
        idx = np.nonzero(blk[i])[0]
        if idx.size:
            kidx[i, :idx.size] = idx
            kidx[i, idx.size:] = idx[-1]
    return jnp.asarray(nnz), jnp.asarray(kidx)


# ----------------------------------------------------------------------------
# Full forward (mirrors SAGEModel.forward)
# ----------------------------------------------------------------------------
def sage_model_forward(params, a_pad, nnz, kidx, src_pad, dst_pad, x_pad):
    # h = F.relu(self.sage(g, x))   (outer ReLU fused into layer-2 kernel)
    h = sage_conv(a_pad, x_pad, *params["sage_l1"], nnz, kidx, apply_relu=True)
    h = sage_conv(a_pad, h, *params["sage_l2"], nnz, kidx, apply_relu=True)
    # h = self.sage2(g, h)
    h = sage_conv(a_pad, h, *params["sage2"], nnz, kidx, apply_relu=False)
    # self.pred(g, h): per-edge MLP on (h[src], h[dst]); gather = glue.
    hu = h[src_pad]
    hv = h[dst_pad]
    return edge_mlp(hu, hv, *params["pred"])


if __name__ == "__main__":
    N, E = 16, 48
    in_features, hidden_features, out_features, out_classes = 16, 32, 32, 4

    key = jax.random.PRNGKey(0)
    k_x, k_src, k_dst, k_params = jax.random.split(key, 4)

    x = jax.random.normal(k_x, (N, in_features), jnp.float32)
    src = jax.random.randint(k_src, (E,), 0, N, dtype=jnp.int32)
    dst = jax.random.randint(k_dst, (E,), 0, N, dtype=jnp.int32)

    n_pad = _round_up(N, LANE)
    f_in_pad = _round_up(in_features, LANE)
    e_pad = _round_up(E, LANE)

    a_pad = build_mean_adj(src, dst, n_pad)
    tm, tk = sage_tiling(n_pad)
    nnz, kidx = build_block_table(a_pad, tm, tk)

    x_pad = _pad2(x, n_pad, f_in_pad).astype(jnp.bfloat16)
    src_pad = jnp.zeros((e_pad,), jnp.int32).at[:E].set(src)
    dst_pad = jnp.zeros((e_pad,), jnp.int32).at[:E].set(dst)

    params = init_params(k_params, in_features, hidden_features, out_features,
                         out_classes)

    scores_pad = jax.jit(sage_model_forward)(params, a_pad, nnz, kidx,
                                             src_pad, dst_pad, x_pad)
    jax.block_until_ready(scores_pad)
    scores = scores_pad[:E, :out_classes].astype(jnp.float32)
    assert scores.shape == (E, out_classes) and scores.dtype == jnp.float32
    assert bool(jnp.all(jnp.isfinite(scores)))
    print("KERNEL_OK")
</pallas_src>

<mosaic_0001>
module attributes {stable_mosaic.version = 11 : i64} {
  func.func @_sage_conv_kernel(%arg0: i32, %arg1: i32, %arg2: memref<1xi32, #tpu.memory_space<smem>>, %arg3: memref<1x1xi32, #tpu.memory_space<smem>>, %arg4: memref<128x128xbf16, #tpu.memory_space<vmem>>, %arg5: memref<128x128xbf16, #tpu.memory_space<vmem>>, %arg6: memref<128x128xbf16, #tpu.memory_space<vmem>>, %arg7: memref<128x128xbf16, #tpu.memory_space<vmem>>, %arg8: memref<128x128xbf16, #tpu.memory_space<vmem>>, %arg9: memref<1x128xf32, #tpu.memory_space<vmem>>, %arg10: memref<128x128xbf16, #tpu.memory_space<vmem>>, %arg11: memref<128x128xf32, #tpu.memory_space<vmem>>) attributes {dimension_semantics = [#tpu.dimension_semantics<parallel>, #tpu.dimension_semantics<arbitrary>], iteration_bounds = array<i64: 1, 1>, scalar_prefetch = 2 : i64, scratch_operands = 1 : i64, tpu.core_type = #tpu.core_type<tc>, window_params = [{transform_indices = @transform_0, window_bounds = array<i64: 128, 128>}, {transform_indices = @transform_1, window_bounds = array<i64: 128, 128>}, {transform_indices = @transform_2, window_bounds = array<i64: 128, 128>}, {pipeline_mode = #tpu.pipeline_mode<synchronous>, transform_indices = @transform_3, window_bounds = array<i64: 128, 128>}, {pipeline_mode = #tpu.pipeline_mode<synchronous>, transform_indices = @transform_4, window_bounds = array<i64: 128, 128>}, {pipeline_mode = #tpu.pipeline_mode<synchronous>, transform_indices = @transform_5, window_bounds = array<i64: 1, 128>}, {transform_indices = @transform_6, window_bounds = array<i64: 128, 128>}]} {
    %c0_i32 = arith.constant 0 : i32
    %0 = arith.cmpi eq, %arg1, %c0_i32 : i32
    %1 = arith.extui %0 : i1 to i32
    %c0_i32_0 = arith.constant 0 : i32
    %2 = arith.cmpi ne, %1, %c0_i32_0 : i32
    scf.if %2 {
      %cst = arith.constant 0.000000e+00 : f32
      %11 = vector.broadcast %cst : f32 to vector<128x128xf32>
      %c0 = arith.constant 0 : index
      %c0_4 = arith.constant 0 : index
      %12 = vector.load %arg11[%c0, %c0_4] : memref<128x128xf32, #tpu.memory_space<vmem>>, vector<128x128xf32>
      tpu.vector_store %arg11[%c0, %c0_4], %11 {strides = array<i32>} : memref<128x128xf32, #tpu.memory_space<vmem>>, vector<128x128xf32>,
    } else {
    }
    %3 = arith.index_cast %arg0 : i32 to index
    %4 = memref.load %arg2[%3] : memref<1xi32, #tpu.memory_space<smem>>
    %5 = arith.cmpi slt, %arg1, %4 : i32
    %6 = arith.extui %5 : i1 to i32
    %c0_i32_1 = arith.constant 0 : i32
    %7 = arith.cmpi ne, %6, %c0_i32_1 : i32
    scf.if %7 {
      %c0 = arith.constant 0 : index
      %c0_4 = arith.constant 0 : index
      %11 = vector.load %arg11[%c0, %c0_4] : memref<128x128xf32, #tpu.memory_space<vmem>>, vector<128x128xf32>
      %c0_5 = arith.constant 0 : index
      %c0_6 = arith.constant 0 : index
      %12 = vector.load %arg4[%c0_5, %c0_6] : memref<128x128xbf16, #tpu.memory_space<vmem>>, vector<128x128xbf16>
      %c0_7 = arith.constant 0 : index
      %c0_8 = arith.constant 0 : index
      %13 = vector.load %arg5[%c0_7, %c0_8] : memref<128x128xbf16, #tpu.memory_space<vmem>>, vector<128x128xbf16>
      %cst = arith.constant dense<0.000000e+00> : vector<128x128xf32>
      %14 = tpu.matmul %12, %13, %cst {dimension_numbers = #tpu.dot_dimension_numbers<[1], [0], [0], [1], [0, 0, 1, 1], [], []>} : vector<128x128xbf16>, vector<128x128xbf16>, vector<128x128xf32> -> vector<128x128xf32>
      %15 = arith.addf %11, %14 : vector<128x128xf32>
      %c0_9 = arith.constant 0 : index
      %c0_10 = arith.constant 0 : index
      %16 = vector.load %arg11[%c0_9, %c0_10] : memref<128x128xf32, #tpu.memory_space<vmem>>, vector<128x128xf32>
      tpu.vector_store %arg11[%c0_9, %c0_10], %15 {strides = array<i32>} : memref<128x128xf32, #tpu.memory_space<vmem>>, vector<128x128xf32>,
    } else {
    }
    %c0_i32_2 = arith.constant 0 : i32
    %8 = arith.cmpi eq, %arg1, %c0_i32_2 : i32
    %9 = arith.extui %8 : i1 to i32
    %c0_i32_3 = arith.constant 0 : i32
    %10 = arith.cmpi ne, %9, %c0_i32_3 : i32
    scf.if %10 {
      %c0 = arith.constant 0 : index
      %c0_4 = arith.constant 0 : index
      %11 = vector.load %arg6[%c0, %c0_4] : memref<128x128xbf16, #tpu.memory_space<vmem>>, vector<128x128xbf16>
      %c0_5 = arith.constant 0 : index
      %c0_6 = arith.constant 0 : index
      %12 = vector.load %arg7[%c0_5, %c0_6] : memref<128x128xbf16, #tpu.memory_space<vmem>>, vector<128x128xbf16>
      %cst = arith.constant dense<0.000000e+00> : vector<128x128xf32>
      %13 = tpu.matmul %11, %12, %cst {dimension_numbers = #tpu.dot_dimension_numbers<[1], [0], [0], [1], [0, 0, 1, 1], [], []>} : vector<128x128xbf16>, vector<128x128xbf16>, vector<128x128xf32> -> vector<128x128xf32>
      %c0_7 = arith.constant 0 : index
      %c0_8 = arith.constant 0 : index
      %14 = vector.load %arg11[%c0_7, %c0_8] : memref<128x128xf32, #tpu.memory_space<vmem>>, vector<128x128xf32>
      %15 = arith.truncf %14 : vector<128x128xf32> to vector<128x128xbf16>
      %c0_9 = arith.constant 0 : index
      %c0_10 = arith.constant 0 : index
      %16 = vector.load %arg8[%c0_9, %c0_10] : memref<128x128xbf16, #tpu.memory_space<vmem>>, vector<128x128xbf16>
      %cst_11 = arith.constant dense<0.000000e+00> : vector<128x128xf32>
      %17 = tpu.matmul %15, %16, %cst_11 {dimension_numbers = #tpu.dot_dimension_numbers<[1], [0], [0], [1], [0, 0, 1, 1], [], []>} : vector<128x128xbf16>, vector<128x128xbf16>, vector<128x128xf32> -> vector<128x128xf32>
      %18 = arith.addf %13, %17 : vector<128x128xf32>
      %c0_12 = arith.constant 0 : index
      %c0_13 = arith.constant 0 : index
      %19 = vector.load %arg9[%c0_12, %c0_13] : memref<1x128xf32, #tpu.memory_space<vmem>>, vector<1x128xf32>
      %20 = vector.broadcast %19 : vector<1x128xf32> to vector<128x128xf32>
      %21 = arith.addf %18, %20 : vector<128x128xf32>
      %cst_14 = arith.constant 0.000000e+00 : f32
      %22 = vector.broadcast %cst_14 : f32 to vector<128x128xf32>
      %23 = arith.maximumf %21, %22 : vector<128x128xf32>
      %24 = arith.truncf %23 : vector<128x128xf32> to vector<128x128xbf16>
      %c0_15 = arith.constant 0 : index
      %c0_16 = arith.constant 0 : index
      %25 = vector.load %arg10[%c0_15, %c0_16] : memref<128x128xbf16, #tpu.memory_space<vmem>>, vector<128x128xbf16>
      tpu.vector_store %arg10[%c0_15, %c0_16], %24 {strides = array<i32>} : memref<128x128xbf16, #tpu.memory_space<vmem>>, vector<128x128xbf16>,
    } else {
    }
    return
  }
  func.func @transform_0(%arg0: i32, %arg1: i32, %arg2: memref<1xi32, #tpu.memory_space<smem>>, %arg3: memref<1x1xi32, #tpu.memory_space<smem>>) -> (i32, i32) {
    %0 = arith.index_cast %arg0 : i32 to index
    %1 = arith.index_cast %arg1 : i32 to index
    %2 = memref.load %arg3[%0, %1] : memref<1x1xi32, #tpu.memory_space<smem>>
    %c0_i32 = arith.constant 0 : i32
    return %arg0, %2 : i32, i32
  }
  func.func @transform_1(%arg0: i32, %arg1: i32, %arg2: memref<1xi32, #tpu.memory_space<smem>>, %arg3: memref<1x1xi32, #tpu.memory_space<smem>>) -> (i32, i32) {
    %0 = arith.index_cast %arg0 : i32 to index
    %1 = arith.index_cast %arg1 : i32 to index
    %2 = memref.load %arg3[%0, %1] : memref<1x1xi32, #tpu.memory_space<smem>>
    %c0_i32 = arith.constant 0 : i32
    %c0_i32_0 = arith.constant 0 : i32
    return %2, %c0_i32 : i32, i32
  }
  func.func @transform_2(%arg0: i32, %arg1: i32, %arg2: memref<1xi32, #tpu.memory_space<smem>>, %arg3: memref<1x1xi32, #tpu.memory_space<smem>>) -> (i32, i32) {
    %c0_i32 = arith.constant 0 : i32
    %c0_i32_0 = arith.constant 0 : i32
    return %arg0, %c0_i32 : i32, i32
  }
  func.func @transform_3(%arg0: i32, %arg1: i32, %arg2: memref<1xi32, #tpu.memory_space<smem>>, %arg3: memref<1x1xi32, #tpu.memory_space<smem>>) -> (i32, i32) {
    %c0_i32 = arith.constant 0 : i32
    %c0_i32_0 = arith.constant 0 : i32
    %c0_i32_1 = arith.constant 0 : i32
    return %c0_i32, %c0_i32_0 : i32, i32
  }
  func.func @transform_4(%arg0: i32, %arg1: i32, %arg2: memref<1xi32, #tpu.memory_space<smem>>, %arg3: memref<1x1xi32, #tpu.memory_space<smem>>) -> (i32, i32) {
    %c0_i32 = arith.constant 0 : i32
    %c0_i32_0 = arith.constant 0 : i32
    %c0_i32_1 = arith.constant 0 : i32
    return %c0_i32, %c0_i32_0 : i32, i32
  }
  func.func @transform_5(%arg0: i32, %arg1: i32, %arg2: memref<1xi32, #tpu.memory_space<smem>>, %arg3: memref<1x1xi32, #tpu.memory_space<smem>>) -> (i32, i32) {
    %c0_i32 = arith.constant 0 : i32
    %c0_i32_0 = arith.constant 0 : i32
    %c0_i32_1 = arith.constant 0 : i32
    return %c0_i32, %c0_i32_0 : i32, i32
  }
  func.func @transform_6(%arg0: i32, %arg1: i32, %arg2: memref<1xi32, #tpu.memory_space<smem>>, %arg3: memref<1x1xi32, #tpu.memory_space<smem>>) -> (i32, i32) {
    %c0_i32 = arith.constant 0 : i32
    %c0_i32_0 = arith.constant 0 : i32
    return %arg0, %c0_i32 : i32, i32
  }
}

module attributes {stable_mosaic.version = 11 : i64} {
  func.func @_sage_conv_kernel(%arg0: i32, %arg1: i32, %arg2: memref<1xi32, #tpu.memory_space<smem>>, %arg3: memref<1x1xi32, #tpu.memory_space<smem>>, %arg4: memref<128x128xbf16, #tpu.memory_space<vmem>>, %arg5: memref<128x128xbf16, #tpu.memory_space<vmem>>, %arg6: memref<128x128xbf16, #tpu.memory_space<vmem>>, %arg7: memref<128x128xbf16, #tpu.memory_space<vmem>>, %arg8: memref<128x128xbf16, #tpu.memory_space<vmem>>, %arg9: memref<1x128xf32, #tpu.memory_space<vmem>>, %arg10: memref<128x128xbf16, #tpu.memory_space<vmem>>, %arg11: memref<128x128xf32, #tpu.memory_space<vmem>>) attributes {dimension_semantics = [#tpu.dimension_semantics<parallel>, #tpu.dimension_semantics<arbitrary>], iteration_bounds = array<i64: 1, 1>, scalar_prefetch = 2 : i64, scratch_operands = 1 : i64, tpu.core_type = #tpu.core_type<tc>, window_params = [{transform_indices = @transform_0, window_bounds = array<i64: 128, 128>}, {transform_indices = @transform_1, window_bounds = array<i64: 128, 128>}, {transform_indices = @transform_2, window_bounds = array<i64: 128, 128>}, {pipeline_mode = #tpu.pipeline_mode<synchronous>, transform_indices = @transform_3, window_bounds = array<i64: 128, 128>}, {pipeline_mode = #tpu.pipeline_mode<synchronous>, transform_indices = @transform_4, window_bounds = array<i64: 128, 128>}, {pipeline_mode = #tpu.pipeline_mode<synchronous>, transform_indices = @transform_5, window_bounds = array<i64: 1, 128>}, {transform_indices = @transform_6, window_bounds = array<i64: 128, 128>}]} {
    %c0_i32 = arith.constant 0 : i32
    %0 = arith.cmpi eq, %arg1, %c0_i32 : i32
    %1 = arith.extui %0 : i1 to i32
    %c0_i32_0 = arith.constant 0 : i32
    %2 = arith.cmpi ne, %1, %c0_i32_0 : i32
    scf.if %2 {
      %cst = arith.constant 0.000000e+00 : f32
      %11 = vector.broadcast %cst : f32 to vector<128x128xf32>
      %c0 = arith.constant 0 : index
      %c0_4 = arith.constant 0 : index
      %12 = vector.load %arg11[%c0, %c0_4] : memref<128x128xf32, #tpu.memory_space<vmem>>, vector<128x128xf32>
      tpu.vector_store %arg11[%c0, %c0_4], %11 {strides = array<i32>} : memref<128x128xf32, #tpu.memory_space<vmem>>, vector<128x128xf32>,
    } else {
    }
    %3 = arith.index_cast %arg0 : i32 to index
    %4 = memref.load %arg2[%3] : memref<1xi32, #tpu.memory_space<smem>>
    %5 = arith.cmpi slt, %arg1, %4 : i32
    %6 = arith.extui %5 : i1 to i32
    %c0_i32_1 = arith.constant 0 : i32
    %7 = arith.cmpi ne, %6, %c0_i32_1 : i32
    scf.if %7 {
      %c0 = arith.constant 0 : index
      %c0_4 = arith.constant 0 : index
      %11 = vector.load %arg11[%c0, %c0_4] : memref<128x128xf32, #tpu.memory_space<vmem>>, vector<128x128xf32>
      %c0_5 = arith.constant 0 : index
      %c0_6 = arith.constant 0 : index
      %12 = vector.load %arg4[%c0_5, %c0_6] : memref<128x128xbf16, #tpu.memory_space<vmem>>, vector<128x128xbf16>
      %c0_7 = arith.constant 0 : index
      %c0_8 = arith.constant 0 : index
      %13 = vector.load %arg5[%c0_7, %c0_8] : memref<128x128xbf16, #tpu.memory_space<vmem>>, vector<128x128xbf16>
      %cst = arith.constant dense<0.000000e+00> : vector<128x128xf32>
      %14 = tpu.matmul %12, %13, %cst {dimension_numbers = #tpu.dot_dimension_numbers<[1], [0], [0], [1], [0, 0, 1, 1], [], []>} : vector<128x128xbf16>, vector<128x128xbf16>, vector<128x128xf32> -> vector<128x128xf32>
      %15 = arith.addf %11, %14 : vector<128x128xf32>
      %c0_9 = arith.constant 0 : index
      %c0_10 = arith.constant 0 : index
      %16 = vector.load %arg11[%c0_9, %c0_10] : memref<128x128xf32, #tpu.memory_space<vmem>>, vector<128x128xf32>
      tpu.vector_store %arg11[%c0_9, %c0_10], %15 {strides = array<i32>} : memref<128x128xf32, #tpu.memory_space<vmem>>, vector<128x128xf32>,
    } else {
    }
    %c0_i32_2 = arith.constant 0 : i32
    %8 = arith.cmpi eq, %arg1, %c0_i32_2 : i32
    %9 = arith.extui %8 : i1 to i32
    %c0_i32_3 = arith.constant 0 : i32
    %10 = arith.cmpi ne, %9, %c0_i32_3 : i32
    scf.if %10 {
      %c0 = arith.constant 0 : index
      %c0_4 = arith.constant 0 : index
      %11 = vector.load %arg6[%c0, %c0_4] : memref<128x128xbf16, #tpu.memory_space<vmem>>, vector<128x128xbf16>
      %c0_5 = arith.constant 0 : index
      %c0_6 = arith.constant 0 : index
      %12 = vector.load %arg7[%c0_5, %c0_6] : memref<128x128xbf16, #tpu.memory_space<vmem>>, vector<128x128xbf16>
      %cst = arith.constant dense<0.000000e+00> : vector<128x128xf32>
      %13 = tpu.matmul %11, %12, %cst {dimension_numbers = #tpu.dot_dimension_numbers<[1], [0], [0], [1], [0, 0, 1, 1], [], []>} : vector<128x128xbf16>, vector<128x128xbf16>, vector<128x128xf32> -> vector<128x128xf32>
      %c0_7 = arith.constant 0 : index
      %c0_8 = arith.constant 0 : index
      %14 = vector.load %arg11[%c0_7, %c0_8] : memref<128x128xf32, #tpu.memory_space<vmem>>, vector<128x128xf32>
      %15 = arith.truncf %14 : vector<128x128xf32> to vector<128x128xbf16>
      %c0_9 = arith.constant 0 : index
      %c0_10 = arith.constant 0 : index
      %16 = vector.load %arg8[%c0_9, %c0_10] : memref<128x128xbf16, #tpu.memory_space<vmem>>, vector<128x128xbf16>
      %cst_11 = arith.constant dense<0.000000e+00> : vector<128x128xf32>
      %17 = tpu.matmul %15, %16, %cst_11 {dimension_numbers = #tpu.dot_dimension_numbers<[1], [0], [0], [1], [0, 0, 1, 1], [], []>} : vector<128x128xbf16>, vector<128x128xbf16>, vector<128x128xf32> -> vector<128x128xf32>
      %18 = arith.addf %13, %17 : vector<128x128xf32>
      %c0_12 = arith.constant 0 : index
      %c0_13 = arith.constant 0 : index
      %19 = vector.load %arg9[%c0_12, %c0_13] : memref<1x128xf32, #tpu.memory_space<vmem>>, vector<1x128xf32>
      %20 = vector.broadcast %19 : vector<1x128xf32> to vector<128x128xf32>
      %21 = arith.addf %18, %20 : vector<128x128xf32>
      %cst_14 = arith.constant 0.000000e+00 : f32
      %22 = vector.broadcast %cst_14 : f32 to vector<128x128xf32>
      %23 = arith.maximumf %21, %22 : vector<128x128xf32>
      %24 = arith.truncf %23 : vector<128x128xf32> to vector<128x128xbf16>
      %c0_15 = arith.constant 0 : index
      %c0_16 = arith.constant 0 : index
      %25 = vector.load %arg10[%c0_15, %c0_16] : memref<128x128xbf16, #tpu.memory_space<vmem>>, vector<128x128xbf16>
      tpu.vector_store %arg10[%c0_15, %c0_16], %24 {strides = array<i32>} : memref<128x128xbf16, #tpu.memory_space<vmem>>, vector<128x128xbf16>,
    } else {
    }
    return
  }
  func.func @transform_0(%arg0: i32, %arg1: i32, %arg2: memref<1xi32, #tpu.memory_space<smem>>, %arg3: memref<1x1xi32, #tpu.memory_space<smem>>) -> (i32, i32) {
    %0 = arith.index_cast %arg0 : i32 to index
    %1 = arith.index_cast %arg1 : i32 to index
    %2 = memref.load %arg3[%0, %1] : memref<1x1xi32, #tpu.memory_space<smem>>
    %c0_i32 = arith.constant 0 : i32
    return %arg0, %2 : i32, i32
  }
  func.func @transform_1(%arg0: i32, %arg1: i32, %arg2: memref<1xi32, #tpu.memory_space<smem>>, %arg3: memref<1x1xi32, #tpu.memory_space<smem>>) -> (i32, i32) {
    %0 = arith.index_cast %arg0 : i32 to index
    %1 = arith.index_cast %arg1 : i32 to index
    %2 = memref.load %arg3[%0, %1] : memref<1x1xi32, #tpu.memory_space<smem>>
    %c0_i32 = arith.constant 0 : i32
    %c0_i32_0 = arith.constant 0 : i32
    return %2, %c0_i32 : i32, i32
  }
  func.func @transform_2(%arg0: i32, %arg1: i32, %arg2: memref<1xi32, #tpu.memory_space<smem>>, %arg3: memref<1x1xi32, #tpu.memory_space<smem>>) -> (i32, i32) {
    %c0_i32 = arith.constant 0 : i32
    %c0_i32_0 = arith.constant 0 : i32
    return %arg0, %c0_i32 : i32, i32
  }
  func.func @transform_3(%arg0: i32, %arg1: i32, %arg2: memref<1xi32, #tpu.memory_space<smem>>, %arg3: memref<1x1xi32, #tpu.memory_space<smem>>) -> (i32, i32) {
    %c0_i32 = arith.constant 0 : i32
    %c0_i32_0 = arith.constant 0 : i32
    %c0_i32_1 = arith.constant 0 : i32
    return %c0_i32, %c0_i32_0 : i32, i32
  }
  func.func @transform_4(%arg0: i32, %arg1: i32, %arg2: memref<1xi32, #tpu.memory_space<smem>>, %arg3: memref<1x1xi32, #tpu.memory_space<smem>>) -> (i32, i32) {
    %c0_i32 = arith.constant 0 : i32
    %c0_i32_0 = arith.constant 0 : i32
    %c0_i32_1 = arith.constant 0 : i32
    return %c0_i32, %c0_i32_0 : i32, i32
  }
  func.func @transform_5(%arg0: i32, %arg1: i32, %arg2: memref<1xi32, #tpu.memory_space<smem>>, %arg3: memref<1x1xi32, #tpu.memory_space<smem>>) -> (i32, i32) {
    %c0_i32 = arith.constant 0 : i32
    %c0_i32_0 = arith.constant 0 : i32
    %c0_i32_1 = arith.constant 0 : i32
    return %c0_i32, %c0_i32_0 : i32, i32
  }
  func.func @transform_6(%arg0: i32, %arg1: i32, %arg2: memref<1xi32, #tpu.memory_space<smem>>, %arg3: memref<1x1xi32, #tpu.memory_space<smem>>) -> (i32, i32) {
    %c0_i32 = arith.constant 0 : i32
    %c0_i32_0 = arith.constant 0 : i32
    return %arg0, %c0_i32 : i32, i32
  }
}

module attributes {stable_mosaic.version = 11 : i64} {
  func.func @_sage_conv_kernel(%arg0: i32, %arg1: i32, %arg2: memref<1xi32, #tpu.memory_space<smem>>, %arg3: memref<1x1xi32, #tpu.memory_space<smem>>, %arg4: memref<128x128xbf16, #tpu.memory_space<vmem>>, %arg5: memref<128x128xbf16, #tpu.memory_space<vmem>>, %arg6: memref<128x128xbf16, #tpu.memory_space<vmem>>, %arg7: memref<128x128xbf16, #tpu.memory_space<vmem>>, %arg8: memref<128x128xbf16, #tpu.memory_space<vmem>>, %arg9: memref<1x128xf32, #tpu.memory_space<vmem>>, %arg10: memref<128x128xbf16, #tpu.memory_space<vmem>>, %arg11: memref<128x128xf32, #tpu.memory_space<vmem>>) attributes {dimension_semantics = [#tpu.dimension_semantics<parallel>, #tpu.dimension_semantics<arbitrary>], iteration_bounds = array<i64: 1, 1>, scalar_prefetch = 2 : i64, scratch_operands = 1 : i64, tpu.core_type = #tpu.core_type<tc>, window_params = [{transform_indices = @transform_0, window_bounds = array<i64: 128, 128>}, {transform_indices = @transform_1, window_bounds = array<i64: 128, 128>}, {transform_indices = @transform_2, window_bounds = array<i64: 128, 128>}, {pipeline_mode = #tpu.pipeline_mode<synchronous>, transform_indices = @transform_3, window_bounds = array<i64: 128, 128>}, {pipeline_mode = #tpu.pipeline_mode<synchronous>, transform_indices = @transform_4, window_bounds = array<i64: 128, 128>}, {pipeline_mode = #tpu.pipeline_mode<synchronous>, transform_indices = @transform_5, window_bounds = array<i64: 1, 128>}, {transform_indices = @transform_6, window_bounds = array<i64: 128, 128>}]} {
    %c0_i32 = arith.constant 0 : i32
    %0 = arith.cmpi eq, %arg1, %c0_i32 : i32
    %1 = arith.extui %0 : i1 to i32
    %c0_i32_0 = arith.constant 0 : i32
    %2 = arith.cmpi ne, %1, %c0_i32_0 : i32
    scf.if %2 {
      %cst = arith.constant 0.000000e+00 : f32
      %11 = vector.broadcast %cst : f32 to vector<128x128xf32>
      %c0 = arith.constant 0 : index
      %c0_4 = arith.constant 0 : index
      %12 = vector.load %arg11[%c0, %c0_4] : memref<128x128xf32, #tpu.memory_space<vmem>>, vector<128x128xf32>
      tpu.vector_store %arg11[%c0, %c0_4], %11 {strides = array<i32>} : memref<128x128xf32, #tpu.memory_space<vmem>>, vector<128x128xf32>,
    } else {
    }
    %3 = arith.index_cast %arg0 : i32 to index
    %4 = memref.load %arg2[%3] : memref<1xi32, #tpu.memory_space<smem>>
    %5 = arith.cmpi slt, %arg1, %4 : i32
    %6 = arith.extui %5 : i1 to i32
    %c0_i32_1 = arith.constant 0 : i32
    %7 = arith.cmpi ne, %6, %c0_i32_1 : i32
    scf.if %7 {
      %c0 = arith.constant 0 : index
      %c0_4 = arith.constant 0 : index
      %11 = vector.load %arg11[%c0, %c0_4] : memref<128x128xf32, #tpu.memory_space<vmem>>, vector<128x128xf32>
      %c0_5 = arith.constant 0 : index
      %c0_6 = arith.constant 0 : index
      %12 = vector.load %arg4[%c0_5, %c0_6] : memref<128x128xbf16, #tpu.memory_space<vmem>>, vector<128x128xbf16>
      %c0_7 = arith.constant 0 : index
      %c0_8 = arith.constant 0 : index
      %13 = vector.load %arg5[%c0_7, %c0_8] : memref<128x128xbf16, #tpu.memory_space<vmem>>, vector<128x128xbf16>
      %cst = arith.constant dense<0.000000e+00> : vector<128x128xf32>
      %14 = tpu.matmul %12, %13, %cst {dimension_numbers = #tpu.dot_dimension_numbers<[1], [0], [0], [1], [0, 0, 1, 1], [], []>} : vector<128x128xbf16>, vector<128x128xbf16>, vector<128x128xf32> -> vector<128x128xf32>
      %15 = arith.addf %11, %14 : vector<128x128xf32>
      %c0_9 = arith.constant 0 : index
      %c0_10 = arith.constant 0 : index
      %16 = vector.load %arg11[%c0_9, %c0_10] : memref<128x128xf32, #tpu.memory_space<vmem>>, vector<128x128xf32>
      tpu.vector_store %arg11[%c0_9, %c0_10], %15 {strides = array<i32>} : memref<128x128xf32, #tpu.memory_space<vmem>>, vector<128x128xf32>,
    } else {
    }
    %c0_i32_2 = arith.constant 0 : i32
    %8 = arith.cmpi eq, %arg1, %c0_i32_2 : i32
    %9 = arith.extui %8 : i1 to i32
    %c0_i32_3 = arith.constant 0 : i32
    %10 = arith.cmpi ne, %9, %c0_i32_3 : i32
    scf.if %10 {
      %c0 = arith.constant 0 : index
      %c0_4 = arith.constant 0 : index
      %11 = vector.load %arg6[%c0, %c0_4] : memref<128x128xbf16, #tpu.memory_space<vmem>>, vector<128x128xbf16>
      %c0_5 = arith.constant 0 : index
      %c0_6 = arith.constant 0 : index
      %12 = vector.load %arg7[%c0_5, %c0_6] : memref<128x128xbf16, #tpu.memory_space<vmem>>, vector<128x128xbf16>
      %cst = arith.constant dense<0.000000e+00> : vector<128x128xf32>
      %13 = tpu.matmul %11, %12, %cst {dimension_numbers = #tpu.dot_dimension_numbers<[1], [0], [0], [1], [0, 0, 1, 1], [], []>} : vector<128x128xbf16>, vector<128x128xbf16>, vector<128x128xf32> -> vector<128x128xf32>
      %c0_7 = arith.constant 0 : index
      %c0_8 = arith.constant 0 : index
      %14 = vector.load %arg11[%c0_7, %c0_8] : memref<128x128xf32, #tpu.memory_space<vmem>>, vector<128x128xf32>
      %15 = arith.truncf %14 : vector<128x128xf32> to vector<128x128xbf16>
      %c0_9 = arith.constant 0 : index
      %c0_10 = arith.constant 0 : index
      %16 = vector.load %arg8[%c0_9, %c0_10] : memref<128x128xbf16, #tpu.memory_space<vmem>>, vector<128x128xbf16>
      %cst_11 = arith.constant dense<0.000000e+00> : vector<128x128xf32>
      %17 = tpu.matmul %15, %16, %cst_11 {dimension_numbers = #tpu.dot_dimension_numbers<[1], [0], [0], [1], [0, 0, 1, 1], [], []>} : vector<128x128xbf16>, vector<128x128xbf16>, vector<128x128xf32> -> vector<128x128xf32>
      %18 = arith.addf %13, %17 : vector<128x128xf32>
      %c0_12 = arith.constant 0 : index
      %c0_13 = arith.constant 0 : index
      %19 = vector.load %arg9[%c0_12, %c0_13] : memref<1x128xf32, #tpu.memory_space<vmem>>, vector<1x128xf32>
      %20 = vector.broadcast %19 : vector<1x128xf32> to vector<128x128xf32>
      %21 = arith.addf %18, %20 : vector<128x128xf32>
      %22 = arith.truncf %21 : vector<128x128xf32> to vector<128x128xbf16>
      %c0_14 = arith.constant 0 : index
      %c0_15 = arith.constant 0 : index
      %23 = vector.load %arg10[%c0_14, %c0_15] : memref<128x128xbf16, #tpu.memory_space<vmem>>, vector<128x128xbf16>
      tpu.vector_store %arg10[%c0_14, %c0_15], %22 {strides = array<i32>} : memref<128x128xbf16, #tpu.memory_space<vmem>>, vector<128x128xbf16>,
    } else {
    }
    return
  }
  func.func @transform_0(%arg0: i32, %arg1: i32, %arg2: memref<1xi32, #tpu.memory_space<smem>>, %arg3: memref<1x1xi32, #tpu.memory_space<smem>>) -> (i32, i32) {
    %0 = arith.index_cast %arg0 : i32 to index
    %1 = arith.index_cast %arg1 : i32 to index
    %2 = memref.load %arg3[%0, %1] : memref<1x1xi32, #tpu.memory_space<smem>>
    %c0_i32 = arith.constant 0 : i32
    return %arg0, %2 : i32, i32
  }
  func.func @transform_1(%arg0: i32, %arg1: i32, %arg2: memref<1xi32, #tpu.memory_space<smem>>, %arg3: memref<1x1xi32, #tpu.memory_space<smem>>) -> (i32, i32) {
    %0 = arith.index_cast %arg0 : i32 to index
    %1 = arith.index_cast %arg1 : i32 to index
    %2 = memref.load %arg3[%0, %1] : memref<1x1xi32, #tpu.memory_space<smem>>
    %c0_i32 = arith.constant 0 : i32
    %c0_i32_0 = arith.constant 0 : i32
    return %2, %c0_i32 : i32, i32
  }
  func.func @transform_2(%arg0: i32, %arg1: i32, %arg2: memref<1xi32, #tpu.memory_space<smem>>, %arg3: memref<1x1xi32, #tpu.memory_space<smem>>) -> (i32, i32) {
    %c0_i32 = arith.constant 0 : i32
    %c0_i32_0 = arith.constant 0 : i32
    return %arg0, %c0_i32 : i32, i32
  }
  func.func @transform_3(%arg0: i32, %arg1: i32, %arg2: memref<1xi32, #tpu.memory_space<smem>>, %arg3: memref<1x1xi32, #tpu.memory_space<smem>>) -> (i32, i32) {
    %c0_i32 = arith.constant 0 : i32
    %c0_i32_0 = arith.constant 0 : i32
    %c0_i32_1 = arith.constant 0 : i32
    return %c0_i32, %c0_i32_0 : i32, i32
  }
  func.func @transform_4(%arg0: i32, %arg1: i32, %arg2: memref<1xi32, #tpu.memory_space<smem>>, %arg3: memref<1x1xi32, #tpu.memory_space<smem>>) -> (i32, i32) {
    %c0_i32 = arith.constant 0 : i32
    %c0_i32_0 = arith.constant 0 : i32
    %c0_i32_1 = arith.constant 0 : i32
    return %c0_i32, %c0_i32_0 : i32, i32
  }
  func.func @transform_5(%arg0: i32, %arg1: i32, %arg2: memref<1xi32, #tpu.memory_space<smem>>, %arg3: memref<1x1xi32, #tpu.memory_space<smem>>) -> (i32, i32) {
    %c0_i32 = arith.constant 0 : i32
    %c0_i32_0 = arith.constant 0 : i32
    %c0_i32_1 = arith.constant 0 : i32
    return %c0_i32, %c0_i32_0 : i32, i32
  }
  func.func @transform_6(%arg0: i32, %arg1: i32, %arg2: memref<1xi32, #tpu.memory_space<smem>>, %arg3: memref<1x1xi32, #tpu.memory_space<smem>>) -> (i32, i32) {
    %c0_i32 = arith.constant 0 : i32
    %c0_i32_0 = arith.constant 0 : i32
    return %arg0, %c0_i32 : i32, i32
  }
}

module attributes {stable_mosaic.version = 11 : i64} {
  func.func @_edge_mlp_kernel(%arg0: i32, %arg1: memref<128x128xbf16, #tpu.memory_space<vmem>>, %arg2: memref<128x128xbf16, #tpu.memory_space<vmem>>, %arg3: memref<128x256xbf16, #tpu.memory_space<vmem>>, %arg4: memref<128x256xbf16, #tpu.memory_space<vmem>>, %arg5: memref<1x256xf32, #tpu.memory_space<vmem>>, %arg6: memref<256x128xbf16, #tpu.memory_space<vmem>>, %arg7: memref<1x128xf32, #tpu.memory_space<vmem>>, %arg8: memref<128x128xbf16, #tpu.memory_space<vmem>>, %arg9: memref<1x128xf32, #tpu.memory_space<vmem>>, %arg10: memref<128x128xbf16, #tpu.memory_space<vmem>>) attributes {dimension_semantics = [#tpu.dimension_semantics<parallel>], iteration_bounds = array<i64: 1>, scalar_prefetch = 0 : i64, scratch_operands = 0 : i64, tpu.core_type = #tpu.core_type<tc>, window_params = [{transform_indices = @transform_0, window_bounds = array<i64: 128, 128>}, {transform_indices = @transform_1, window_bounds = array<i64: 128, 128>}, {pipeline_mode = #tpu.pipeline_mode<synchronous>, transform_indices = @transform_2, window_bounds = array<i64: 128, 256>}, {pipeline_mode = #tpu.pipeline_mode<synchronous>, transform_indices = @transform_3, window_bounds = array<i64: 128, 256>}, {pipeline_mode = #tpu.pipeline_mode<synchronous>, transform_indices = @transform_4, window_bounds = array<i64: 1, 256>}, {pipeline_mode = #tpu.pipeline_mode<synchronous>, transform_indices = @transform_5, window_bounds = array<i64: 256, 128>}, {pipeline_mode = #tpu.pipeline_mode<synchronous>, transform_indices = @transform_6, window_bounds = array<i64: 1, 128>}, {pipeline_mode = #tpu.pipeline_mode<synchronous>, transform_indices = @transform_7, window_bounds = array<i64: 128, 128>}, {pipeline_mode = #tpu.pipeline_mode<synchronous>, transform_indices = @transform_8, window_bounds = array<i64: 1, 128>}, {transform_indices = @transform_9, window_bounds = array<i64: 128, 128>}]} {
    %c0 = arith.constant 0 : index
    %c0_0 = arith.constant 0 : index
    %0 = vector.load %arg1[%c0, %c0_0] : memref<128x128xbf16, #tpu.memory_space<vmem>>, vector<128x128xbf16>
    %c0_1 = arith.constant 0 : index
    %c0_2 = arith.constant 0 : index
    %1 = vector.load %arg3[%c0_1, %c0_2] : memref<128x256xbf16, #tpu.memory_space<vmem>>, vector<128x256xbf16>
    %cst = arith.constant dense<0.000000e+00> : vector<128x256xf32>
    %2 = tpu.matmul %0, %1, %cst {dimension_numbers = #tpu.dot_dimension_numbers<[1], [0], [0], [1], [0, 0, 1, 1], [], []>} : vector<128x128xbf16>, vector<128x256xbf16>, vector<128x256xf32> -> vector<128x256xf32>
    %c0_3 = arith.constant 0 : index
    %c0_4 = arith.constant 0 : index
    %3 = vector.load %arg2[%c0_3, %c0_4] : memref<128x128xbf16, #tpu.memory_space<vmem>>, vector<128x128xbf16>
    %c0_5 = arith.constant 0 : index
    %c0_6 = arith.constant 0 : index
    %4 = vector.load %arg4[%c0_5, %c0_6] : memref<128x256xbf16, #tpu.memory_space<vmem>>, vector<128x256xbf16>
    %cst_7 = arith.constant dense<0.000000e+00> : vector<128x256xf32>
    %5 = tpu.matmul %3, %4, %cst_7 {dimension_numbers = #tpu.dot_dimension_numbers<[1], [0], [0], [1], [0, 0, 1, 1], [], []>} : vector<128x128xbf16>, vector<128x256xbf16>, vector<128x256xf32> -> vector<128x256xf32>
    %6 = arith.addf %2, %5 : vector<128x256xf32>
    %c0_8 = arith.constant 0 : index
    %c0_9 = arith.constant 0 : index
    %7 = vector.load %arg5[%c0_8, %c0_9] : memref<1x256xf32, #tpu.memory_space<vmem>>, vector<1x256xf32>
    %8 = vector.broadcast %7 : vector<1x256xf32> to vector<128x256xf32>
    %9 = arith.addf %6, %8 : vector<128x256xf32>
    %cst_10 = arith.constant 0.00999999977 : f32
    %10 = vector.broadcast %cst_10 : f32 to vector<128x256xf32>
    %11 = arith.mulf %10, %9 : vector<128x256xf32>
    %12 = arith.maximumf %9, %11 : vector<128x256xf32>
    %13 = arith.truncf %12 : vector<128x256xf32> to vector<128x256xbf16>
    %c0_11 = arith.constant 0 : index
    %c0_12 = arith.constant 0 : index
    %14 = vector.load %arg6[%c0_11, %c0_12] : memref<256x128xbf16, #tpu.memory_space<vmem>>, vector<256x128xbf16>
    %cst_13 = arith.constant dense<0.000000e+00> : vector<128x128xf32>
    %15 = tpu.matmul %13, %14, %cst_13 {dimension_numbers = #tpu.dot_dimension_numbers<[1], [0], [0], [1], [0, 0, 1, 1], [], []>} : vector<128x256xbf16>, vector<256x128xbf16>, vector<128x128xf32> -> vector<128x128xf32>
    %c0_14 = arith.constant 0 : index
    %c0_15 = arith.constant 0 : index
    %16 = vector.load %arg7[%c0_14, %c0_15] : memref<1x128xf32, #tpu.memory_space<vmem>>, vector<1x128xf32>
    %17 = vector.broadcast %16 : vector<1x128xf32> to vector<128x128xf32>
    %18 = arith.addf %15, %17 : vector<128x128xf32>
    %cst_16 = arith.constant 0.00999999977 : f32
    %19 = vector.broadcast %cst_16 : f32 to vector<128x128xf32>
    %20 = arith.mulf %19, %18 : vector<128x128xf32>
    %21 = arith.maximumf %18, %20 : vector<128x128xf32>
    %22 = arith.truncf %21 : vector<128x128xf32> to vector<128x128xbf16>
    %c0_17 = arith.constant 0 : index
    %c0_18 = arith.constant 0 : index
    %23 = vector.load %arg8[%c0_17, %c0_18] : memref<128x128xbf16, #tpu.memory_space<vmem>>, vector<128x128xbf16>
    %cst_19 = arith.constant dense<0.000000e+00> : vector<128x128xf32>
    %24 = tpu.matmul %22, %23, %cst_19 {dimension_numbers = #tpu.dot_dimension_numbers<[1], [0], [0], [1], [0, 0, 1, 1], [], []>} : vector<128x128xbf16>, vector<128x128xbf16>, vector<128x128xf32> -> vector<128x128xf32>
    %c0_20 = arith.constant 0 : index
    %c0_21 = arith.constant 0 : index
    %25 = vector.load %arg9[%c0_20, %c0_21] : memref<1x128xf32, #tpu.memory_space<vmem>>, vector<1x128xf32>
    %26 = vector.broadcast %25 : vector<1x128xf32> to vector<128x128xf32>
    %27 = arith.addf %24, %26 : vector<128x128xf32>
    %28 = arith.truncf %27 : vector<128x128xf32> to vector<128x128xbf16>
    %c0_22 = arith.constant 0 : index
    %c0_23 = arith.constant 0 : index
    %29 = vector.load %arg10[%c0_22, %c0_23] : memref<128x128xbf16, #tpu.memory_space<vmem>>, vector<128x128xbf16>
    tpu.vector_store %arg10[%c0_22, %c0_23], %28 {strides = array<i32>} : memref<128x128xbf16, #tpu.memory_space<vmem>>, vector<128x128xbf16>,
    return
  }
  func.func @transform_0(%arg0: i32) -> (i32, i32) {
    %c0_i32 = arith.constant 0 : i32
    %c0_i32_0 = arith.constant 0 : i32
    return %arg0, %c0_i32 : i32, i32
  }
  func.func @transform_1(%arg0: i32) -> (i32, i32) {
    %c0_i32 = arith.constant 0 : i32
    %c0_i32_0 = arith.constant 0 : i32
    return %arg0, %c0_i32 : i32, i32
  }
  func.func @transform_2(%arg0: i32) -> (i32, i32) {
    %c0_i32 = arith.constant 0 : i32
    %c0_i32_0 = arith.constant 0 : i32
    %c0_i32_1 = arith.constant 0 : i32
    return %c0_i32, %c0_i32_0 : i32, i32
  }
  func.func @transform_3(%arg0: i32) -> (i32, i32) {
    %c0_i32 = arith.constant 0 : i32
    %c0_i32_0 = arith.constant 0 : i32
    %c0_i32_1 = arith.constant 0 : i32
    return %c0_i32, %c0_i32_0 : i32, i32
  }
  func.func @transform_4(%arg0: i32) -> (i32, i32) {
    %c0_i32 = arith.constant 0 : i32
    %c0_i32_0 = arith.constant 0 : i32
    %c0_i32_1 = arith.constant 0 : i32
    return %c0_i32, %c0_i32_0 : i32, i32
  }
  func.func @transform_5(%arg0: i32) -> (i32, i32) {
    %c0_i32 = arith.constant 0 : i32
    %c0_i32_0 = arith.constant 0 : i32
    %c0_i32_1 = arith.constant 0 : i32
    return %c0_i32, %c0_i32_0 : i32, i32
  }
  func.func @transform_6(%arg0: i32) -> (i32, i32) {
    %c0_i32 = arith.constant 0 : i32
    %c0_i32_0 = arith.constant 0 : i32
    %c0_i32_1 = arith.constant 0 : i32
    return %c0_i32, %c0_i32_0 : i32, i32
  }
  func.func @transform_7(%arg0: i32) -> (i32, i32) {
    %c0_i32 = arith.constant 0 : i32
    %c0_i32_0 = arith.constant 0 : i32
    %c0_i32_1 = arith.constant 0 : i32
    return %c0_i32, %c0_i32_0 : i32, i32
  }
  func.func @transform_8(%arg0: i32) -> (i32, i32) {
    %c0_i32 = arith.constant 0 : i32
    %c0_i32_0 = arith.constant 0 : i32
    %c0_i32_1 = arith.constant 0 : i32
    return %c0_i32, %c0_i32_0 : i32, i32
  }
  func.func @transform_9(%arg0: i32) -> (i32, i32) {
    %c0_i32 = arith.constant 0 : i32
    %c0_i32_0 = arith.constant 0 : i32
    return %arg0, %c0_i32 : i32, i32
  }
}

</mosaic_0001>

<bundles_post_ra>
// kernel: sage_model_forward.6
= control target key start
LH: loop header
LB: loop body
LE: loop exit
PB: predicated region body
PF: predicated region fallthrough
CT: control target
= control target key end

     0   :  { %v1253_v0 = vmov 0.0   ;;  %s1458_s0 = inlined_call_operand.<no memory space> [shape: s32[1], index: 0, kind: input, shape index: {}]   ;;  %s1459_s1 = inlined_call_operand.<no memory space> [shape: s32[1,1], index: 1, kind: input, shape index: {}]   ;;  %s1460_s4 = inlined_call_operand.vmem [shape: bf16[128,128], index: 4, kind: input, shape index: {}, may-alias: {3,4}]   ;;  %s1461_s5 = inlined_call_operand.vmem [shape: bf16[128,128], index: 5, kind: input, shape index: {}]   ;;  %s1462_s6 = inlined_call_operand.vmem [shape: bf16[128,128], index: 6, kind: input, shape index: {}]   ;;  %s1463_s7 = inlined_call_operand.vmem [shape: f32[1,128], index: 7, kind: input, shape index: {}]   ;;  %s1464_s8 = inlined_call_operand.vmem [shape: bf16[128,128], index: 8, kind: output, shape index: {}]   ;;  %s1465_s2 = inlined_call_operand.vmem [shape: bf16[128,128], index: 2, kind: input, shape index: {}]   ;;  %s1466_s3 = inlined_call_operand.vmem [shape: bf16[128,128], index: 3, kind: input, shape index: {}, may-alias: {3,4}]  }
   0x1   :  { %p74_p0 = scmp.lt.s32.totalorder %s1459_s1, 0  ;;  %s928_s9 = sshll.u32 %s1459_s1, 4  ;;  %101 = vst [vmem:[#allocation2 + $0x30] sm:$0xff] %v1253_v0  ;;  %102 = vst [vmem:[#allocation2] sm:$0xff] %v1253_v0 }
   0x2   :  { %103 = vst [vmem:[#allocation2 + $0x58] sm:$0xff] %v1253_v0  ;;  %104 = vst [vmem:[#allocation2 + $0x18] sm:$0xff] %v1253_v0  ;;  %p87_p1 = scmp.lt.s32.totalorder %s928_s9, 15  ;;  %p931_p2 = scmp.le.s32.totalorder %s1458_s0, 0 }
   0x3   :  { %105 = vst [vmem:[#allocation2 + $0x50] sm:$0xff] %v1253_v0  ;;  %106 = vst [vmem:[#allocation2 + $0x68] sm:$0xff] %v1253_v0  ;;  %s1468_s1 = smov (!%p74_p0, %s1459_s1), 0 }
   0x4   :  { %107 = vst [vmem:[#allocation2 + $0x8] sm:$0xff] %v1253_v0  ;;  %108 = vst [vmem:[#allocation2 + $0x48] sm:$0xff] %v1253_v0  ;;  %s1470_s9 = smov (!%p87_p1, %s928_s9), 15  ;;  %s927_s14 = sshll.u32 %s1468_s1, 2 }
   0x5   :  { %109 = vst [vmem:[#allocation2 + $0x40] sm:$0xff] %v1253_v0  ;;  %110 = vst [vmem:[#allocation2 + $0x20] sm:$0xff] %v1253_v0  ;;  %s1315_s17 = scalar_lea.vmem %s1465_s2, %s927_s14  ;;  %s929_s18 = sshll.u32 %s1470_s9, 2 }
   0x6   :  { %111 = vst [vmem:[#allocation2 + $0x10] sm:$0xff] %v1253_v0  ;;  %112 = vst [vmem:[#allocation2 + $0x38] sm:$0xff] %v1253_v0  ;;  %s1320_s21 = scalar_lea.vmem %s1466_s3, %s929_s18  ;;  %121 = sbr.rel (%p931_p2) target bundleno = 254 (0xfe), region = 33 }
   0x7   :  { %113 = vst [vmem:[#allocation2 + $0x60] sm:$0xff] %v1253_v0  ;;  %114 = vst [vmem:[#allocation2 + $0x70] sm:$0xff] %v1253_v0 }
   0x8   :  { %115 = vst [vmem:[#allocation2 + $0x78] sm:$0xff] %v1253_v0  ;;  %116 = vst [vmem:[#allocation2 + $0x28] sm:$0xff] %v1253_v0 }
   0xb   :  { %v1213_v1 = vld [vmem:[%s1320_s21 + $0x38] sm:$0xff]   ;;  %v1214_v2 = vld [vmem:[%s1320_s21 + $0x30] sm:$0xff]   ;;  %v1215_v3 = vld [vmem:[%s1320_s21 + $0x28] sm:$0xff]  }
   0xc   :  { %1100 = vmatprep.subr.bf16.mxu0 %v1213_v1  ;;  %1196 = vmatprep.subr.bf16.mxu1 %v1213_v1  ;;  %v1216_v4 = vld [vmem:[%s1320_s21 + $0x20] sm:$0xff]   ;;  %v1217_v7 = vld [vmem:[%s1320_s21 + $0x18] sm:$0xff]   ;;  %v1218_v8 = vld [vmem:[%s1320_s21 + $0x10] sm:$0xff]  }
   0xd   :  { %1101 = vmatpush3.bf16.msra.mxu0 %v1213_v1  ;;  %1204 = vmatpush3.bf16.msra.mxu1 %v1213_v1  ;;  %v1221_v5 = vld [vmem:[%s1315_s17] sm:$0xff]   ;;  %v1219_v9 = vld [vmem:[%s1320_s21 + $0x8] sm:$0xff]   ;;  %v1225_v13 = vld [vmem:[%s1315_s17 + $0x10] sm:$0xff]  }
   0xe   :  { %1102 = vmatprep.subr.bf16.mxu0 %v1214_v2  ;;  %1197 = vmatprep.subr.bf16.mxu1 %v1214_v2  ;;  %v1222_v6 = vld [vmem:[%s1315_s17 + $0x20] sm:$0xff]   ;;  %v1223_v11 = vld [vmem:[%s1315_s17 + $0x8] sm:$0xff]   ;;  %v1226_v14 = vld [vmem:[%s1315_s17 + $0x30] sm:$0xff]  }
   0xf   :  { %1116 = vmatprep.mubr.bf16.mxu0 %v1221_v5  ;;  %1124 = vmatprep.mubr.bf16.mxu1 %v1222_v6  ;;  %v1220_v10 = vld [vmem:[%s1320_s21] sm:$0xff]   ;;  %v1224_v12 = vld [vmem:[%s1315_s17 + $0x28] sm:$0xff]   ;;  %v1227_v15 = vld [vmem:[%s1315_s17 + $0x18] sm:$0xff]  }
  0x10   :  { %v1228_v16 = vld [vmem:[%s1315_s17 + $0x38] sm:$0xff]   ;;  %v132_v18 = vld [vmem:[#allocation2 + $0x10] sm:$0xff]  ;;  %v130_v22 = vld [vmem:[#allocation2 + $0x40] sm:$0xff] }
  0x11   :  { %1103 = vmatpush3.bf16.msra.mxu0 %v1214_v2  ;;  %1205 = vmatpush3.bf16.msra.mxu1 %v1214_v2  ;;  %v124_v17 = vld [vmem:[#allocation2 + $0x58] sm:$0xff]  ;;  %v122_v21 = vld [vmem:[#allocation2 + $0x30] sm:$0xff]  ;;  %v123_v33 = vld [vmem:[#allocation2] sm:$0xff] }
  0x12   :  { %1104 = vmatprep.subr.bf16.mxu0 %v1215_v3  ;;  %1198 = vmatprep.subr.bf16.mxu1 %v1215_v3  ;;  %v125_v27 = vld [vmem:[#allocation2 + $0x18] sm:$0xff]  ;;  %v131_v34 = vld [vmem:[#allocation2 + $0x20] sm:$0xff]  ;;  %v128_v39 = vld [vmem:[#allocation2 + $0x8] sm:$0xff] }
  0x13   :  { %v133_v28 = vld [vmem:[#allocation2 + $0x38] sm:$0xff]  ;;  %v126_v45 = vld [vmem:[#allocation2 + $0x50] sm:$0xff]  ;;  %v134_v46 = vld [vmem:[#allocation2 + $0x60] sm:$0xff] }
  0x14   :  { %v136_v40 = vld [vmem:[#allocation2 + $0x78] sm:$0xff]  ;;  %v129_v51 = vld [vmem:[#allocation2 + $0x48] sm:$0xff]  ;;  %v135_v58 = vld [vmem:[#allocation2 + $0x70] sm:$0xff] }
  0x15   :  { %1105 = vmatpush3.bf16.msra.mxu0 %v1215_v3  ;;  %1206 = vmatpush3.bf16.msra.mxu1 %v1215_v3  ;;  %v137_v52 = vld [vmem:[#allocation2 + $0x28] sm:$0xff] }
  0x16   :  { %1106 = vmatprep.subr.bf16.mxu0 %v1216_v4  ;;  %1199 = vmatprep.subr.bf16.mxu1 %v1216_v4  ;;  %v127_v57 = vld [vmem:[#allocation2 + $0x68] sm:$0xff] }
  0x19   :  { %1107 = vmatpush3.bf16.msra.mxu0 %v1216_v4  ;;  %1207 = vmatpush3.bf16.msra.mxu1 %v1216_v4 }
  0x1a   :  { %1108 = vmatprep.subr.bf16.mxu0 %v1217_v7  ;;  %1200 = vmatprep.subr.bf16.mxu1 %v1217_v7 }
  0x1d   :  { %1109 = vmatpush3.bf16.msra.mxu0 %v1217_v7  ;;  %1208 = vmatpush3.bf16.msra.mxu1 %v1217_v7 }
  0x1e   :  { %1110 = vmatprep.subr.bf16.mxu0 %v1218_v8  ;;  %1201 = vmatprep.subr.bf16.mxu1 %v1218_v8 }
  0x21   :  { %1111 = vmatpush3.bf16.msra.mxu0 %v1218_v8  ;;  %1209 = vmatpush3.bf16.msra.mxu1 %v1218_v8 }
  0x22   :  { %1112 = vmatprep.subr.bf16.mxu0 %v1219_v9  ;;  %1202 = vmatprep.subr.bf16.mxu1 %v1219_v9 }
  0x25   :  { %1113 = vmatpush3.bf16.msra.mxu0 %v1219_v9  ;;  %1210 = vmatpush3.bf16.msra.mxu1 %v1219_v9 }
  0x26   :  { %1114 = vmatprep.subr.bf16.mxu0 %v1220_v10  ;;  %1203 = vmatprep.subr.bf16.mxu1 %v1220_v10 }
  0x29   :  { %1115 = vmatpush3.bf16.msra.mxu0 %v1220_v10  ;;  %1211 = vmatpush3.bf16.msra.mxu1 %v1220_v10 }
  0x2c   :  { %1117 = vmatmul.mubr.bf16.vlgmr.msra.gmra.mxu0 %v1223_v11  ;;  %1125 = vmatmul.mubr.bf16.vlgmr.msra.gmra.mxu1 %v1224_v12 }
  0x2d   :  { %1120 = vmatprep.mubr.bf16.mxu0 %v1225_v13  ;;  %1128 = vmatprep.mubr.bf16.mxu1 %v1226_v14 }
  0x34   :  { %1121 = vmatmul.mubr.bf16.gmra.mxu0 %v1227_v15  ;;  %1129 = vmatmul.mubr.bf16.gmra.mxu1 %v1228_v16 }
  0xec   :  { %v1118_v19 = vpop.f32.mrf.mxu0  ;;  %v1126_v20 = vpop.f32.mrf.mxu1 }
  0xed   :  { %v365_v23 = vadd.f32 %v1118_v19, %v124_v17  ;;  %v373_v24 = vadd.f32 %v1126_v20, %v132_v18 }
  0xee   :  { %v300_v25 = vpop.f32.mrf.mxu0  ;;  %v332_v26 = vpop.f32.mrf.mxu1 }
  0xef   :  { %381 = vst [vmem:[#allocation2 + $0x58] sm:$0xff] %v365_v23  ;;  %389 = vst [vmem:[#allocation2 + $0x10] sm:$0xff] %v373_v24  ;;  %v363_v29 = vadd.f32 %v300_v25, %v122_v21  ;;  %v371_v30 = vadd.f32 %v332_v26, %v130_v22 }
  0xf0   :  { %v1119_v31 = vpop.f32.mrf.mxu0  ;;  %v1127_v32 = vpop.f32.mrf.mxu1 }
  0xf1   :  { %379 = vst [vmem:[#allocation2 + $0x30] sm:$0xff] %v363_v29  ;;  %387 = vst [vmem:[#allocation2 + $0x40] sm:$0xff] %v371_v30  ;;  %v366_v35 = vadd.f32 %v1119_v31, %v125_v27  ;;  %v374_v36 = vadd.f32 %v1127_v32, %v133_v28 }
  0xf2   :  { %v303_v37 = vpop.f32.mrf.mxu0  ;;  %v335_v38 = vpop.f32.mrf.mxu1 }
  0xf3   :  { %382 = vst [vmem:[#allocation2 + $0x18] sm:$0xff] %v366_v35  ;;  %390 = vst [vmem:[#allocation2 + $0x38] sm:$0xff] %v374_v36  ;;  %v364_v41 = vadd.f32 %v303_v37, %v123_v33  ;;  %v372_v42 = vadd.f32 %v335_v38, %v131_v34 }
  0xf4   :  { %v1122_v43 = vpop.f32.mrf.mxu0  ;;  %v1130_v44 = vpop.f32.mrf.mxu1 }
  0xf5   :  { %380 = vst [vmem:[#allocation2] sm:$0xff] %v364_v41  ;;  %388 = vst [vmem:[#allocation2 + $0x20] sm:$0xff] %v372_v42  ;;  %v369_v47 = vadd.f32 %v1122_v43, %v128_v39  ;;  %v377_v48 = vadd.f32 %v1130_v44, %v136_v40 }
  0xf6   :  { %v316_v49 = vpop.f32.mrf.mxu0  ;;  %v348_v50 = vpop.f32.mrf.mxu1 }
  0xf7   :  { %385 = vst [vmem:[#allocation2 + $0x8] sm:$0xff] %v369_v47  ;;  %393 = vst [vmem:[#allocation2 + $0x78] sm:$0xff] %v377_v48  ;;  %v367_v53 = vadd.f32 %v316_v49, %v126_v45  ;;  %v375_v54 = vadd.f32 %v348_v50, %v134_v46 }
  0xf8   :  { %v1123_v55 = vpop.f32.mrf.mxu0  ;;  %v1131_v56 = vpop.f32.mrf.mxu1 }
  0xf9   :  { %383 = vst [vmem:[#allocation2 + $0x50] sm:$0xff] %v367_v53  ;;  %391 = vst [vmem:[#allocation2 + $0x60] sm:$0xff] %v375_v54  ;;  %v370_v59 = vadd.f32 %v1123_v55, %v129_v51  ;;  %v378_v60 = vadd.f32 %v1131_v56, %v137_v52 }
  0xfa   :  { %v319_v61 = vpop.f32.mrf.mxu0  ;;  %v351_v62 = vpop.f32.mrf.mxu1 }
  0xfb   :  { %386 = vst [vmem:[#allocation2 + $0x48] sm:$0xff] %v370_v59  ;;  %394 = vst [vmem:[#allocation2 + $0x28] sm:$0xff] %v378_v60  ;;  %v368_v63 = vadd.f32 %v319_v61, %v127_v57  ;;  %v376_v0 = vadd.f32 %v351_v62, %v135_v58 }
  0xfd   :  { %384 = vst [vmem:[#allocation2 + $0x68] sm:$0xff] %v368_v63  ;;  %392 = vst [vmem:[#allocation2 + $0x70] sm:$0xff] %v376_v0 }
  0xfe PF:  { %v1229_v1 = vld [vmem:[%s1462_s6 + $0x38] sm:$0xff]   ;;  %v1231_v3 = vld [vmem:[%s1462_s6 + $0x30] sm:$0xff]   ;;  %v1233_v5 = vld [vmem:[%s1462_s6 + $0x28] sm:$0xff]  }
  0xff   :  { %v1230_v2 = vld [vmem:[%s1461_s5 + $0x38] sm:$0xff]   ;;  %1132 = vmatprep.subr.bf16.mxu0 %v1229_v1  ;;  %v1232_v4 = vld [vmem:[%s1461_s5 + $0x30] sm:$0xff]   ;;  %v1234_v6 = vld [vmem:[%s1461_s5 + $0x28] sm:$0xff]  }
 0x100   :  { %1164 = vmatprep.subr.bf16.mxu1 %v1230_v2  ;;  %1133 = vmatpush3.bf16.msra.mxu0 %v1229_v1  ;;  %v1235_v7 = vld [vmem:[%s1462_s6 + $0x20] sm:$0xff]   ;;  %v1237_v9 = vld [vmem:[%s1462_s6 + $0x18] sm:$0xff]   ;;  %v1239_v11 = vld [vmem:[%s1462_s6 + $0x10] sm:$0xff]  }
 0x101   :  { %1165 = vmatpush3.bf16.msra.mxu1 %v1230_v2  ;;  %1134 = vmatprep.subr.bf16.mxu0 %v1231_v3  ;;  %v1236_v8 = vld [vmem:[%s1461_s5 + $0x20] sm:$0xff]   ;;  %v1238_v10 = vld [vmem:[%s1461_s5 + $0x18] sm:$0xff]   ;;  %v430_v12 = vld [vmem:[#allocation2 + $0x30] sm:$0xff] }
 0x102   :  { %1166 = vmatprep.subr.bf16.mxu1 %v1232_v4  ;;  %v431_v13 = vld [vmem:[#allocation2] sm:$0xff]  ;;  %v1240_v14 = vld [vmem:[%s1461_s5 + $0x10] sm:$0xff]   ;;  %v1241_v17 = vld [vmem:[%s1462_s6 + $0x8] sm:$0xff]  }
 0x103   :  { %v446_v15 = vpack.c.bf16 %v431_v13, %v430_v12  ;;  %v1245_v16 = vld [vmem:[%s1460_s4] sm:$0xff]   ;;  %v1242_v18 = vld [vmem:[%s1461_s5 + $0x8] sm:$0xff]   ;;  %v432_v21 = vld [vmem:[#allocation2 + $0x58] sm:$0xff] }
 0x104   :  { %1135 = vmatpush3.bf16.msra.mxu0 %v1231_v3  ;;  %1180 = vmatprep.mubr.bf16.mxu1 %v1245_v16  ;;  %v1243_v19 = vld [vmem:[%s1462_s6] sm:$0xff]   ;;  %v433_v22 = vld [vmem:[#allocation2 + $0x18] sm:$0xff]  ;;  %v434_v23 = vld [vmem:[#allocation2 + $0x50] sm:$0xff] }
 0x105   :  { %1167 = vmatpush3.bf16.msra.mxu1 %v1232_v4  ;;  %1136 = vmatprep.subr.bf16.mxu0 %v1233_v5  ;;  %v1244_v20 = vld [vmem:[%s1461_s5] sm:$0xff]   ;;  %v435_v24 = vld [vmem:[#allocation2 + $0x68] sm:$0xff]  ;;  %v447_v25 = vpack.c.bf16 %v433_v22, %v432_v21  ;;  %v1247_v28 = vld [vmem:[%s1460_s4 + $0x10] sm:$0xff]  }
 0x106   :  { %1168 = vmatprep.subr.bf16.mxu1 %v1234_v6  ;;  %1148 = vmatprep.mubr.bf16.mxu0 %v446_v15  ;;  %v1246_v26 = vld [vmem:[%s1460_s4 + $0x8] sm:$0xff]   ;;  %v448_v27 = vpack.c.bf16 %v435_v24, %v434_v23  ;;  %v438_v31 = vld [vmem:[#allocation2 + $0x40] sm:$0xff]  ;;  %v1248_v34 = vld [vmem:[%s1460_s4 + $0x18] sm:$0xff]  }
 0x107   :  { %v436_v29 = vld [vmem:[#allocation2 + $0x8] sm:$0xff]  ;;  %v439_v32 = vld [vmem:[#allocation2 + $0x20] sm:$0xff]  ;;  %v440_v37 = vld [vmem:[#allocation2 + $0x10] sm:$0xff] }
 0x108   :  { %1137 = vmatpush3.bf16.msra.mxu0 %v1233_v5  ;;  %v437_v30 = vld [vmem:[#allocation2 + $0x48] sm:$0xff]  ;;  %v450_v35 = vpack.c.bf16 %v439_v32, %v438_v31  ;;  %v1249_v36 = vld [vmem:[%s1460_s4 + $0x20] sm:$0xff]   ;;  %v441_v38 = vld [vmem:[#allocation2 + $0x38] sm:$0xff] }
 0x109   :  { %1169 = vmatpush3.bf16.msra.mxu1 %v1234_v6  ;;  %1138 = vmatprep.subr.bf16.mxu0 %v1235_v7  ;;  %v449_v33 = vpack.c.bf16 %v437_v30, %v436_v29  ;;  %v442_v39 = vld [vmem:[#allocation2 + $0x60] sm:$0xff]  ;;  %v443_v40 = vld [vmem:[#allocation2 + $0x70] sm:$0xff]  ;;  %v451_v41 = vpack.c.bf16 %v441_v38, %v440_v37  ;;  %v1250_v42 = vld [vmem:[%s1460_s4 + $0x28] sm:$0xff]  }
 0x10a   :  { %1170 = vmatprep.subr.bf16.mxu1 %v1236_v8  ;;  %v452_v43 = vpack.c.bf16 %v443_v40, %v442_v39  ;;  %v1251_v44 = vld [vmem:[%s1460_s4 + $0x30] sm:$0xff]   ;;  %v444_v45 = vld [vmem:[#allocation2 + $0x78] sm:$0xff]  ;;  %v445_v46 = vld [vmem:[#allocation2 + $0x28] sm:$0xff] }
 0x10b   :  { %v453_v47 = vpack.c.bf16 %v445_v46, %v444_v45  ;;  %v1252_v48 = vld [vmem:[%s1460_s4 + $0x38] sm:$0xff]   ;;  %v1416_v55 = vld [vmem:[%s1463_s7] ss:$0 sm:$0xff] }
 0x10c   :  { %1139 = vmatpush3.bf16.msra.mxu0 %v1235_v7 }
 0x10d   :  { %1171 = vmatpush3.bf16.msra.mxu1 %v1236_v8  ;;  %1140 = vmatprep.subr.bf16.mxu0 %v1237_v9 }
 0x10e   :  { %1172 = vmatprep.subr.bf16.mxu1 %v1238_v10 }
 0x110   :  { %1141 = vmatpush3.bf16.msra.mxu0 %v1237_v9 }
 0x111   :  { %1173 = vmatpush3.bf16.msra.mxu1 %v1238_v10  ;;  %1142 = vmatprep.subr.bf16.mxu0 %v1239_v11 }
 0x112   :  { %1174 = vmatprep.subr.bf16.mxu1 %v1240_v14 }
 0x114   :  { %1143 = vmatpush3.bf16.msra.mxu0 %v1239_v11 }
 0x115   :  { %1175 = vmatpush3.bf16.msra.mxu1 %v1240_v14  ;;  %1144 = vmatprep.subr.bf16.mxu0 %v1241_v17 }
 0x116   :  { %1176 = vmatprep.subr.bf16.mxu1 %v1242_v18 }
 0x118   :  { %1145 = vmatpush3.bf16.msra.mxu0 %v1241_v17 }
 0x119   :  { %1177 = vmatpush3.bf16.msra.mxu1 %v1242_v18  ;;  %1146 = vmatprep.subr.bf16.mxu0 %v1243_v19 }
 0x11a   :  { %1178 = vmatprep.subr.bf16.mxu1 %v1244_v20 }
 0x11c   :  { %1147 = vmatpush3.bf16.msra.mxu0 %v1243_v19 }
 0x11d   :  { %1179 = vmatpush3.bf16.msra.mxu1 %v1244_v20 }
 0x11f   :  { %1149 = vmatmul.mubr.bf16.vlgmr.msra.gmra.mxu0 %v447_v25 }
 0x120   :  { %1181 = vmatmul.mubr.bf16.vlgmr.msra.gmra.mxu1 %v1246_v26  ;;  %1152 = vmatprep.mubr.bf16.mxu0 %v448_v27 }
 0x121   :  { %1184 = vmatprep.mubr.bf16.mxu1 %v1247_v28 }
 0x127   :  { %1153 = vmatmul.mubr.bf16.gmra.mxu0 %v449_v33 }
 0x128   :  { %1185 = vmatmul.mubr.bf16.gmra.mxu1 %v1248_v34  ;;  %1156 = vmatprep.mubr.bf16.mxu0 %v450_v35 }
 0x129   :  { %1188 = vmatprep.mubr.bf16.mxu1 %v1249_v36 }
 0x12f   :  { %1157 = vmatmul.mubr.bf16.gmra.mxu0 %v451_v41 }
 0x130   :  { %1189 = vmatmul.mubr.bf16.gmra.mxu1 %v1250_v42  ;;  %1160 = vmatprep.mubr.bf16.mxu0 %v452_v43 }
 0x131   :  { %1192 = vmatprep.mubr.bf16.mxu1 %v1251_v44 }
 0x137   :  { %1161 = vmatmul.mubr.bf16.gmra.mxu0 %v453_v47 }
 0x138   :  { %1193 = vmatmul.mubr.bf16.gmra.mxu1 %v1252_v48 }
 0x1df   :  { %v1150_v49 = vpop.f32.mrf.mxu0 }
 0x1e0   :  { %v1182_v50 = vpop.f32.mrf.mxu1 }
 0x1e1   :  { %v552_v51 = vpop.f32.mrf.mxu0  ;;  %v754_v53 = vadd.f32 %v1182_v50, %v1150_v49 }
 0x1e2   :  { %v745_v52 = vpop.f32.mrf.mxu1 }
 0x1e3   :  { %v1151_v54 = vpop.f32.mrf.mxu0  ;;  %v746_v57 = vadd.f32 %v745_v52, %v552_v51  ;;  %v817_v61 = vadd.f32 %v1416_v55, %v754_v53 }
 0x1e4   :  { %v1183_v56 = vpop.f32.mrf.mxu1 }
 0x1e5   :  { %v757_v58 = vadd.f32 %v1183_v56, %v1151_v54  ;;  %v555_v59 = vpop.f32.mrf.mxu0  ;;  %v815_v2 = vadd.f32 %v1416_v55, %v746_v57 }
 0x1e6   :  { %v748_v60 = vpop.f32.mrf.mxu1 }
 0x1e7   :  { %v818_v62 = vadd.f32 %v1416_v55, %v757_v58  ;;  %v749_v63 = vadd.f32 %v748_v60, %v555_v59  ;;  %v1154_v0 = vpop.f32.mrf.mxu0 }
 0x1e8   :  { %v1186_v1 = vpop.f32.mrf.mxu1 }
 0x1e9   :  { %v1013_v3 = vpack.c.bf16 %v818_v62, %v817_v61  ;;  %v816_v4 = vadd.f32 %v1416_v55, %v749_v63  ;;  %v568_v5 = vpop.f32.mrf.mxu0  ;;  %v770_v8 = vadd.f32 %v1186_v1, %v1154_v0 }
 0x1ea   :  { %v761_v6 = vpop.f32.mrf.mxu1 }
 0x1eb   :  { %1045 = vst [vmem:[%s1464_s8 + $0x8] sm:$0xff] %v1013_v3   ;;  %v1008_v7 = vpack.c.bf16 %v816_v4, %v815_v2  ;;  %v1155_v9 = vpop.f32.mrf.mxu0  ;;  %v762_v11 = vadd.f32 %v761_v6, %v568_v5  ;;  %v821_v15 = vadd.f32 %v1416_v55, %v770_v8 }
 0x1ec   :  { %v1187_v10 = vpop.f32.mrf.mxu1 }
 0x1ed   :  { %1009 = vst [vmem:[%s1464_s8] sm:$0xff] %v1008_v7   ;;  %v773_v12 = vadd.f32 %v1187_v10, %v1155_v9  ;;  %v571_v13 = vpop.f32.mrf.mxu0  ;;  %v819_v20 = vadd.f32 %v1416_v55, %v762_v11 }
 0x1ee   :  { %v764_v14 = vpop.f32.mrf.mxu1 }
 0x1ef   :  { %v822_v16 = vadd.f32 %v1416_v55, %v773_v12  ;;  %v765_v17 = vadd.f32 %v764_v14, %v571_v13  ;;  %v1158_v18 = vpop.f32.mrf.mxu0 }
 0x1f0   :  { %v1190_v19 = vpop.f32.mrf.mxu1 }
 0x1f1   :  { %v1023_v21 = vpack.c.bf16 %v822_v16, %v821_v15  ;;  %v820_v22 = vadd.f32 %v1416_v55, %v765_v17  ;;  %v584_v23 = vpop.f32.mrf.mxu0  ;;  %v786_v26 = vadd.f32 %v1190_v19, %v1158_v18 }
 0x1f2   :  { %v777_v24 = vpop.f32.mrf.mxu1 }
 0x1f3   :  { %1047 = vst [vmem:[%s1464_s8 + $0x18] sm:$0xff] %v1023_v21   ;;  %v1018_v25 = vpack.c.bf16 %v820_v22, %v819_v20  ;;  %v1159_v27 = vpop.f32.mrf.mxu0  ;;  %v778_v29 = vadd.f32 %v777_v24, %v584_v23  ;;  %v825_v33 = vadd.f32 %v1416_v55, %v786_v26 }
 0x1f4   :  { %v1191_v28 = vpop.f32.mrf.mxu1 }
 0x1f5   :  { %1046 = vst [vmem:[%s1464_s8 + $0x10] sm:$0xff] %v1018_v25   ;;  %v789_v30 = vadd.f32 %v1191_v28, %v1159_v27  ;;  %v587_v31 = vpop.f32.mrf.mxu0  ;;  %v823_v38 = vadd.f32 %v1416_v55, %v778_v29 }
 0x1f6   :  { %v780_v32 = vpop.f32.mrf.mxu1 }
 0x1f7   :  { %v826_v34 = vadd.f32 %v1416_v55, %v789_v30  ;;  %v781_v35 = vadd.f32 %v780_v32, %v587_v31  ;;  %v1162_v36 = vpop.f32.mrf.mxu0 }
 0x1f8   :  { %v1194_v37 = vpop.f32.mrf.mxu1 }
 0x1f9   :  { %v1033_v39 = vpack.c.bf16 %v826_v34, %v825_v33  ;;  %v824_v40 = vadd.f32 %v1416_v55, %v781_v35  ;;  %v600_v41 = vpop.f32.mrf.mxu0  ;;  %v802_v44 = vadd.f32 %v1194_v37, %v1162_v36 }
 0x1fa   :  { %v793_v42 = vpop.f32.mrf.mxu1 }
 0x1fb   :  { %1049 = vst [vmem:[%s1464_s8 + $0x28] sm:$0xff] %v1033_v39   ;;  %v1028_v43 = vpack.c.bf16 %v824_v40, %v823_v38  ;;  %v1163_v45 = vpop.f32.mrf.mxu0  ;;  %v794_v47 = vadd.f32 %v793_v42, %v600_v41  ;;  %v829_v51 = vadd.f32 %v1416_v55, %v802_v44 }
 0x1fc   :  { %v1195_v46 = vpop.f32.mrf.mxu1 }
 0x1fd   :  { %1048 = vst [vmem:[%s1464_s8 + $0x20] sm:$0xff] %v1028_v43   ;;  %v805_v48 = vadd.f32 %v1195_v46, %v1163_v45  ;;  %v603_v49 = vpop.f32.mrf.mxu0  ;;  %v827_v54 = vadd.f32 %v1416_v55, %v794_v47 }
 0x1fe   :  { %v796_v50 = vpop.f32.mrf.mxu1 }
 0x1ff   :  { %v830_v52 = vadd.f32 %v1416_v55, %v805_v48  ;;  %v797_v53 = vadd.f32 %v796_v50, %v603_v49 }
 0x201   :  { %v1043_v56 = vpack.c.bf16 %v830_v52, %v829_v51  ;;  %v828_v57 = vadd.f32 %v1416_v55, %v797_v53 }
 0x203   :  { %1051 = vst [vmem:[%s1464_s8 + $0x38] sm:$0xff] %v1043_v56   ;;  %v1038_v58 = vpack.c.bf16 %v828_v57, %v827_v54 }
 0x205   :  { %1050 = vst [vmem:[%s1464_s8 + $0x30] sm:$0xff] %v1038_v58  }

// kernel: sage_model_forward.4
= control target key start
LH: loop header
LB: loop body
LE: loop exit
PB: predicated region body
PF: predicated region fallthrough
CT: control target
= control target key end

     0   :  { %15 = vsyncpa [#allocation7], 0  ;;  %s1558_s0 = inlined_call_operand.<no memory space> [shape: s32[1], index: 0, kind: input, shape index: {}]   ;;  %s1559_s1 = inlined_call_operand.<no memory space> [shape: s32[1,1], index: 1, kind: input, shape index: {}]   ;;  %s1560_s2 = inlined_call_operand.hbm [shape: bf16[128,128], index: 2, kind: input, shape index: {}]   ;;  %s1561_s3 = inlined_call_operand.hbm [shape: bf16[128,128], index: 3, kind: input, shape index: {}, may-alias: {3,4}]   ;;  %s1562_s4 = inlined_call_operand.hbm [shape: bf16[128,128], index: 4, kind: input, shape index: {}, may-alias: {3,4}]   ;;  %s1563_s5 = inlined_call_operand.hbm [shape: bf16[128,128], index: 5, kind: input, shape index: {}]   ;;  %s1564_s6 = inlined_call_operand.hbm [shape: bf16[128,128], index: 6, kind: input, shape index: {}]   ;;  %s1565_s7 = inlined_call_operand.vmem [shape: f32[1,128], index: 7, kind: input, shape index: {}]   ;;  %s1566_s8 = inlined_call_operand.vmem [shape: bf16[128,128], index: 8, kind: output, shape index: {}]  }
   0x1   :  { %16 = vsyncpa [#allocation9], 0 }
   0x2   :  { %17 = vsyncpa [#allocation12], 0  ;;  %s1021_s29 = sshll.u32 %s1559_s1, 10  ;;  %s1403_s11 = smov [#allocation8]  }
   0x3   :  { %s47_s10 = scalar_lea.hbm %s1561_s3, %s1021_s29  ;;  %s48_s12 = sshll.u32 %s1403_s11, 4  ;;  %s49_s12 = int_to_ptr.vmem [resolvable:$true] %s48_s12 }
   0x4   :  { %s1293_s13 = scalar_lea.hbm %s47_s10, 1024  ;;  %s1295_s16 = scalar_lea.hbm %s1561_s3, 1024 }
   0x5   :  { %p1294_p0 = scmp.ne.s32.totalorder %s47_s10, %s1293_s13  ;;  %p1296_p1 = scmp.lt.s32.totalorder %s47_s10, %s1561_s3 }
   0x6   :  { %p1297_p2 = scmp.lt.s32.totalorder %s1295_s16, %s1293_s13 }
   0x8   :  { %p1298_p3 = por %p1297_p2, %p1296_p1 }
   0xa   :  { %p1299_p4 = pnand %p1298_p3, %p1294_p0 }
   0xc   :  { %1302 = shalt.err (!%p1299_p4)
}
   0xd   :  { %s1303_s19 = scalar_lea.vmem %s49_s12, 1024  ;;  %p1308_p6 = scmp.lt.s32.totalorder %s49_s12, %s49_s12 }
   0xe   :  { %p1304_p5 = scmp.ne.s32.totalorder %s49_s12, %s1303_s19  ;;  %p1309_p7 = scmp.lt.s32.totalorder %s1303_s19, %s1303_s19 }
  0x10   :  { %p1310_p8 = por %p1309_p7, %p1308_p6 }
  0x12   :  { %p1311_p9 = pnand %p1310_p8, %p1304_p5 }
  0x14   :  { %1314 = shalt.err (!%p1311_p9)
}
  0x15   :  { %s1404_s20 = smov 64   ;;  %s1405_s21 = smov 4  }
  0x16   :  { %54 = dma.hbm_to_vmem [thread:$0]  %s47_s10, 1024, %s49_s12, [#allocation9], %s1404_s20, %s1404_s20, %s1405_s21  }
  0x17   :  { %s1406_s22 = smov [#allocation11]   ;;  %s959_s25 = sshll.u32 %s1559_s1, 6 }
  0x18   :  { %s72_s23 = sshll.u32 %s1406_s22, 4  ;;  %s1477_s28 = scalar_lea.hbm %s1560_s2, %s959_s25  ;;  %s73_s23 = int_to_ptr.vmem [resolvable:$true] %s72_s23 }
  0x19   :  { %s1323_s29 = scalar_lea.vmem %s73_s23, 1024  ;;  %p1328_p11 = scmp.lt.s32.totalorder %s73_s23, %s73_s23 }
  0x1a   :  { %p1324_p10 = scmp.ne.s32.totalorder %s73_s23, %s1323_s29  ;;  %p1329_p12 = scmp.lt.s32.totalorder %s1323_s29, %s1323_s29 }
  0x1c   :  { %p1330_p13 = por %p1329_p12, %p1328_p11 }
  0x1e   :  { %p1331_p0 = pnand %p1330_p13, %p1324_p10 }
  0x20   :  { %1334 = shalt.err (!%p1331_p0)
}
  0x21   :  { %78 = dma.hbm_to_vmem [thread:$0]  %s1563_s5, 1024, %s73_s23, [#allocation12], %s1404_s20, %s1404_s20, %s1405_s21  }
  0x22   :  { %s1407_s1 = smov [#allocation6]   ;;  %s1408_s11 = smov [#allocation10]  }
  0x23   :  { %s29_s10 = sshll.u32 %s1407_s1, 4  ;;  %s60_s12 = sshll.u32 %s1408_s11, 4  ;;  %s30_s10 = int_to_ptr.vmem [resolvable:$true] %s29_s10  ;;  %s61_s12 = int_to_ptr.vmem [resolvable:$true] %s60_s12 }
  0x24   :  { %s1335_s13 = scalar_lea.hbm %s1477_s28, 1024  ;;  %s1337_s16 = scalar_lea.hbm %s1560_s2, 1024 }
  0x25   :  { %p1336_p1 = scmp.ne.s32.totalorder %s1477_s28, %s1335_s13  ;;  %p1338_p2 = scmp.lt.s32.totalorder %s1477_s28, %s1560_s2 }
  0x26   :  { %p1339_p3 = scmp.lt.s32.totalorder %s1337_s16, %s1335_s13 }
  0x28   :  { %p1340_p4 = por %p1339_p3, %p1338_p2 }
  0x2a   :  { %p1341_p5 = pnand %p1340_p4, %p1336_p1 }
  0x2c   :  { %1344 = shalt.err (!%p1341_p5)
}
  0x2d   :  { %s1345_s5 = scalar_lea.vmem %s30_s10, 1024  ;;  %p1350_p7 = scmp.lt.s32.totalorder %s30_s10, %s30_s10 }
  0x2e   :  { %p1346_p6 = scmp.ne.s32.totalorder %s30_s10, %s1345_s5  ;;  %p1351_p8 = scmp.lt.s32.totalorder %s1345_s5, %s1345_s5 }
  0x30   :  { %p1352_p9 = por %p1351_p8, %p1350_p7 }
  0x32   :  { %p1353_p10 = pnand %p1352_p9, %p1346_p6 }
  0x34   :  { %1356 = shalt.err (!%p1353_p10)
}
  0x35   :  { %35 = dma.hbm_to_vmem [thread:$0]  %s1477_s28, 1024, %s30_s10, [#allocation7], %s1404_s20, %s1404_s20, %s1405_s21  }
  0x36   :  { %s1365_s19 = scalar_lea.vmem %s61_s12, 1024  ;;  %p1370_p12 = scmp.lt.s32.totalorder %s61_s12, %s61_s12 }
  0x37   :  { %p1366_p11 = scmp.ne.s32.totalorder %s61_s12, %s1365_s19  ;;  %p1371_p13 = scmp.lt.s32.totalorder %s1365_s19, %s1365_s19 }
  0x39   :  { %p1372_p0 = por %p1371_p13, %p1370_p12 }
  0x3b   :  { %p1373_p2 = pnand %p1372_p0, %p1366_p11 }
  0x3d   :  { %1376 = shalt.err (!%p1373_p2)
}
  0x3e   :  { %66 = dma.hbm_to_vmem [thread:$0]  %s1562_s4, 1024, %s61_s12, [#allocation9], %s1404_s20, %s1404_s20, %s1405_s21  }
  0x3f   :  { %s1409_s23 = smov [#allocation13]  }
  0x40   :  { %s84_s3 = sshll.u32 %s1409_s23, 4  ;;  %s85_s3 = int_to_ptr.vmem [resolvable:$true] %s84_s3 }
  0x41   :  { %s1385_s24 = scalar_lea.vmem %s85_s3, 1024  ;;  %p1390_p3 = scmp.lt.s32.totalorder %s85_s3, %s85_s3 }
  0x42   :  { %p1386_p1 = scmp.ne.s32.totalorder %s85_s3, %s1385_s24  ;;  %p1391_p4 = scmp.lt.s32.totalorder %s1385_s24, %s1385_s24 }
  0x44   :  { %p1392_p5 = por %p1391_p4, %p1390_p3 }
  0x46   :  { %p1393_p6 = pnand %p1392_p5, %p1386_p1 }
  0x48   :  { %1396 = shalt.err (!%p1393_p6)
}
  0x49   :  { %90 = dma.hbm_to_vmem [thread:$0]  %s1564_s6, 1024, %s85_s3, [#allocation12], %s1404_s20, %s1404_s20, %s1405_s21  }
  0x4a   :  { %1397 = dma.done.wait [#allocation7], 1024  }
  0x4b   :  { %1398 = vsyncadd [#allocation7], 4294966272 }
  0x4c   :  { %1399 = dma.done.wait [#allocation9], 2048  }
  0x4d   :  { %1400 = vsyncadd [#allocation9], 4294965248 }
  0x4e   :  { %1401 = dma.done.wait [#allocation12], 2048  }
  0x4f   :  { %1402 = vsyncadd [#allocation12], 4294965248  ;;  %v1410_v0 = vmov 0.0   ;;  %p963_p7 = scmp.le.s32.totalorder %s1558_s0, 0 }
  0x50   :  { %122 = vst [vmem:[#allocation2 + $0x30] sm:$0xff] %v1410_v0  ;;  %123 = vst [vmem:[#allocation2] sm:$0xff] %v1410_v0 }
  0x51   :  { %124 = vst [vmem:[#allocation2 + $0x58] sm:$0xff] %v1410_v0  ;;  %125 = vst [vmem:[#allocation2 + $0x18] sm:$0xff] %v1410_v0 }
  0x52   :  { %126 = vst [vmem:[#allocation2 + $0x50] sm:$0xff] %v1410_v0  ;;  %127 = vst [vmem:[#allocation2 + $0x68] sm:$0xff] %v1410_v0 }
  0x53   :  { %128 = vst [vmem:[#allocation2 + $0x8] sm:$0xff] %v1410_v0  ;;  %129 = vst [vmem:[#allocation2 + $0x48] sm:$0xff] %v1410_v0  ;;  %142 = sbr.rel (%p963_p7) target bundleno = 331 (0x14b), region = 53 }
  0x54   :  { %130 = vst [vmem:[#allocation2 + $0x40] sm:$0xff] %v1410_v0  ;;  %131 = vst [vmem:[#allocation2 + $0x20] sm:$0xff] %v1410_v0 }
  0x55   :  { %132 = vst [vmem:[#allocation2 + $0x10] sm:$0xff] %v1410_v0  ;;  %133 = vst [vmem:[#allocation2 + $0x38] sm:$0xff] %v1410_v0 }
  0x56   :  { %134 = vst [vmem:[#allocation2 + $0x60] sm:$0xff] %v1410_v0  ;;  %135 = vst [vmem:[#allocation2 + $0x70] sm:$0xff] %v1410_v0 }
  0x57   :  { %136 = vst [vmem:[#allocation2 + $0x78] sm:$0xff] %v1410_v0  ;;  %137 = vst [vmem:[#allocation2 + $0x28] sm:$0xff] %v1410_v0 }
  0x58   :  { %v1253_v1 = vld [vmem:[#allocation8 + $0x38] sm:$0xff]   ;;  %v1254_v2 = vld [vmem:[#allocation8 + $0x30] sm:$0xff]   ;;  %v1255_v3 = vld [vmem:[#allocation8 + $0x28] sm:$0xff]  }
  0x59   :  { %1133 = vmatprep.subr.bf16.mxu0 %v1253_v1  ;;  %1229 = vmatprep.subr.bf16.mxu1 %v1253_v1  ;;  %v1256_v4 = vld [vmem:[#allocation8 + $0x20] sm:$0xff]   ;;  %v1257_v7 = vld [vmem:[#allocation8 + $0x18] sm:$0xff]   ;;  %v1258_v8 = vld [vmem:[#allocation8 + $0x10] sm:$0xff]  }
  0x5a   :  { %1134 = vmatpush3.bf16.msra.mxu0 %v1253_v1  ;;  %1237 = vmatpush3.bf16.msra.mxu1 %v1253_v1  ;;  %v1261_v5 = vld [vmem:[#allocation6] sm:$0xff]   ;;  %v1259_v9 = vld [vmem:[#allocation8 + $0x8] sm:$0xff]   ;;  %v1265_v13 = vld [vmem:[#allocation6 + $0x10] sm:$0xff]  }
  0x5b   :  { %1135 = vmatprep.subr.bf16.mxu0 %v1254_v2  ;;  %1230 = vmatprep.subr.bf16.mxu1 %v1254_v2  ;;  %v1262_v6 = vld [vmem:[#allocation6 + $0x20] sm:$0xff]   ;;  %v1263_v11 = vld [vmem:[#allocation6 + $0x8] sm:$0xff]   ;;  %v1266_v14 = vld [vmem:[#allocation6 + $0x30] sm:$0xff]  }
  0x5c   :  { %1149 = vmatprep.mubr.bf16.mxu0 %v1261_v5  ;;  %1157 = vmatprep.mubr.bf16.mxu1 %v1262_v6  ;;  %v1260_v10 = vld [vmem:[#allocation8] sm:$0xff]   ;;  %v1264_v12 = vld [vmem:[#allocation6 + $0x28] sm:$0xff]   ;;  %v1267_v15 = vld [vmem:[#allocation6 + $0x18] sm:$0xff]  }
  0x5d   :  { %v1268_v16 = vld [vmem:[#allocation6 + $0x38] sm:$0xff]   ;;  %v153_v18 = vld [vmem:[#allocation2 + $0x10] sm:$0xff]  ;;  %v151_v22 = vld [vmem:[#allocation2 + $0x40] sm:$0xff] }
  0x5e   :  { %1136 = vmatpush3.bf16.msra.mxu0 %v1254_v2  ;;  %1238 = vmatpush3.bf16.msra.mxu1 %v1254_v2  ;;  %v145_v17 = vld [vmem:[#allocation2 + $0x58] sm:$0xff]  ;;  %v143_v21 = vld [vmem:[#allocation2 + $0x30] sm:$0xff]  ;;  %v144_v33 = vld [vmem:[#allocation2] sm:$0xff] }
  0x5f   :  { %1137 = vmatprep.subr.bf16.mxu0 %v1255_v3  ;;  %1231 = vmatprep.subr.bf16.mxu1 %v1255_v3  ;;  %v146_v27 = vld [vmem:[#allocation2 + $0x18] sm:$0xff]  ;;  %v152_v34 = vld [vmem:[#allocation2 + $0x20] sm:$0xff]  ;;  %v149_v39 = vld [vmem:[#allocation2 + $0x8] sm:$0xff] }
  0x60   :  { %v154_v28 = vld [vmem:[#allocation2 + $0x38] sm:$0xff]  ;;  %v147_v45 = vld [vmem:[#allocation2 + $0x50] sm:$0xff]  ;;  %v155_v46 = vld [vmem:[#allocation2 + $0x60] sm:$0xff] }
  0x61   :  { %v157_v40 = vld [vmem:[#allocation2 + $0x78] sm:$0xff]  ;;  %v150_v51 = vld [vmem:[#allocation2 + $0x48] sm:$0xff]  ;;  %v156_v58 = vld [vmem:[#allocation2 + $0x70] sm:$0xff] }
  0x62   :  { %1138 = vmatpush3.bf16.msra.mxu0 %v1255_v3  ;;  %1239 = vmatpush3.bf16.msra.mxu1 %v1255_v3  ;;  %v158_v52 = vld [vmem:[#allocation2 + $0x28] sm:$0xff] }
  0x63   :  { %1139 = vmatprep.subr.bf16.mxu0 %v1256_v4  ;;  %1232 = vmatprep.subr.bf16.mxu1 %v1256_v4  ;;  %v148_v57 = vld [vmem:[#allocation2 + $0x68] sm:$0xff] }
  0x66   :  { %1140 = vmatpush3.bf16.msra.mxu0 %v1256_v4  ;;  %1240 = vmatpush3.bf16.msra.mxu1 %v1256_v4 }
  0x67   :  { %1141 = vmatprep.subr.bf16.mxu0 %v1257_v7  ;;  %1233 = vmatprep.subr.bf16.mxu1 %v1257_v7 }
  0x6a   :  { %1142 = vmatpush3.bf16.msra.mxu0 %v1257_v7  ;;  %1241 = vmatpush3.bf16.msra.mxu1 %v1257_v7 }
  0x6b   :  { %1143 = vmatprep.subr.bf16.mxu0 %v1258_v8  ;;  %1234 = vmatprep.subr.bf16.mxu1 %v1258_v8 }
  0x6e   :  { %1144 = vmatpush3.bf16.msra.mxu0 %v1258_v8  ;;  %1242 = vmatpush3.bf16.msra.mxu1 %v1258_v8 }
  0x6f   :  { %1145 = vmatprep.subr.bf16.mxu0 %v1259_v9  ;;  %1235 = vmatprep.subr.bf16.mxu1 %v1259_v9 }
  0x72   :  { %1146 = vmatpush3.bf16.msra.mxu0 %v1259_v9  ;;  %1243 = vmatpush3.bf16.msra.mxu1 %v1259_v9 }
  0x73   :  { %1147 = vmatprep.subr.bf16.mxu0 %v1260_v10  ;;  %1236 = vmatprep.subr.bf16.mxu1 %v1260_v10 }
  0x76   :  { %1148 = vmatpush3.bf16.msra.mxu0 %v1260_v10  ;;  %1244 = vmatpush3.bf16.msra.mxu1 %v1260_v10 }
  0x79   :  { %1150 = vmatmul.mubr.bf16.vlgmr.msra.gmra.mxu0 %v1263_v11  ;;  %1158 = vmatmul.mubr.bf16.vlgmr.msra.gmra.mxu1 %v1264_v12 }
  0x7a   :  { %1153 = vmatprep.mubr.bf16.mxu0 %v1265_v13  ;;  %1161 = vmatprep.mubr.bf16.mxu1 %v1266_v14 }
  0x81   :  { %1154 = vmatmul.mubr.bf16.gmra.mxu0 %v1267_v15  ;;  %1162 = vmatmul.mubr.bf16.gmra.mxu1 %v1268_v16 }
 0x139   :  { %v1151_v19 = vpop.f32.mrf.mxu0  ;;  %v1159_v20 = vpop.f32.mrf.mxu1 }
 0x13a   :  { %v386_v23 = vadd.f32 %v1151_v19, %v145_v17  ;;  %v394_v24 = vadd.f32 %v1159_v20, %v153_v18 }
 0x13b   :  { %v321_v25 = vpop.f32.mrf.mxu0  ;;  %v353_v26 = vpop.f32.mrf.mxu1 }
 0x13c   :  { %402 = vst [vmem:[#allocation2 + $0x58] sm:$0xff] %v386_v23  ;;  %410 = vst [vmem:[#allocation2 + $0x10] sm:$0xff] %v394_v24  ;;  %v384_v29 = vadd.f32 %v321_v25, %v143_v21  ;;  %v392_v30 = vadd.f32 %v353_v26, %v151_v22 }
 0x13d   :  { %v1152_v31 = vpop.f32.mrf.mxu0  ;;  %v1160_v32 = vpop.f32.mrf.mxu1 }
 0x13e   :  { %400 = vst [vmem:[#allocation2 + $0x30] sm:$0xff] %v384_v29  ;;  %408 = vst [vmem:[#allocation2 + $0x40] sm:$0xff] %v392_v30  ;;  %v387_v35 = vadd.f32 %v1152_v31, %v146_v27  ;;  %v395_v36 = vadd.f32 %v1160_v32, %v154_v28 }
 0x13f   :  { %v324_v37 = vpop.f32.mrf.mxu0  ;;  %v356_v38 = vpop.f32.mrf.mxu1 }
 0x140   :  { %403 = vst [vmem:[#allocation2 + $0x18] sm:$0xff] %v387_v35  ;;  %411 = vst [vmem:[#allocation2 + $0x38] sm:$0xff] %v395_v36  ;;  %v385_v41 = vadd.f32 %v324_v37, %v144_v33  ;;  %v393_v42 = vadd.f32 %v356_v38, %v152_v34 }
 0x141   :  { %v1155_v43 = vpop.f32.mrf.mxu0  ;;  %v1163_v44 = vpop.f32.mrf.mxu1 }
 0x142   :  { %401 = vst [vmem:[#allocation2] sm:$0xff] %v385_v41  ;;  %409 = vst [vmem:[#allocation2 + $0x20] sm:$0xff] %v393_v42  ;;  %v390_v47 = vadd.f32 %v1155_v43, %v149_v39  ;;  %v398_v48 = vadd.f32 %v1163_v44, %v157_v40 }
 0x143   :  { %v337_v49 = vpop.f32.mrf.mxu0  ;;  %v369_v50 = vpop.f32.mrf.mxu1 }
 0x144   :  { %406 = vst [vmem:[#allocation2 + $0x8] sm:$0xff] %v390_v47  ;;  %414 = vst [vmem:[#allocation2 + $0x78] sm:$0xff] %v398_v48  ;;  %v388_v53 = vadd.f32 %v337_v49, %v147_v45  ;;  %v396_v54 = vadd.f32 %v369_v50, %v155_v46 }
 0x145   :  { %v1156_v55 = vpop.f32.mrf.mxu0  ;;  %v1164_v56 = vpop.f32.mrf.mxu1 }
 0x146   :  { %404 = vst [vmem:[#allocation2 + $0x50] sm:$0xff] %v388_v53  ;;  %412 = vst [vmem:[#allocation2 + $0x60] sm:$0xff] %v396_v54  ;;  %v391_v59 = vadd.f32 %v1156_v55, %v150_v51  ;;  %v399_v60 = vadd.f32 %v1164_v56, %v158_v52 }
 0x147   :  { %v340_v61 = vpop.f32.mrf.mxu0  ;;  %v372_v62 = vpop.f32.mrf.mxu1 }
 0x148   :  { %407 = vst [vmem:[#allocation2 + $0x48] sm:$0xff] %v391_v59  ;;  %415 = vst [vmem:[#allocation2 + $0x28] sm:$0xff] %v399_v60  ;;  %v389_v63 = vadd.f32 %v340_v61, %v148_v57  ;;  %v397_v0 = vadd.f32 %v372_v62, %v156_v58 }
 0x14a   :  { %405 = vst [vmem:[#allocation2 + $0x68] sm:$0xff] %v389_v63  ;;  %413 = vst [vmem:[#allocation2 + $0x70] sm:$0xff] %v397_v0 }
 0x14b PF:  { %v1269_v1 = vld [vmem:[#allocation13 + $0x38] sm:$0xff]   ;;  %v1271_v3 = vld [vmem:[#allocation13 + $0x30] sm:$0xff]   ;;  %v1273_v5 = vld [vmem:[#allocation13 + $0x28] sm:$0xff]  }
 0x14c   :  { %v1270_v2 = vld [vmem:[#allocation11 + $0x38] sm:$0xff]   ;;  %1165 = vmatprep.subr.bf16.mxu0 %v1269_v1  ;;  %v1272_v4 = vld [vmem:[#allocation11 + $0x30] sm:$0xff]   ;;  %v1274_v6 = vld [vmem:[#allocation11 + $0x28] sm:$0xff]  }
 0x14d   :  { %1197 = vmatprep.subr.bf16.mxu1 %v1270_v2  ;;  %1166 = vmatpush3.bf16.msra.mxu0 %v1269_v1  ;;  %v1275_v7 = vld [vmem:[#allocation13 + $0x20] sm:$0xff]   ;;  %v1277_v9 = vld [vmem:[#allocation13 + $0x18] sm:$0xff]   ;;  %v1279_v11 = vld [vmem:[#allocation13 + $0x10] sm:$0xff]  }
 0x14e   :  { %1198 = vmatpush3.bf16.msra.mxu1 %v1270_v2  ;;  %1167 = vmatprep.subr.bf16.mxu0 %v1271_v3  ;;  %v1276_v8 = vld [vmem:[#allocation11 + $0x20] sm:$0xff]   ;;  %v1278_v10 = vld [vmem:[#allocation11 + $0x18] sm:$0xff]   ;;  %v451_v12 = vld [vmem:[#allocation2 + $0x30] sm:$0xff] }
 0x14f   :  { %1199 = vmatprep.subr.bf16.mxu1 %v1272_v4  ;;  %v452_v13 = vld [vmem:[#allocation2] sm:$0xff]  ;;  %v1280_v14 = vld [vmem:[#allocation11 + $0x10] sm:$0xff]   ;;  %v1281_v17 = vld [vmem:[#allocation13 + $0x8] sm:$0xff]  }
 0x150   :  { %v467_v15 = vpack.c.bf16 %v452_v13, %v451_v12  ;;  %v1285_v16 = vld [vmem:[#allocation10] sm:$0xff]   ;;  %v1282_v18 = vld [vmem:[#allocation11 + $0x8] sm:$0xff]   ;;  %v453_v21 = vld [vmem:[#allocation2 + $0x58] sm:$0xff] }
 0x151   :  { %1168 = vmatpush3.bf16.msra.mxu0 %v1271_v3  ;;  %1213 = vmatprep.mubr.bf16.mxu1 %v1285_v16  ;;  %v1283_v19 = vld [vmem:[#allocation13] sm:$0xff]   ;;  %v454_v22 = vld [vmem:[#allocation2 + $0x18] sm:$0xff]  ;;  %v455_v23 = vld [vmem:[#allocation2 + $0x50] sm:$0xff] }
 0x152   :  { %1200 = vmatpush3.bf16.msra.mxu1 %v1272_v4  ;;  %1169 = vmatprep.subr.bf16.mxu0 %v1273_v5  ;;  %v1284_v20 = vld [vmem:[#allocation11] sm:$0xff]   ;;  %v456_v24 = vld [vmem:[#allocation2 + $0x68] sm:$0xff]  ;;  %v468_v25 = vpack.c.bf16 %v454_v22, %v453_v21  ;;  %v1287_v28 = vld [vmem:[#allocation10 + $0x10] sm:$0xff]  }
 0x153   :  { %1201 = vmatprep.subr.bf16.mxu1 %v1274_v6  ;;  %1181 = vmatprep.mubr.bf16.mxu0 %v467_v15  ;;  %v1286_v26 = vld [vmem:[#allocation10 + $0x8] sm:$0xff]   ;;  %v469_v27 = vpack.c.bf16 %v456_v24, %v455_v23  ;;  %v459_v31 = vld [vmem:[#allocation2 + $0x40] sm:$0xff]  ;;  %v1288_v34 = vld [vmem:[#allocation10 + $0x18] sm:$0xff]  }
 0x154   :  { %v457_v29 = vld [vmem:[#allocation2 + $0x8] sm:$0xff]  ;;  %v460_v32 = vld [vmem:[#allocation2 + $0x20] sm:$0xff]  ;;  %v461_v37 = vld [vmem:[#allocation2 + $0x10] sm:$0xff] }
 0x155   :  { %1170 = vmatpush3.bf16.msra.mxu0 %v1273_v5  ;;  %v458_v30 = vld [vmem:[#allocation2 + $0x48] sm:$0xff]  ;;  %v471_v35 = vpack.c.bf16 %v460_v32, %v459_v31  ;;  %v1289_v36 = vld [vmem:[#allocation10 + $0x20] sm:$0xff]   ;;  %v462_v38 = vld [vmem:[#allocation2 + $0x38] sm:$0xff] }
 0x156   :  { %1202 = vmatpush3.bf16.msra.mxu1 %v1274_v6  ;;  %1171 = vmatprep.subr.bf16.mxu0 %v1275_v7  ;;  %v470_v33 = vpack.c.bf16 %v458_v30, %v457_v29  ;;  %v463_v39 = vld [vmem:[#allocation2 + $0x60] sm:$0xff]  ;;  %v464_v40 = vld [vmem:[#allocation2 + $0x70] sm:$0xff]  ;;  %v472_v41 = vpack.c.bf16 %v462_v38, %v461_v37  ;;  %v1290_v42 = vld [vmem:[#allocation10 + $0x28] sm:$0xff]  }
 0x157   :  { %1203 = vmatprep.subr.bf16.mxu1 %v1276_v8  ;;  %v473_v43 = vpack.c.bf16 %v464_v40, %v463_v39  ;;  %v1291_v44 = vld [vmem:[#allocation10 + $0x30] sm:$0xff]   ;;  %v465_v45 = vld [vmem:[#allocation2 + $0x78] sm:$0xff]  ;;  %v466_v46 = vld [vmem:[#allocation2 + $0x28] sm:$0xff] }
 0x158   :  { %v474_v47 = vpack.c.bf16 %v466_v46, %v465_v45  ;;  %v1292_v48 = vld [vmem:[#allocation10 + $0x38] sm:$0xff]   ;;  %v1516_v53 = vld [vmem:[%s1565_s7] ss:$0 sm:$0xff] }
 0x159   :  { %1172 = vmatpush3.bf16.msra.mxu0 %v1275_v7 }
 0x15a   :  { %1204 = vmatpush3.bf16.msra.mxu1 %v1276_v8  ;;  %1173 = vmatprep.subr.bf16.mxu0 %v1277_v9 }
 0x15b   :  { %1205 = vmatprep.subr.bf16.mxu1 %v1278_v10 }
 0x15d   :  { %1174 = vmatpush3.bf16.msra.mxu0 %v1277_v9 }
 0x15e   :  { %1206 = vmatpush3.bf16.msra.mxu1 %v1278_v10  ;;  %1175 = vmatprep.subr.bf16.mxu0 %v1279_v11 }
 0x15f   :  { %1207 = vmatprep.subr.bf16.mxu1 %v1280_v14 }
 0x161   :  { %1176 = vmatpush3.bf16.msra.mxu0 %v1279_v11 }
 0x162   :  { %1208 = vmatpush3.bf16.msra.mxu1 %v1280_v14  ;;  %1177 = vmatprep.subr.bf16.mxu0 %v1281_v17 }
 0x163   :  { %1209 = vmatprep.subr.bf16.mxu1 %v1282_v18 }
 0x165   :  { %1178 = vmatpush3.bf16.msra.mxu0 %v1281_v17 }
 0x166   :  { %1210 = vmatpush3.bf16.msra.mxu1 %v1282_v18  ;;  %1179 = vmatprep.subr.bf16.mxu0 %v1283_v19 }
 0x167   :  { %1211 = vmatprep.subr.bf16.mxu1 %v1284_v20 }
 0x169   :  { %1180 = vmatpush3.bf16.msra.mxu0 %v1283_v19 }
 0x16a   :  { %1212 = vmatpush3.bf16.msra.mxu1 %v1284_v20 }
 0x16c   :  { %1182 = vmatmul.mubr.bf16.vlgmr.msra.gmra.mxu0 %v468_v25 }
 0x16d   :  { %1214 = vmatmul.mubr.bf16.vlgmr.msra.gmra.mxu1 %v1286_v26  ;;  %1185 = vmatprep.mubr.bf16.mxu0 %v469_v27 }
 0x16e   :  { %1217 = vmatprep.mubr.bf16.mxu1 %v1287_v28 }
 0x174   :  { %1186 = vmatmul.mubr.bf16.gmra.mxu0 %v470_v33 }
 0x175   :  { %1218 = vmatmul.mubr.bf16.gmra.mxu1 %v1288_v34  ;;  %1189 = vmatprep.mubr.bf16.mxu0 %v471_v35 }
 0x176   :  { %1221 = vmatprep.mubr.bf16.mxu1 %v1289_v36 }
 0x17c   :  { %1190 = vmatmul.mubr.bf16.gmra.mxu0 %v472_v41 }
 0x17d   :  { %1222 = vmatmul.mubr.bf16.gmra.mxu1 %v1290_v42  ;;  %1193 = vmatprep.mubr.bf16.mxu0 %v473_v43 }
 0x17e   :  { %1225 = vmatprep.mubr.bf16.mxu1 %v1291_v44 }
 0x184   :  { %1194 = vmatmul.mubr.bf16.gmra.mxu0 %v474_v47 }
 0x185   :  { %1226 = vmatmul.mubr.bf16.gmra.mxu1 %v1292_v48 }
 0x22c   :  { %v1183_v49 = vpop.f32.mrf.mxu0 }
 0x22d   :  { %v1215_v50 = vpop.f32.mrf.mxu1 }
 0x22e   :  { %v775_v51 = vadd.f32 %v1215_v50, %v1183_v49  ;;  %v573_v52 = vpop.f32.mrf.mxu0 }
 0x22f   :  { %v766_v54 = vpop.f32.mrf.mxu1 }
 0x230   :  { %v767_v55 = vadd.f32 %v766_v54, %v573_v52  ;;  %v1184_v56 = vpop.f32.mrf.mxu0  ;;  %v838_v58 = vadd.f32 %v1516_v53, %v775_v51 }
 0x231   :  { %v1216_v57 = vpop.f32.mrf.mxu1 }
 0x232   :  { %v778_v59 = vadd.f32 %v1216_v57, %v1184_v56  ;;  %v576_v60 = vpop.f32.mrf.mxu0  ;;  %v836_v62 = vadd.f32 %v1516_v53, %v767_v55  ;;  %v854_v3 = vmax.f32 %v838_v58, 0.0 }
 0x233   :  { %v769_v61 = vpop.f32.mrf.mxu1 }
 0x234   :  { %v839_v63 = vadd.f32 %v1516_v53, %v778_v59  ;;  %v770_v0 = vadd.f32 %v769_v61, %v576_v60  ;;  %v1187_v1 = vpop.f32.mrf.mxu0  ;;  %v852_v9 = vmax.f32 %v836_v62, 0.0 }
 0x235   :  { %v1219_v2 = vpop.f32.mrf.mxu1 }
 0x236   :  { %v855_v4 = vmax.f32 %v839_v63, 0.0  ;;  %v837_v5 = vadd.f32 %v1516_v53, %v770_v0  ;;  %v791_v6 = vadd.f32 %v1219_v2, %v1187_v1  ;;  %v589_v7 = vpop.f32.mrf.mxu0 }
 0x237   :  { %v782_v8 = vpop.f32.mrf.mxu1 }
 0x238   :  { %v1046_v10 = vpack.c.bf16 %v855_v4, %v854_v3  ;;  %v853_v11 = vmax.f32 %v837_v5, 0.0  ;;  %v783_v12 = vadd.f32 %v782_v8, %v589_v7  ;;  %v1188_v13 = vpop.f32.mrf.mxu0  ;;  %v842_v16 = vadd.f32 %v1516_v53, %v791_v6 }
 0x239   :  { %v1220_v14 = vpop.f32.mrf.mxu1 }
 0x23a   :  { %1078 = vst [vmem:[%s1566_s8 + $0x8] sm:$0xff] %v1046_v10   ;;  %v1041_v15 = vpack.c.bf16 %v853_v11, %v852_v9  ;;  %v794_v17 = vadd.f32 %v1220_v14, %v1188_v13  ;;  %v592_v18 = vpop.f32.mrf.mxu0  ;;  %v840_v20 = vadd.f32 %v1516_v53, %v783_v12  ;;  %v858_v25 = vmax.f32 %v842_v16, 0.0 }
 0x23b   :  { %v785_v19 = vpop.f32.mrf.mxu1 }
 0x23c   :  { %1042 = vst [vmem:[%s1566_s8] sm:$0xff] %v1041_v15   ;;  %v843_v21 = vadd.f32 %v1516_v53, %v794_v17  ;;  %v786_v22 = vadd.f32 %v785_v19, %v592_v18  ;;  %v1191_v23 = vpop.f32.mrf.mxu0  ;;  %v856_v31 = vmax.f32 %v840_v20, 0.0 }
 0x23d   :  { %v1223_v24 = vpop.f32.mrf.mxu1 }
 0x23e   :  { %v859_v26 = vmax.f32 %v843_v21, 0.0  ;;  %v841_v27 = vadd.f32 %v1516_v53, %v786_v22  ;;  %v807_v28 = vadd.f32 %v1223_v24, %v1191_v23  ;;  %v605_v29 = vpop.f32.mrf.mxu0 }
 0x23f   :  { %v798_v30 = vpop.f32.mrf.mxu1 }
 0x240   :  { %v1056_v32 = vpack.c.bf16 %v859_v26, %v858_v25  ;;  %v857_v33 = vmax.f32 %v841_v27, 0.0  ;;  %v799_v34 = vadd.f32 %v798_v30, %v605_v29  ;;  %v1192_v35 = vpop.f32.mrf.mxu0  ;;  %v846_v38 = vadd.f32 %v1516_v53, %v807_v28 }
 0x241   :  { %v1224_v36 = vpop.f32.mrf.mxu1 }
 0x242   :  { %1080 = vst [vmem:[%s1566_s8 + $0x18] sm:$0xff] %v1056_v32   ;;  %v1051_v37 = vpack.c.bf16 %v857_v33, %v856_v31  ;;  %v810_v39 = vadd.f32 %v1224_v36, %v1192_v35  ;;  %v608_v40 = vpop.f32.mrf.mxu0  ;;  %v844_v42 = vadd.f32 %v1516_v53, %v799_v34  ;;  %v862_v47 = vmax.f32 %v846_v38, 0.0 }
 0x243   :  { %v801_v41 = vpop.f32.mrf.mxu1 }
 0x244   :  { %1079 = vst [vmem:[%s1566_s8 + $0x10] sm:$0xff] %v1051_v37   ;;  %v847_v43 = vadd.f32 %v1516_v53, %v810_v39  ;;  %v802_v44 = vadd.f32 %v801_v41, %v608_v40  ;;  %v1195_v45 = vpop.f32.mrf.mxu0  ;;  %v860_v54 = vmax.f32 %v844_v42, 0.0 }
 0x245   :  { %v1227_v46 = vpop.f32.mrf.mxu1 }
 0x246   :  { %v863_v48 = vmax.f32 %v847_v43, 0.0  ;;  %v845_v49 = vadd.f32 %v1516_v53, %v802_v44  ;;  %v823_v50 = vadd.f32 %v1227_v46, %v1195_v45  ;;  %v621_v51 = vpop.f32.mrf.mxu0 }
 0x247   :  { %v814_v52 = vpop.f32.mrf.mxu1 }
 0x248   :  { %v1066_v55 = vpack.c.bf16 %v863_v48, %v862_v47  ;;  %v861_v56 = vmax.f32 %v845_v49, 0.0  ;;  %v815_v57 = vadd.f32 %v814_v52, %v621_v51  ;;  %v1196_v58 = vpop.f32.mrf.mxu0  ;;  %v850_v61 = vadd.f32 %v1516_v53, %v823_v50 }
 0x249   :  { %v1228_v59 = vpop.f32.mrf.mxu1 }
 0x24a   :  { %1082 = vst [vmem:[%s1566_s8 + $0x28] sm:$0xff] %v1066_v55   ;;  %v1061_v60 = vpack.c.bf16 %v861_v56, %v860_v54  ;;  %v826_v62 = vadd.f32 %v1228_v59, %v1196_v58  ;;  %v624_v63 = vpop.f32.mrf.mxu0  ;;  %v848_v1 = vadd.f32 %v1516_v53, %v815_v57  ;;  %v866_v4 = vmax.f32 %v850_v61, 0.0 }
 0x24b   :  { %v817_v0 = vpop.f32.mrf.mxu1 }
 0x24c   :  { %1081 = vst [vmem:[%s1566_s8 + $0x20] sm:$0xff] %v1061_v60   ;;  %v851_v2 = vadd.f32 %v1516_v53, %v826_v62  ;;  %v818_v3 = vadd.f32 %v817_v0, %v624_v63  ;;  %v864_v7 = vmax.f32 %v848_v1, 0.0 }
 0x24e   :  { %v867_v5 = vmax.f32 %v851_v2, 0.0  ;;  %v849_v6 = vadd.f32 %v1516_v53, %v818_v3 }
 0x250   :  { %v1076_v8 = vpack.c.bf16 %v867_v5, %v866_v4  ;;  %v865_v9 = vmax.f32 %v849_v6, 0.0 }
 0x252   :  { %1084 = vst [vmem:[%s1566_s8 + $0x38] sm:$0xff] %v1076_v8   ;;  %v1071_v10 = vpack.c.bf16 %v865_v9, %v864_v7 }
 0x254   :  { %1083 = vst [vmem:[%s1566_s8 + $0x30] sm:$0xff] %v1071_v10  }
 0x255   :  { %952 = vsyncpa [#allocation7], 1 }
 0x256   :  { %953 = vsyncpa [#allocation9], 1 }
 0x257   :  { %954 = vsyncpa [#allocation12], 1 }

// kernel: sage_model_forward.5
= control target key start
LH: loop header
LB: loop body
LE: loop exit
PB: predicated region body
PF: predicated region fallthrough
CT: control target
= control target key end

     0   :  { %v1269_v0 = vmov 0.0   ;;  %s1474_s0 = inlined_call_operand.<no memory space> [shape: s32[1], index: 0, kind: input, shape index: {}]   ;;  %s1475_s1 = inlined_call_operand.<no memory space> [shape: s32[1,1], index: 1, kind: input, shape index: {}]   ;;  %s1476_s4 = inlined_call_operand.vmem [shape: bf16[128,128], index: 4, kind: input, shape index: {}, may-alias: {3,4}]   ;;  %s1477_s5 = inlined_call_operand.vmem [shape: bf16[128,128], index: 5, kind: input, shape index: {}]   ;;  %s1478_s6 = inlined_call_operand.vmem [shape: bf16[128,128], index: 6, kind: input, shape index: {}]   ;;  %s1479_s7 = inlined_call_operand.vmem [shape: f32[1,128], index: 7, kind: input, shape index: {}]   ;;  %s1480_s8 = inlined_call_operand.vmem [shape: bf16[128,128], index: 8, kind: output, shape index: {}]   ;;  %s1481_s2 = inlined_call_operand.vmem [shape: bf16[128,128], index: 2, kind: input, shape index: {}]   ;;  %s1482_s3 = inlined_call_operand.vmem [shape: bf16[128,128], index: 3, kind: input, shape index: {}, may-alias: {3,4}]  }
   0x1   :  { %p74_p0 = scmp.lt.s32.totalorder %s1475_s1, 0  ;;  %s944_s9 = sshll.u32 %s1475_s1, 4  ;;  %101 = vst [vmem:[#allocation2 + $0x30] sm:$0xff] %v1269_v0  ;;  %102 = vst [vmem:[#allocation2] sm:$0xff] %v1269_v0 }
   0x2   :  { %103 = vst [vmem:[#allocation2 + $0x58] sm:$0xff] %v1269_v0  ;;  %104 = vst [vmem:[#allocation2 + $0x18] sm:$0xff] %v1269_v0  ;;  %p87_p1 = scmp.lt.s32.totalorder %s944_s9, 15  ;;  %p947_p2 = scmp.le.s32.totalorder %s1474_s0, 0 }
   0x3   :  { %105 = vst [vmem:[#allocation2 + $0x50] sm:$0xff] %v1269_v0  ;;  %106 = vst [vmem:[#allocation2 + $0x68] sm:$0xff] %v1269_v0  ;;  %s1484_s1 = smov (!%p74_p0, %s1475_s1), 0 }
   0x4   :  { %107 = vst [vmem:[#allocation2 + $0x8] sm:$0xff] %v1269_v0  ;;  %108 = vst [vmem:[#allocation2 + $0x48] sm:$0xff] %v1269_v0  ;;  %s1486_s9 = smov (!%p87_p1, %s944_s9), 15  ;;  %s943_s14 = sshll.u32 %s1484_s1, 2 }
   0x5   :  { %109 = vst [vmem:[#allocation2 + $0x40] sm:$0xff] %v1269_v0  ;;  %110 = vst [vmem:[#allocation2 + $0x20] sm:$0xff] %v1269_v0  ;;  %s1331_s17 = scalar_lea.vmem %s1481_s2, %s943_s14  ;;  %s945_s18 = sshll.u32 %s1486_s9, 2 }
   0x6   :  { %111 = vst [vmem:[#allocation2 + $0x10] sm:$0xff] %v1269_v0  ;;  %112 = vst [vmem:[#allocation2 + $0x38] sm:$0xff] %v1269_v0  ;;  %s1336_s21 = scalar_lea.vmem %s1482_s3, %s945_s18  ;;  %121 = sbr.rel (%p947_p2) target bundleno = 254 (0xfe), region = 33 }
   0x7   :  { %113 = vst [vmem:[#allocation2 + $0x60] sm:$0xff] %v1269_v0  ;;  %114 = vst [vmem:[#allocation2 + $0x70] sm:$0xff] %v1269_v0 }
   0x8   :  { %115 = vst [vmem:[#allocation2 + $0x78] sm:$0xff] %v1269_v0  ;;  %116 = vst [vmem:[#allocation2 + $0x28] sm:$0xff] %v1269_v0 }
   0xb   :  { %v1229_v1 = vld [vmem:[%s1336_s21 + $0x38] sm:$0xff]   ;;  %v1230_v2 = vld [vmem:[%s1336_s21 + $0x30] sm:$0xff]   ;;  %v1231_v3 = vld [vmem:[%s1336_s21 + $0x28] sm:$0xff]  }
   0xc   :  { %1116 = vmatprep.subr.bf16.mxu0 %v1229_v1  ;;  %1212 = vmatprep.subr.bf16.mxu1 %v1229_v1  ;;  %v1232_v4 = vld [vmem:[%s1336_s21 + $0x20] sm:$0xff]   ;;  %v1233_v7 = vld [vmem:[%s1336_s21 + $0x18] sm:$0xff]   ;;  %v1234_v8 = vld [vmem:[%s1336_s21 + $0x10] sm:$0xff]  }
   0xd   :  { %1117 = vmatpush3.bf16.msra.mxu0 %v1229_v1  ;;  %1220 = vmatpush3.bf16.msra.mxu1 %v1229_v1  ;;  %v1237_v5 = vld [vmem:[%s1331_s17] sm:$0xff]   ;;  %v1235_v9 = vld [vmem:[%s1336_s21 + $0x8] sm:$0xff]   ;;  %v1241_v13 = vld [vmem:[%s1331_s17 + $0x10] sm:$0xff]  }
   0xe   :  { %1118 = vmatprep.subr.bf16.mxu0 %v1230_v2  ;;  %1213 = vmatprep.subr.bf16.mxu1 %v1230_v2  ;;  %v1238_v6 = vld [vmem:[%s1331_s17 + $0x20] sm:$0xff]   ;;  %v1239_v11 = vld [vmem:[%s1331_s17 + $0x8] sm:$0xff]   ;;  %v1242_v14 = vld [vmem:[%s1331_s17 + $0x30] sm:$0xff]  }
   0xf   :  { %1132 = vmatprep.mubr.bf16.mxu0 %v1237_v5  ;;  %1140 = vmatprep.mubr.bf16.mxu1 %v1238_v6  ;;  %v1236_v10 = vld [vmem:[%s1336_s21] sm:$0xff]   ;;  %v1240_v12 = vld [vmem:[%s1331_s17 + $0x28] sm:$0xff]   ;;  %v1243_v15 = vld [vmem:[%s1331_s17 + $0x18] sm:$0xff]  }
  0x10   :  { %v1244_v16 = vld [vmem:[%s1331_s17 + $0x38] sm:$0xff]   ;;  %v132_v18 = vld [vmem:[#allocation2 + $0x10] sm:$0xff]  ;;  %v130_v22 = vld [vmem:[#allocation2 + $0x40] sm:$0xff] }
  0x11   :  { %1119 = vmatpush3.bf16.msra.mxu0 %v1230_v2  ;;  %1221 = vmatpush3.bf16.msra.mxu1 %v1230_v2  ;;  %v124_v17 = vld [vmem:[#allocation2 + $0x58] sm:$0xff]  ;;  %v122_v21 = vld [vmem:[#allocation2 + $0x30] sm:$0xff]  ;;  %v123_v33 = vld [vmem:[#allocation2] sm:$0xff] }
  0x12   :  { %1120 = vmatprep.subr.bf16.mxu0 %v1231_v3  ;;  %1214 = vmatprep.subr.bf16.mxu1 %v1231_v3  ;;  %v125_v27 = vld [vmem:[#allocation2 + $0x18] sm:$0xff]  ;;  %v131_v34 = vld [vmem:[#allocation2 + $0x20] sm:$0xff]  ;;  %v128_v39 = vld [vmem:[#allocation2 + $0x8] sm:$0xff] }
  0x13   :  { %v133_v28 = vld [vmem:[#allocation2 + $0x38] sm:$0xff]  ;;  %v126_v45 = vld [vmem:[#allocation2 + $0x50] sm:$0xff]  ;;  %v134_v46 = vld [vmem:[#allocation2 + $0x60] sm:$0xff] }
  0x14   :  { %v136_v40 = vld [vmem:[#allocation2 + $0x78] sm:$0xff]  ;;  %v129_v51 = vld [vmem:[#allocation2 + $0x48] sm:$0xff]  ;;  %v135_v58 = vld [vmem:[#allocation2 + $0x70] sm:$0xff] }
  0x15   :  { %1121 = vmatpush3.bf16.msra.mxu0 %v1231_v3  ;;  %1222 = vmatpush3.bf16.msra.mxu1 %v1231_v3  ;;  %v137_v52 = vld [vmem:[#allocation2 + $0x28] sm:$0xff] }
  0x16   :  { %1122 = vmatprep.subr.bf16.mxu0 %v1232_v4  ;;  %1215 = vmatprep.subr.bf16.mxu1 %v1232_v4  ;;  %v127_v57 = vld [vmem:[#allocation2 + $0x68] sm:$0xff] }
  0x19   :  { %1123 = vmatpush3.bf16.msra.mxu0 %v1232_v4  ;;  %1223 = vmatpush3.bf16.msra.mxu1 %v1232_v4 }
  0x1a   :  { %1124 = vmatprep.subr.bf16.mxu0 %v1233_v7  ;;  %1216 = vmatprep.subr.bf16.mxu1 %v1233_v7 }
  0x1d   :  { %1125 = vmatpush3.bf16.msra.mxu0 %v1233_v7  ;;  %1224 = vmatpush3.bf16.msra.mxu1 %v1233_v7 }
  0x1e   :  { %1126 = vmatprep.subr.bf16.mxu0 %v1234_v8  ;;  %1217 = vmatprep.subr.bf16.mxu1 %v1234_v8 }
  0x21   :  { %1127 = vmatpush3.bf16.msra.mxu0 %v1234_v8  ;;  %1225 = vmatpush3.bf16.msra.mxu1 %v1234_v8 }
  0x22   :  { %1128 = vmatprep.subr.bf16.mxu0 %v1235_v9  ;;  %1218 = vmatprep.subr.bf16.mxu1 %v1235_v9 }
  0x25   :  { %1129 = vmatpush3.bf16.msra.mxu0 %v1235_v9  ;;  %1226 = vmatpush3.bf16.msra.mxu1 %v1235_v9 }
  0x26   :  { %1130 = vmatprep.subr.bf16.mxu0 %v1236_v10  ;;  %1219 = vmatprep.subr.bf16.mxu1 %v1236_v10 }
  0x29   :  { %1131 = vmatpush3.bf16.msra.mxu0 %v1236_v10  ;;  %1227 = vmatpush3.bf16.msra.mxu1 %v1236_v10 }
  0x2c   :  { %1133 = vmatmul.mubr.bf16.vlgmr.msra.gmra.mxu0 %v1239_v11  ;;  %1141 = vmatmul.mubr.bf16.vlgmr.msra.gmra.mxu1 %v1240_v12 }
  0x2d   :  { %1136 = vmatprep.mubr.bf16.mxu0 %v1241_v13  ;;  %1144 = vmatprep.mubr.bf16.mxu1 %v1242_v14 }
  0x34   :  { %1137 = vmatmul.mubr.bf16.gmra.mxu0 %v1243_v15  ;;  %1145 = vmatmul.mubr.bf16.gmra.mxu1 %v1244_v16 }
  0xec   :  { %v1134_v19 = vpop.f32.mrf.mxu0  ;;  %v1142_v20 = vpop.f32.mrf.mxu1 }
  0xed   :  { %v365_v23 = vadd.f32 %v1134_v19, %v124_v17  ;;  %v373_v24 = vadd.f32 %v1142_v20, %v132_v18 }
  0xee   :  { %v300_v25 = vpop.f32.mrf.mxu0  ;;  %v332_v26 = vpop.f32.mrf.mxu1 }
  0xef   :  { %381 = vst [vmem:[#allocation2 + $0x58] sm:$0xff] %v365_v23  ;;  %389 = vst [vmem:[#allocation2 + $0x10] sm:$0xff] %v373_v24  ;;  %v363_v29 = vadd.f32 %v300_v25, %v122_v21  ;;  %v371_v30 = vadd.f32 %v332_v26, %v130_v22 }
  0xf0   :  { %v1135_v31 = vpop.f32.mrf.mxu0  ;;  %v1143_v32 = vpop.f32.mrf.mxu1 }
  0xf1   :  { %379 = vst [vmem:[#allocation2 + $0x30] sm:$0xff] %v363_v29  ;;  %387 = vst [vmem:[#allocation2 + $0x40] sm:$0xff] %v371_v30  ;;  %v366_v35 = vadd.f32 %v1135_v31, %v125_v27  ;;  %v374_v36 = vadd.f32 %v1143_v32, %v133_v28 }
  0xf2   :  { %v303_v37 = vpop.f32.mrf.mxu0  ;;  %v335_v38 = vpop.f32.mrf.mxu1 }
  0xf3   :  { %382 = vst [vmem:[#allocation2 + $0x18] sm:$0xff] %v366_v35  ;;  %390 = vst [vmem:[#allocation2 + $0x38] sm:$0xff] %v374_v36  ;;  %v364_v41 = vadd.f32 %v303_v37, %v123_v33  ;;  %v372_v42 = vadd.f32 %v335_v38, %v131_v34 }
  0xf4   :  { %v1138_v43 = vpop.f32.mrf.mxu0  ;;  %v1146_v44 = vpop.f32.mrf.mxu1 }
  0xf5   :  { %380 = vst [vmem:[#allocation2] sm:$0xff] %v364_v41  ;;  %388 = vst [vmem:[#allocation2 + $0x20] sm:$0xff] %v372_v42  ;;  %v369_v47 = vadd.f32 %v1138_v43, %v128_v39  ;;  %v377_v48 = vadd.f32 %v1146_v44, %v136_v40 }
  0xf6   :  { %v316_v49 = vpop.f32.mrf.mxu0  ;;  %v348_v50 = vpop.f32.mrf.mxu1 }
  0xf7   :  { %385 = vst [vmem:[#allocation2 + $0x8] sm:$0xff] %v369_v47  ;;  %393 = vst [vmem:[#allocation2 + $0x78] sm:$0xff] %v377_v48  ;;  %v367_v53 = vadd.f32 %v316_v49, %v126_v45  ;;  %v375_v54 = vadd.f32 %v348_v50, %v134_v46 }
  0xf8   :  { %v1139_v55 = vpop.f32.mrf.mxu0  ;;  %v1147_v56 = vpop.f32.mrf.mxu1 }
  0xf9   :  { %383 = vst [vmem:[#allocation2 + $0x50] sm:$0xff] %v367_v53  ;;  %391 = vst [vmem:[#allocation2 + $0x60] sm:$0xff] %v375_v54  ;;  %v370_v59 = vadd.f32 %v1139_v55, %v129_v51  ;;  %v378_v60 = vadd.f32 %v1147_v56, %v137_v52 }
  0xfa   :  { %v319_v61 = vpop.f32.mrf.mxu0  ;;  %v351_v62 = vpop.f32.mrf.mxu1 }
  0xfb   :  { %386 = vst [vmem:[#allocation2 + $0x48] sm:$0xff] %v370_v59  ;;  %394 = vst [vmem:[#allocation2 + $0x28] sm:$0xff] %v378_v60  ;;  %v368_v63 = vadd.f32 %v319_v61, %v127_v57  ;;  %v376_v0 = vadd.f32 %v351_v62, %v135_v58 }
  0xfd   :  { %384 = vst [vmem:[#allocation2 + $0x68] sm:$0xff] %v368_v63  ;;  %392 = vst [vmem:[#allocation2 + $0x70] sm:$0xff] %v376_v0 }
  0xfe PF:  { %v1245_v1 = vld [vmem:[%s1478_s6 + $0x38] sm:$0xff]   ;;  %v1247_v3 = vld [vmem:[%s1478_s6 + $0x30] sm:$0xff]   ;;  %v1249_v5 = vld [vmem:[%s1478_s6 + $0x28] sm:$0xff]  }
  0xff   :  { %v1246_v2 = vld [vmem:[%s1477_s5 + $0x38] sm:$0xff]   ;;  %1148 = vmatprep.subr.bf16.mxu0 %v1245_v1  ;;  %v1248_v4 = vld [vmem:[%s1477_s5 + $0x30] sm:$0xff]   ;;  %v1250_v6 = vld [vmem:[%s1477_s5 + $0x28] sm:$0xff]  }
 0x100   :  { %1180 = vmatprep.subr.bf16.mxu1 %v1246_v2  ;;  %1149 = vmatpush3.bf16.msra.mxu0 %v1245_v1  ;;  %v1251_v7 = vld [vmem:[%s1478_s6 + $0x20] sm:$0xff]   ;;  %v1253_v9 = vld [vmem:[%s1478_s6 + $0x18] sm:$0xff]   ;;  %v1255_v11 = vld [vmem:[%s1478_s6 + $0x10] sm:$0xff]  }
 0x101   :  { %1181 = vmatpush3.bf16.msra.mxu1 %v1246_v2  ;;  %1150 = vmatprep.subr.bf16.mxu0 %v1247_v3  ;;  %v1252_v8 = vld [vmem:[%s1477_s5 + $0x20] sm:$0xff]   ;;  %v1254_v10 = vld [vmem:[%s1477_s5 + $0x18] sm:$0xff]   ;;  %v430_v12 = vld [vmem:[#allocation2 + $0x30] sm:$0xff] }
 0x102   :  { %1182 = vmatprep.subr.bf16.mxu1 %v1248_v4  ;;  %v431_v13 = vld [vmem:[#allocation2] sm:$0xff]  ;;  %v1256_v14 = vld [vmem:[%s1477_s5 + $0x10] sm:$0xff]   ;;  %v1257_v17 = vld [vmem:[%s1478_s6 + $0x8] sm:$0xff]  }
 0x103   :  { %v446_v15 = vpack.c.bf16 %v431_v13, %v430_v12  ;;  %v1261_v16 = vld [vmem:[%s1476_s4] sm:$0xff]   ;;  %v1258_v18 = vld [vmem:[%s1477_s5 + $0x8] sm:$0xff]   ;;  %v432_v21 = vld [vmem:[#allocation2 + $0x58] sm:$0xff] }
 0x104   :  { %1151 = vmatpush3.bf16.msra.mxu0 %v1247_v3  ;;  %1196 = vmatprep.mubr.bf16.mxu1 %v1261_v16  ;;  %v1259_v19 = vld [vmem:[%s1478_s6] sm:$0xff]   ;;  %v433_v22 = vld [vmem:[#allocation2 + $0x18] sm:$0xff]  ;;  %v434_v23 = vld [vmem:[#allocation2 + $0x50] sm:$0xff] }
 0x105   :  { %1183 = vmatpush3.bf16.msra.mxu1 %v1248_v4  ;;  %1152 = vmatprep.subr.bf16.mxu0 %v1249_v5  ;;  %v1260_v20 = vld [vmem:[%s1477_s5] sm:$0xff]   ;;  %v435_v24 = vld [vmem:[#allocation2 + $0x68] sm:$0xff]  ;;  %v447_v25 = vpack.c.bf16 %v433_v22, %v432_v21  ;;  %v1263_v28 = vld [vmem:[%s1476_s4 + $0x10] sm:$0xff]  }
 0x106   :  { %1184 = vmatprep.subr.bf16.mxu1 %v1250_v6  ;;  %1164 = vmatprep.mubr.bf16.mxu0 %v446_v15  ;;  %v1262_v26 = vld [vmem:[%s1476_s4 + $0x8] sm:$0xff]   ;;  %v448_v27 = vpack.c.bf16 %v435_v24, %v434_v23  ;;  %v438_v31 = vld [vmem:[#allocation2 + $0x40] sm:$0xff]  ;;  %v1264_v34 = vld [vmem:[%s1476_s4 + $0x18] sm:$0xff]  }
 0x107   :  { %v436_v29 = vld [vmem:[#allocation2 + $0x8] sm:$0xff]  ;;  %v439_v32 = vld [vmem:[#allocation2 + $0x20] sm:$0xff]  ;;  %v440_v37 = vld [vmem:[#allocation2 + $0x10] sm:$0xff] }
 0x108   :  { %1153 = vmatpush3.bf16.msra.mxu0 %v1249_v5  ;;  %v437_v30 = vld [vmem:[#allocation2 + $0x48] sm:$0xff]  ;;  %v450_v35 = vpack.c.bf16 %v439_v32, %v438_v31  ;;  %v1265_v36 = vld [vmem:[%s1476_s4 + $0x20] sm:$0xff]   ;;  %v441_v38 = vld [vmem:[#allocation2 + $0x38] sm:$0xff] }
 0x109   :  { %1185 = vmatpush3.bf16.msra.mxu1 %v1250_v6  ;;  %1154 = vmatprep.subr.bf16.mxu0 %v1251_v7  ;;  %v449_v33 = vpack.c.bf16 %v437_v30, %v436_v29  ;;  %v442_v39 = vld [vmem:[#allocation2 + $0x60] sm:$0xff]  ;;  %v443_v40 = vld [vmem:[#allocation2 + $0x70] sm:$0xff]  ;;  %v451_v41 = vpack.c.bf16 %v441_v38, %v440_v37  ;;  %v1266_v42 = vld [vmem:[%s1476_s4 + $0x28] sm:$0xff]  }
 0x10a   :  { %1186 = vmatprep.subr.bf16.mxu1 %v1252_v8  ;;  %v452_v43 = vpack.c.bf16 %v443_v40, %v442_v39  ;;  %v1267_v44 = vld [vmem:[%s1476_s4 + $0x30] sm:$0xff]   ;;  %v444_v45 = vld [vmem:[#allocation2 + $0x78] sm:$0xff]  ;;  %v445_v46 = vld [vmem:[#allocation2 + $0x28] sm:$0xff] }
 0x10b   :  { %v453_v47 = vpack.c.bf16 %v445_v46, %v444_v45  ;;  %v1268_v48 = vld [vmem:[%s1476_s4 + $0x38] sm:$0xff]   ;;  %v1432_v53 = vld [vmem:[%s1479_s7] ss:$0 sm:$0xff] }
 0x10c   :  { %1155 = vmatpush3.bf16.msra.mxu0 %v1251_v7 }
 0x10d   :  { %1187 = vmatpush3.bf16.msra.mxu1 %v1252_v8  ;;  %1156 = vmatprep.subr.bf16.mxu0 %v1253_v9 }
 0x10e   :  { %1188 = vmatprep.subr.bf16.mxu1 %v1254_v10 }
 0x110   :  { %1157 = vmatpush3.bf16.msra.mxu0 %v1253_v9 }
 0x111   :  { %1189 = vmatpush3.bf16.msra.mxu1 %v1254_v10  ;;  %1158 = vmatprep.subr.bf16.mxu0 %v1255_v11 }
 0x112   :  { %1190 = vmatprep.subr.bf16.mxu1 %v1256_v14 }
 0x114   :  { %1159 = vmatpush3.bf16.msra.mxu0 %v1255_v11 }
 0x115   :  { %1191 = vmatpush3.bf16.msra.mxu1 %v1256_v14  ;;  %1160 = vmatprep.subr.bf16.mxu0 %v1257_v17 }
 0x116   :  { %1192 = vmatprep.subr.bf16.mxu1 %v1258_v18 }
 0x118   :  { %1161 = vmatpush3.bf16.msra.mxu0 %v1257_v17 }
 0x119   :  { %1193 = vmatpush3.bf16.msra.mxu1 %v1258_v18  ;;  %1162 = vmatprep.subr.bf16.mxu0 %v1259_v19 }
 0x11a   :  { %1194 = vmatprep.subr.bf16.mxu1 %v1260_v20 }
 0x11c   :  { %1163 = vmatpush3.bf16.msra.mxu0 %v1259_v19 }
 0x11d   :  { %1195 = vmatpush3.bf16.msra.mxu1 %v1260_v20 }
 0x11f   :  { %1165 = vmatmul.mubr.bf16.vlgmr.msra.gmra.mxu0 %v447_v25 }
 0x120   :  { %1197 = vmatmul.mubr.bf16.vlgmr.msra.gmra.mxu1 %v1262_v26  ;;  %1168 = vmatprep.mubr.bf16.mxu0 %v448_v27 }
 0x121   :  { %1200 = vmatprep.mubr.bf16.mxu1 %v1263_v28 }
 0x127   :  { %1169 = vmatmul.mubr.bf16.gmra.mxu0 %v449_v33 }
 0x128   :  { %1201 = vmatmul.mubr.bf16.gmra.mxu1 %v1264_v34  ;;  %1172 = vmatprep.mubr.bf16.mxu0 %v450_v35 }
 0x129   :  { %1204 = vmatprep.mubr.bf16.mxu1 %v1265_v36 }
 0x12f   :  { %1173 = vmatmul.mubr.bf16.gmra.mxu0 %v451_v41 }
 0x130   :  { %1205 = vmatmul.mubr.bf16.gmra.mxu1 %v1266_v42  ;;  %1176 = vmatprep.mubr.bf16.mxu0 %v452_v43 }
 0x131   :  { %1208 = vmatprep.mubr.bf16.mxu1 %v1267_v44 }
 0x137   :  { %1177 = vmatmul.mubr.bf16.gmra.mxu0 %v453_v47 }
 0x138   :  { %1209 = vmatmul.mubr.bf16.gmra.mxu1 %v1268_v48 }
 0x1df   :  { %v1166_v49 = vpop.f32.mrf.mxu0 }
 0x1e0   :  { %v1198_v50 = vpop.f32.mrf.mxu1 }
 0x1e1   :  { %v754_v51 = vadd.f32 %v1198_v50, %v1166_v49  ;;  %v552_v52 = vpop.f32.mrf.mxu0 }
 0x1e2   :  { %v745_v54 = vpop.f32.mrf.mxu1 }
 0x1e3   :  { %v746_v55 = vadd.f32 %v745_v54, %v552_v52  ;;  %v1167_v56 = vpop.f32.mrf.mxu0  ;;  %v817_v58 = vadd.f32 %v1432_v53, %v754_v51 }
 0x1e4   :  { %v1199_v57 = vpop.f32.mrf.mxu1 }
 0x1e5   :  { %v757_v59 = vadd.f32 %v1199_v57, %v1167_v56  ;;  %v555_v60 = vpop.f32.mrf.mxu0  ;;  %v815_v62 = vadd.f32 %v1432_v53, %v746_v55  ;;  %v833_v3 = vmax.f32 %v817_v58, 0.0 }
 0x1e6   :  { %v748_v61 = vpop.f32.mrf.mxu1 }
 0x1e7   :  { %v818_v63 = vadd.f32 %v1432_v53, %v757_v59  ;;  %v749_v0 = vadd.f32 %v748_v61, %v555_v60  ;;  %v1170_v1 = vpop.f32.mrf.mxu0  ;;  %v831_v9 = vmax.f32 %v815_v62, 0.0 }
 0x1e8   :  { %v1202_v2 = vpop.f32.mrf.mxu1 }
 0x1e9   :  { %v834_v4 = vmax.f32 %v818_v63, 0.0  ;;  %v816_v5 = vadd.f32 %v1432_v53, %v749_v0  ;;  %v770_v6 = vadd.f32 %v1202_v2, %v1170_v1  ;;  %v568_v7 = vpop.f32.mrf.mxu0 }
 0x1ea   :  { %v761_v8 = vpop.f32.mrf.mxu1 }
 0x1eb   :  { %v1029_v10 = vpack.c.bf16 %v834_v4, %v833_v3  ;;  %v832_v11 = vmax.f32 %v816_v5, 0.0  ;;  %v762_v12 = vadd.f32 %v761_v8, %v568_v7  ;;  %v1171_v13 = vpop.f32.mrf.mxu0  ;;  %v821_v16 = vadd.f32 %v1432_v53, %v770_v6 }
 0x1ec   :  { %v1203_v14 = vpop.f32.mrf.mxu1 }
 0x1ed   :  { %1061 = vst [vmem:[%s1480_s8 + $0x8] sm:$0xff] %v1029_v10   ;;  %v1024_v15 = vpack.c.bf16 %v832_v11, %v831_v9  ;;  %v773_v17 = vadd.f32 %v1203_v14, %v1171_v13  ;;  %v571_v18 = vpop.f32.mrf.mxu0  ;;  %v819_v20 = vadd.f32 %v1432_v53, %v762_v12  ;;  %v837_v25 = vmax.f32 %v821_v16, 0.0 }
 0x1ee   :  { %v764_v19 = vpop.f32.mrf.mxu1 }
 0x1ef   :  { %1025 = vst [vmem:[%s1480_s8] sm:$0xff] %v1024_v15   ;;  %v822_v21 = vadd.f32 %v1432_v53, %v773_v17  ;;  %v765_v22 = vadd.f32 %v764_v19, %v571_v18  ;;  %v1174_v23 = vpop.f32.mrf.mxu0  ;;  %v835_v31 = vmax.f32 %v819_v20, 0.0 }
 0x1f0   :  { %v1206_v24 = vpop.f32.mrf.mxu1 }
 0x1f1   :  { %v838_v26 = vmax.f32 %v822_v21, 0.0  ;;  %v820_v27 = vadd.f32 %v1432_v53, %v765_v22  ;;  %v786_v28 = vadd.f32 %v1206_v24, %v1174_v23  ;;  %v584_v29 = vpop.f32.mrf.mxu0 }
 0x1f2   :  { %v777_v30 = vpop.f32.mrf.mxu1 }
 0x1f3   :  { %v1039_v32 = vpack.c.bf16 %v838_v26, %v837_v25  ;;  %v836_v33 = vmax.f32 %v820_v27, 0.0  ;;  %v778_v34 = vadd.f32 %v777_v30, %v584_v29  ;;  %v1175_v35 = vpop.f32.mrf.mxu0  ;;  %v825_v38 = vadd.f32 %v1432_v53, %v786_v28 }
 0x1f4   :  { %v1207_v36 = vpop.f32.mrf.mxu1 }
 0x1f5   :  { %1063 = vst [vmem:[%s1480_s8 + $0x18] sm:$0xff] %v1039_v32   ;;  %v1034_v37 = vpack.c.bf16 %v836_v33, %v835_v31  ;;  %v789_v39 = vadd.f32 %v1207_v36, %v1175_v35  ;;  %v587_v40 = vpop.f32.mrf.mxu0  ;;  %v823_v42 = vadd.f32 %v1432_v53, %v778_v34  ;;  %v841_v47 = vmax.f32 %v825_v38, 0.0 }
 0x1f6   :  { %v780_v41 = vpop.f32.mrf.mxu1 }
 0x1f7   :  { %1062 = vst [vmem:[%s1480_s8 + $0x10] sm:$0xff] %v1034_v37   ;;  %v826_v43 = vadd.f32 %v1432_v53, %v789_v39  ;;  %v781_v44 = vadd.f32 %v780_v41, %v587_v40  ;;  %v1178_v45 = vpop.f32.mrf.mxu0  ;;  %v839_v54 = vmax.f32 %v823_v42, 0.0 }
 0x1f8   :  { %v1210_v46 = vpop.f32.mrf.mxu1 }
 0x1f9   :  { %v842_v48 = vmax.f32 %v826_v43, 0.0  ;;  %v824_v49 = vadd.f32 %v1432_v53, %v781_v44  ;;  %v802_v50 = vadd.f32 %v1210_v46, %v1178_v45  ;;  %v600_v51 = vpop.f32.mrf.mxu0 }
 0x1fa   :  { %v793_v52 = vpop.f32.mrf.mxu1 }
 0x1fb   :  { %v1049_v55 = vpack.c.bf16 %v842_v48, %v841_v47  ;;  %v840_v56 = vmax.f32 %v824_v49, 0.0  ;;  %v794_v57 = vadd.f32 %v793_v52, %v600_v51  ;;  %v1179_v58 = vpop.f32.mrf.mxu0  ;;  %v829_v61 = vadd.f32 %v1432_v53, %v802_v50 }
 0x1fc   :  { %v1211_v59 = vpop.f32.mrf.mxu1 }
 0x1fd   :  { %1065 = vst [vmem:[%s1480_s8 + $0x28] sm:$0xff] %v1049_v55   ;;  %v1044_v60 = vpack.c.bf16 %v840_v56, %v839_v54  ;;  %v805_v62 = vadd.f32 %v1211_v59, %v1179_v58  ;;  %v603_v63 = vpop.f32.mrf.mxu0  ;;  %v827_v1 = vadd.f32 %v1432_v53, %v794_v57  ;;  %v845_v4 = vmax.f32 %v829_v61, 0.0 }
 0x1fe   :  { %v796_v0 = vpop.f32.mrf.mxu1 }
 0x1ff   :  { %1064 = vst [vmem:[%s1480_s8 + $0x20] sm:$0xff] %v1044_v60   ;;  %v830_v2 = vadd.f32 %v1432_v53, %v805_v62  ;;  %v797_v3 = vadd.f32 %v796_v0, %v603_v63  ;;  %v843_v7 = vmax.f32 %v827_v1, 0.0 }
 0x201   :  { %v846_v5 = vmax.f32 %v830_v2, 0.0  ;;  %v828_v6 = vadd.f32 %v1432_v53, %v797_v3 }
 0x203   :  { %v1059_v8 = vpack.c.bf16 %v846_v5, %v845_v4  ;;  %v844_v9 = vmax.f32 %v828_v6, 0.0 }
 0x205   :  { %1067 = vst [vmem:[%s1480_s8 + $0x38] sm:$0xff] %v1059_v8   ;;  %v1054_v10 = vpack.c.bf16 %v844_v9, %v843_v7 }
 0x207   :  { %1066 = vst [vmem:[%s1480_s8 + $0x30] sm:$0xff] %v1054_v10  }

// kernel: sage_model_forward.7
= control target key start
LH: loop header
LB: loop body
LE: loop exit
PB: predicated region body
PF: predicated region fallthrough
CT: control target
= control target key end

     0   :  { %v1619_v2 = vmov 0   ;;  %s1971_s0 = inlined_call_operand.vmem [shape: bf16[128,128], index: 0, kind: input, shape index: {}]   ;;  %s1972_s1 = inlined_call_operand.vmem [shape: bf16[128,128], index: 1, kind: input, shape index: {}]   ;;  %s1973_s2 = inlined_call_operand.vmem [shape: bf16[128,256], index: 2, kind: input, shape index: {}]   ;;  %s1974_s3 = inlined_call_operand.vmem [shape: bf16[128,256], index: 3, kind: input, shape index: {}]   ;;  %s1975_s4 = inlined_call_operand.vmem [shape: f32[1,256], index: 4, kind: input, shape index: {}]   ;;  %s1976_s5 = inlined_call_operand.vmem [shape: bf16[256,128], index: 5, kind: input, shape index: {}]   ;;  %s1977_s6 = inlined_call_operand.vmem [shape: f32[1,128], index: 6, kind: input, shape index: {}]   ;;  %s1978_s7 = inlined_call_operand.vmem [shape: bf16[128,128], index: 7, kind: input, shape index: {}]   ;;  %s1979_s8 = inlined_call_operand.vmem [shape: f32[1,128], index: 8, kind: input, shape index: {}]   ;;  %s1980_s9 = inlined_call_operand.hbm [shape: bf16[128,128], index: 9, kind: output, shape index: {}]  }
   0x1   :  { %v1509_v0 = vld [vmem:[%s1974_s3 + $0x74] ss:$8 sps:$4 sm:$0xff]   ;;  %258 = vmatprep.mubr.bf16.mxu0 %v1619_v2  ;;  %499 = vmatprep.mubr.bf16.mxu1 %v1619_v2  ;;  %v1513_v3 = vld [vmem:[%s1974_s3 + $0x70] ss:$8 sps:$4 sm:$0xff]   ;;  %v1515_v5 = vld [vmem:[%s1974_s3 + $0x64] ss:$8 sps:$4 sm:$0xff]  }
   0x2   :  { %v1511_v1 = vld [vmem:[%s1973_s2 + $0x74] ss:$8 sps:$4 sm:$0xff]   ;;  %226 = vmatprep.subr.bf16.mxu0 %v1509_v0  ;;  %v1514_v4 = vld [vmem:[%s1973_s2 + $0x70] ss:$8 sps:$4 sm:$0xff]   ;;  %v1517_v6 = vld [vmem:[%s1973_s2 + $0x64] ss:$8 sps:$4 sm:$0xff]  }
   0x3   :  { %467 = vmatprep.subr.bf16.mxu1 %v1511_v1  ;;  %227 = vmatpush1.bf16.msra.mxu0 %v1513_v3  ;;  %v1519_v7 = vld [vmem:[%s1974_s3 + $0x60] ss:$8 sps:$4 sm:$0xff]   ;;  %v1521_v9 = vld [vmem:[%s1974_s3 + $0x54] ss:$8 sps:$4 sm:$0xff]   ;;  %v1525_v11 = vld [vmem:[%s1974_s3 + $0x50] ss:$8 sps:$4 sm:$0xff]  }
   0x4   :  { %468 = vmatpush1.bf16.msra.mxu1 %v1514_v4  ;;  %228 = vmatprep.subr.bf16.mxu0 %v1515_v5  ;;  %v1520_v8 = vld [vmem:[%s1973_s2 + $0x60] ss:$8 sps:$4 sm:$0xff]   ;;  %v1523_v10 = vld [vmem:[%s1973_s2 + $0x54] ss:$8 sps:$4 sm:$0xff]   ;;  %v1526_v12 = vld [vmem:[%s1973_s2 + $0x50] ss:$8 sps:$4 sm:$0xff]  }
   0x5   :  { %469 = vmatprep.subr.bf16.mxu1 %v1517_v6  ;;  %v1527_v13 = vld [vmem:[%s1974_s3 + $0x44] ss:$8 sps:$4 sm:$0xff]   ;;  %v1531_v15 = vld [vmem:[%s1974_s3 + $0x40] ss:$8 sps:$4 sm:$0xff]   ;;  %v1533_v17 = vld [vmem:[%s1974_s3 + $0x34] ss:$8 sps:$4 sm:$0xff]  }
   0x6   :  { %v1529_v14 = vld [vmem:[%s1973_s2 + $0x44] ss:$8 sps:$4 sm:$0xff]   ;;  %v1532_v16 = vld [vmem:[%s1973_s2 + $0x40] ss:$8 sps:$4 sm:$0xff]   ;;  %v1535_v18 = vld [vmem:[%s1973_s2 + $0x34] ss:$8 sps:$4 sm:$0xff]  }
   0x7   :  { %229 = vmatpush1.bf16.msra.mxu0 %v1519_v7  ;;  %v1537_v19 = vld [vmem:[%s1974_s3 + $0x30] ss:$8 sps:$4 sm:$0xff]   ;;  %v1539_v21 = vld [vmem:[%s1974_s3 + $0x24] ss:$8 sps:$4 sm:$0xff]   ;;  %v1543_v23 = vld [vmem:[%s1974_s3 + $0x20] ss:$8 sps:$4 sm:$0xff]  }
   0x8   :  { %470 = vmatpush1.bf16.msra.mxu1 %v1520_v8  ;;  %230 = vmatprep.subr.bf16.mxu0 %v1521_v9  ;;  %v1538_v20 = vld [vmem:[%s1973_s2 + $0x30] ss:$8 sps:$4 sm:$0xff]   ;;  %v1541_v22 = vld [vmem:[%s1973_s2 + $0x24] ss:$8 sps:$4 sm:$0xff]   ;;  %v1544_v24 = vld [vmem:[%s1973_s2 + $0x20] ss:$8 sps:$4 sm:$0xff]  }
   0x9   :  { %471 = vmatprep.subr.bf16.mxu1 %v1523_v10  ;;  %v1545_v25 = vld [vmem:[%s1974_s3 + $0x14] ss:$8 sps:$4 sm:$0xff]   ;;  %v1549_v27 = vld [vmem:[%s1974_s3 + $0x10] ss:$8 sps:$4 sm:$0xff]   ;;  %v1551_v29 = vld [vmem:[%s1974_s3 + $0x4] ss:$8 sps:$4 sm:$0xff]  }
   0xa   :  { %v1547_v26 = vld [vmem:[%s1973_s2 + $0x14] ss:$8 sps:$4 sm:$0xff]   ;;  %v1550_v28 = vld [vmem:[%s1973_s2 + $0x10] ss:$8 sps:$4 sm:$0xff]   ;;  %v1553_v30 = vld [vmem:[%s1973_s2 + $0x4] ss:$8 sps:$4 sm:$0xff]  }
   0xb   :  { %231 = vmatpush1.bf16.msra.mxu0 %v1525_v11  ;;  %v1555_v31 = vld [vmem:[%s1974_s3] ss:$8 sps:$4 sm:$0xff]   ;;  %v1573_v37 = vld [vmem:[%s1976_s5 + $0x78] sm:$0xff]   ;;  %v1575_v39 = vld [vmem:[%s1976_s5 + $0x70] sm:$0xff]  }
   0xc   :  { %472 = vmatpush1.bf16.msra.mxu1 %v1526_v12  ;;  %232 = vmatprep.subr.bf16.mxu0 %v1527_v13  ;;  %v1556_v32 = vld [vmem:[%s1973_s2] ss:$8 sps:$4 sm:$0xff]   ;;  %v1574_v38 = vld [vmem:[%s1976_s5 + $0x38] sm:$0xff]   ;;  %v1576_v40 = vld [vmem:[%s1976_s5 + $0x30] sm:$0xff]  }
   0xd   :  { %473 = vmatprep.subr.bf16.mxu1 %v1529_v14  ;;  %v1557_v33 = vld [vmem:[%s1972_s1] sm:$0xff]   ;;  %v1559_v35 = vld [vmem:[%s1972_s1 + $0x8] sm:$0xff]   ;;  %v1561_v42 = vld [vmem:[%s1972_s1 + $0x10] sm:$0xff]  }
   0xe   :  { %v1558_v34 = vld [vmem:[%s1971_s0] sm:$0xff]   ;;  %v1560_v36 = vld [vmem:[%s1971_s0 + $0x8] sm:$0xff]   ;;  %v1562_v45 = vld [vmem:[%s1971_s0 + $0x10] sm:$0xff]  }
   0xf   :  { %233 = vmatpush1.bf16.msra.mxu0 %v1531_v15  ;;  %v1577_v41 = vld [vmem:[%s1976_s5 + $0x68] sm:$0xff]   ;;  %v1579_v44 = vld [vmem:[%s1976_s5 + $0x60] sm:$0xff]   ;;  %v1581_v47 = vld [vmem:[%s1976_s5 + $0x58] sm:$0xff]  }
  0x10   :  { %474 = vmatpush1.bf16.msra.mxu1 %v1532_v16  ;;  %234 = vmatprep.subr.bf16.mxu0 %v1533_v17  ;;  %v1578_v43 = vld [vmem:[%s1976_s5 + $0x28] sm:$0xff]   ;;  %v1580_v46 = vld [vmem:[%s1976_s5 + $0x20] sm:$0xff]   ;;  %v1582_v48 = vld [vmem:[%s1976_s5 + $0x18] sm:$0xff]  }
  0x11   :  { %475 = vmatprep.subr.bf16.mxu1 %v1535_v18  ;;  %v1583_v49 = vld [vmem:[%s1976_s5 + $0x50] sm:$0xff]   ;;  %v1563_v50 = vld [vmem:[%s1972_s1 + $0x18] sm:$0xff]  }
  0x12   :  { %v1564_v51 = vld [vmem:[%s1971_s0 + $0x18] sm:$0xff]   ;;  %v1584_v52 = vld [vmem:[%s1976_s5 + $0x10] sm:$0xff]  }
  0x13   :  { %235 = vmatpush1.bf16.msra.mxu0 %v1537_v19 }
  0x14   :  { %476 = vmatpush1.bf16.msra.mxu1 %v1538_v20  ;;  %236 = vmatprep.subr.bf16.mxu0 %v1539_v21 }
  0x15   :  { %477 = vmatprep.subr.bf16.mxu1 %v1541_v22 }
  0x17   :  { %237 = vmatpush1.bf16.msra.mxu0 %v1543_v23 }
  0x18   :  { %478 = vmatpush1.bf16.msra.mxu1 %v1544_v24  ;;  %238 = vmatprep.subr.bf16.mxu0 %v1545_v25 }
  0x19   :  { %479 = vmatprep.subr.bf16.mxu1 %v1547_v26 }
  0x1b   :  { %239 = vmatpush1.bf16.msra.mxu0 %v1549_v27 }
  0x1c   :  { %480 = vmatpush1.bf16.msra.mxu1 %v1550_v28  ;;  %240 = vmatprep.subr.bf16.mxu0 %v1551_v29 }
  0x1d   :  { %481 = vmatprep.subr.bf16.mxu1 %v1553_v30 }
  0x1f   :  { %241 = vmatpush1.bf16.msra.mxu0 %v1555_v31 }
  0x20   :  { %482 = vmatpush1.bf16.msra.mxu1 %v1556_v32  ;;  %1393 = vmatprep.subr.bf16.mxu0 %v1573_v37 }
  0x22   :  { %259 = vmatmul.mubr.bf16.vlgmr.msra.gmra.mxu0 %v1557_v33 }
  0x23   :  { %500 = vmatmul.mubr.bf16.vlgmr.msra.gmra.mxu1 %v1558_v34  ;;  %268 = vmatprep.mubr.bf16.mxu0 %v1619_v2 }
  0x24   :  { %509 = vmatprep.mubr.bf16.mxu1 %v1619_v2  ;;  %1394 = vmatpush3.bf16.msra.mxu0 %v1574_v38 }
  0x25   :  { %1395 = vmatprep.subr.bf16.mxu0 %v1575_v39 }
  0x28   :  { %1396 = vmatpush3.bf16.msra.mxu0 %v1576_v40 }
  0x29   :  { %1397 = vmatprep.subr.bf16.mxu0 %v1577_v41 }
  0x2a   :  { %269 = vmatmul.mubr.bf16.gmra.mxu0 %v1559_v35 }
  0x2b   :  { %510 = vmatmul.mubr.bf16.gmra.mxu1 %v1560_v36  ;;  %278 = vmatprep.mubr.bf16.mxu0 %v1619_v2 }
  0x2c   :  { %519 = vmatprep.mubr.bf16.mxu1 %v1619_v2  ;;  %1398 = vmatpush3.bf16.msra.mxu0 %v1578_v43 }
  0x2d   :  { %1399 = vmatprep.subr.bf16.mxu0 %v1579_v44 }
  0x30   :  { %1400 = vmatpush3.bf16.msra.mxu0 %v1580_v46 }
  0x31   :  { %1401 = vmatprep.subr.bf16.mxu0 %v1581_v47 }
  0x32   :  { %279 = vmatmul.mubr.bf16.gmra.mxu0 %v1561_v42 }
  0x33   :  { %520 = vmatmul.mubr.bf16.gmra.mxu1 %v1562_v45  ;;  %288 = vmatprep.mubr.bf16.mxu0 %v1619_v2 }
  0x34   :  { %529 = vmatprep.mubr.bf16.mxu1 %v1619_v2  ;;  %1402 = vmatpush3.bf16.msra.mxu0 %v1582_v48 }
  0x35   :  { %14 = vsyncpa [#allocation3], 0  ;;  %1403 = vmatprep.subr.bf16.mxu0 %v1583_v49  ;;  %v1565_v53 = vld [vmem:[%s1972_s1 + $0x20] sm:$0xff]   ;;  %v1567_v55 = vld [vmem:[%s1972_s1 + $0x28] sm:$0xff]   ;;  %v582_v3 = vlaneseq }
  0x36   :  { %v1566_v54 = vld [vmem:[%s1971_s0 + $0x20] sm:$0xff]   ;;  %v1568_v56 = vld [vmem:[%s1971_s0 + $0x28] sm:$0xff]   ;;  %v1569_v57 = vld [vmem:[%s1972_s1 + $0x30] sm:$0xff]  }
  0x37   :  { %v1570_v58 = vld [vmem:[%s1971_s0 + $0x30] sm:$0xff]   ;;  %v1571_v59 = vld [vmem:[%s1972_s1 + $0x38] sm:$0xff]   ;;  %v1585_v61 = vld [vmem:[%s1976_s5 + $0x48] sm:$0xff]   ;;  %v583_v4 = vshrl.u32 %v582_v3, 7 }
  0x38   :  { %1404 = vmatpush3.bf16.msra.mxu0 %v1584_v52  ;;  %v1572_v60 = vld [vmem:[%s1971_s0 + $0x38] sm:$0xff]   ;;  %v1586_v62 = vld [vmem:[%s1976_s5 + $0x8] sm:$0xff]   ;;  %v1587_v63 = vld [vmem:[%s1976_s5 + $0x40] sm:$0xff]  }
  0x39   :  { %1405 = vmatprep.subr.bf16.mxu0 %v1585_v61  ;;  %v1588_v0 = vld [vmem:[%s1976_s5] sm:$0xff]   ;;  %v1589_v1 = vld [vmem:[%s1978_s7 + $0x38] sm:$0xff]   ;;  %v588_v5 = vsub.s32 1, %v583_v4  ;;  %v584_v6 = vsub.s32 0, %v583_v4 }
  0x3a   :  { %289 = vmatmul.mubr.bf16.gmra.mxu0 %v1563_v50  ;;  %1473 = vmatprep.subr.bf16.mxu1 %v1589_v1  ;;  %v580_v7 = vld [vmem:[%s1975_s4] sm:$0x3] }
  0x3b   :  { %530 = vmatmul.mubr.bf16.gmra.mxu1 %v1564_v51  ;;  %298 = vmatprep.mubr.bf16.mxu0 %v1619_v2  ;;  %v1890_v10 = vrot.slane %v580_v7, %v588_v5  ;;  %v1892_v12 = vrot.slane %v580_v7, %v584_v6 }
  0x3c   :  { %539 = vmatprep.mubr.bf16.mxu1 %v1619_v2  ;;  %1406 = vmatpush3.bf16.msra.mxu0 %v1586_v62 }
  0x3d   :  { %1407 = vmatprep.subr.bf16.mxu0 %v1587_v63  ;;  %1474 = vmatpush3.bf16.msra.mxu1 %v1589_v1 }
  0x40   :  { %1408 = vmatpush3.bf16.msra.mxu0 %v1588_v0 }
  0x42   :  { %299 = vmatmul.mubr.bf16.gmra.mxu0 %v1565_v53 }
  0x43   :  { %540 = vmatmul.mubr.bf16.gmra.mxu1 %v1566_v54  ;;  %308 = vmatprep.mubr.bf16.mxu0 %v1619_v2 }
  0x44   :  { %549 = vmatprep.mubr.bf16.mxu1 %v1619_v2 }
  0x4a   :  { %309 = vmatmul.mubr.bf16.gmra.mxu0 %v1567_v55 }
  0x4b   :  { %550 = vmatmul.mubr.bf16.gmra.mxu1 %v1568_v56  ;;  %318 = vmatprep.mubr.bf16.mxu0 %v1619_v2 }
  0x4c   :  { %559 = vmatprep.mubr.bf16.mxu1 %v1619_v2 }
  0x52   :  { %319 = vmatmul.mubr.bf16.gmra.mxu0 %v1569_v57 }
  0x53   :  { %560 = vmatmul.mubr.bf16.gmra.mxu1 %v1570_v58  ;;  %328 = vmatprep.mubr.bf16.mxu0 %v1619_v2 }
  0x54   :  { %569 = vmatprep.mubr.bf16.mxu1 %v1619_v2  ;;  %v1590_v2 = vld [vmem:[%s1978_s7 + $0x30] sm:$0xff]  }
  0x55   :  { %1475 = vmatprep.subr.bf16.mxu1 %v1590_v2 }
  0x56   :  { %1476 = vmatpush3.bf16.msra.mxu1 %v1590_v2 }
  0x5a   :  { %329 = vmatmul.mubr.bf16.gmra.mxu0 %v1571_v59 }
  0x5b   :  { %570 = vmatmul.mubr.bf16.gmra.mxu1 %v1572_v60 }
  0xe2   :  { %v260_v8 = vpop.f32.mrf.mxu0 }
  0xe3   :  { %v501_v9 = vpop.f32.mrf.mxu1 }
  0xe4   :  { %v502_v11 = vadd.f32 %v501_v9, %v260_v8  ;;  %v262_v13 = vpop.f32.mrf.mxu0 }
  0xe5   :  { %v503_v14 = vpop.f32.mrf.mxu1 }
  0xe6   :  { %v504_v15 = vadd.f32 %v503_v14, %v262_v13  ;;  %v264_v16 = vpop.f32.mrf.mxu0  ;;  %v592_v20 = vadd.f32 %v1892_v12, %v502_v11 }
  0xe7   :  { %v505_v17 = vpop.f32.mrf.mxu1 }
  0xe8   :  { %v593_v18 = vadd.f32 %v1890_v10, %v504_v15  ;;  %v506_v19 = vadd.f32 %v505_v17, %v264_v16  ;;  %v266_v21 = vpop.f32.mrf.mxu0  ;;  %v624_v30 = vmul.f32 0.01, %v592_v20 }
  0xe9   :  { %v507_v22 = vpop.f32.mrf.mxu1 }
  0xea   :  { %v594_v23 = vadd.f32 %v1892_v12, %v506_v19  ;;  %v508_v24 = vadd.f32 %v507_v22, %v266_v21  ;;  %v270_v25 = vpop.f32.mrf.mxu0  ;;  %v625_v27 = vmul.f32 0.01, %v593_v18  ;;  %v656_v41 = vmax.f32 %v592_v20, %v624_v30 }
  0xeb   :  { %v511_v26 = vpop.f32.mrf.mxu1 }
  0xec   :  { %v626_v28 = vmul.f32 0.01, %v594_v23  ;;  %v595_v29 = vadd.f32 %v1890_v10, %v508_v24  ;;  %v272_v31 = vpop.f32.mrf.mxu0  ;;  %v512_v34 = vadd.f32 %v511_v26, %v270_v25  ;;  %v657_v39 = vmax.f32 %v593_v18, %v625_v27 }
  0xed   :  { %v513_v32 = vpop.f32.mrf.mxu1 }
  0xee   :  { %v627_v33 = vmul.f32 0.01, %v595_v29  ;;  %v514_v35 = vadd.f32 %v513_v32, %v272_v31  ;;  %v658_v36 = vmax.f32 %v594_v23, %v626_v28  ;;  %v274_v37 = vpop.f32.mrf.mxu0  ;;  %v596_v46 = vadd.f32 %v1892_v12, %v512_v34 }
  0xef   :  { %v515_v38 = vpop.f32.mrf.mxu1 }
  0xf0   :  { %v659_v40 = vmax.f32 %v595_v29, %v627_v33  ;;  %v597_v42 = vadd.f32 %v1890_v10, %v514_v35  ;;  %v516_v43 = vadd.f32 %v515_v38, %v274_v37  ;;  %v276_v44 = vpop.f32.mrf.mxu0  ;;  %v688_v49 = vpack.c.bf16 %v658_v36, %v656_v41 }
  0xf1   :  { %v517_v45 = vpop.f32.mrf.mxu1  ;;  %v628_v58 = vmul.f32 0.01, %v596_v46 }
  0xf2   :  { %v518_v47 = vadd.f32 %v517_v45, %v276_v44  ;;  %v689_v48 = vpack.c.bf16 %v659_v40, %v657_v39  ;;  %v598_v50 = vadd.f32 %v1892_v12, %v516_v43  ;;  %v280_v51 = vpop.f32.mrf.mxu0  ;;  %v629_v54 = vmul.f32 0.01, %v597_v42 }
  0xf3   :  { %v521_v52 = vpop.f32.mrf.mxu1  ;;  %v660_v7 = vmax.f32 %v596_v46, %v628_v58 }
  0xf4   :  { %v599_v53 = vadd.f32 %v1890_v10, %v518_v47  ;;  %871 = vmatprep.mubr.bf16.mxu0 %v689_v48  ;;  %v630_v55 = vmul.f32 0.01, %v598_v50  ;;  %v282_v56 = vpop.f32.mrf.mxu0  ;;  %v522_v60 = vadd.f32 %v521_v52, %v280_v51  ;;  %v661_v3 = vmax.f32 %v597_v42, %v629_v54 }
  0xf5   :  { %v523_v57 = vpop.f32.mrf.mxu1  ;;  %872 = vmatmul.mubr.bf16.vlgmr.msra.gmra.mxu0 %v688_v49 }
  0xf6   :  { %v631_v59 = vmul.f32 0.01, %v599_v53  ;;  %v524_v61 = vadd.f32 %v523_v57, %v282_v56  ;;  %v284_v62 = vpop.f32.mrf.mxu0  ;;  %v662_v0 = vmax.f32 %v598_v50, %v630_v55  ;;  %v600_v8 = vadd.f32 %v1892_v12, %v522_v60 }
  0xf7   :  { %v525_v63 = vpop.f32.mrf.mxu1 }
  0xf8   :  { %v663_v1 = vmax.f32 %v599_v53, %v631_v59  ;;  %v526_v2 = vadd.f32 %v525_v63, %v284_v62  ;;  %v601_v4 = vadd.f32 %v1890_v10, %v524_v61  ;;  %v286_v5 = vpop.f32.mrf.mxu0  ;;  %v690_v18 = vpack.c.bf16 %v662_v0, %v660_v7 }
  0xf9   :  { %v527_v6 = vpop.f32.mrf.mxu1  ;;  %v632_v22 = vmul.f32 0.01, %v600_v8 }
  0xfa   :  { %v602_v9 = vadd.f32 %v1892_v12, %v526_v2  ;;  %v528_v11 = vadd.f32 %v527_v6, %v286_v5  ;;  %v290_v13 = vpop.f32.mrf.mxu0  ;;  %v691_v15 = vpack.c.bf16 %v663_v1, %v661_v3  ;;  %v633_v19 = vmul.f32 0.01, %v601_v4 }
  0xfb   :  { %v531_v14 = vpop.f32.mrf.mxu1  ;;  %v664_v35 = vmax.f32 %v600_v8, %v632_v22 }
  0xfc   :  { %v634_v16 = vmul.f32 0.01, %v602_v9  ;;  %v603_v17 = vadd.f32 %v1890_v10, %v528_v11  ;;  %879 = vmatprep.mubr.bf16.mxu0 %v691_v15  ;;  %v292_v20 = vpop.f32.mrf.mxu0  ;;  %v532_v24 = vadd.f32 %v531_v14, %v290_v13  ;;  %v665_v31 = vmax.f32 %v601_v4, %v633_v19 }
  0xfd   :  { %v533_v21 = vpop.f32.mrf.mxu1  ;;  %880 = vmatmul.mubr.bf16.gmra.mxu0 %v690_v18 }
  0xfe   :  { %v635_v23 = vmul.f32 0.01, %v603_v17  ;;  %v534_v25 = vadd.f32 %v533_v21, %v292_v20  ;;  %v294_v26 = vpop.f32.mrf.mxu0  ;;  %v666_v28 = vmax.f32 %v602_v9, %v634_v16  ;;  %v604_v36 = vadd.f32 %v1892_v12, %v532_v24 }
  0xff   :  { %v535_v27 = vpop.f32.mrf.mxu1 }
 0x100   :  { %v667_v29 = vmax.f32 %v603_v17, %v635_v23  ;;  %v536_v30 = vadd.f32 %v535_v27, %v294_v26  ;;  %v605_v32 = vadd.f32 %v1890_v10, %v534_v25  ;;  %v296_v33 = vpop.f32.mrf.mxu0  ;;  %v692_v44 = vpack.c.bf16 %v666_v28, %v664_v35 }
 0x101   :  { %v537_v34 = vpop.f32.mrf.mxu1  ;;  %v636_v48 = vmul.f32 0.01, %v604_v36 }
 0x102   :  { %v606_v37 = vadd.f32 %v1892_v12, %v536_v30  ;;  %v538_v38 = vadd.f32 %v537_v34, %v296_v33  ;;  %v300_v39 = vpop.f32.mrf.mxu0  ;;  %v693_v41 = vpack.c.bf16 %v667_v29, %v665_v31  ;;  %v637_v45 = vmul.f32 0.01, %v605_v32 }
 0x103   :  { %v541_v40 = vpop.f32.mrf.mxu1  ;;  %v668_v61 = vmax.f32 %v604_v36, %v636_v48 }
 0x104   :  { %v638_v42 = vmul.f32 0.01, %v606_v37  ;;  %v607_v43 = vadd.f32 %v1890_v10, %v538_v38  ;;  %887 = vmatprep.mubr.bf16.mxu0 %v693_v41  ;;  %v302_v46 = vpop.f32.mrf.mxu0  ;;  %v542_v50 = vadd.f32 %v541_v40, %v300_v39  ;;  %v669_v57 = vmax.f32 %v605_v32, %v637_v45 }
 0x105   :  { %v543_v47 = vpop.f32.mrf.mxu1  ;;  %888 = vmatmul.mubr.bf16.gmra.mxu0 %v692_v44 }
 0x106   :  { %v639_v49 = vmul.f32 0.01, %v607_v43  ;;  %v544_v51 = vadd.f32 %v543_v47, %v302_v46  ;;  %v304_v52 = vpop.f32.mrf.mxu0  ;;  %v670_v54 = vmax.f32 %v606_v37, %v638_v42  ;;  %v608_v62 = vadd.f32 %v1892_v12, %v542_v50 }
 0x107   :  { %v545_v53 = vpop.f32.mrf.mxu1 }
 0x108   :  { %v671_v55 = vmax.f32 %v607_v43, %v639_v49  ;;  %v546_v56 = vadd.f32 %v545_v53, %v304_v52  ;;  %v609_v58 = vadd.f32 %v1890_v10, %v544_v51  ;;  %v306_v59 = vpop.f32.mrf.mxu0  ;;  %v694_v6 = vpack.c.bf16 %v670_v54, %v668_v61 }
 0x109   :  { %v547_v60 = vpop.f32.mrf.mxu1  ;;  %v640_v11 = vmul.f32 0.01, %v608_v62 }
 0x10a   :  { %v610_v63 = vadd.f32 %v1892_v12, %v546_v56  ;;  %v548_v0 = vadd.f32 %v547_v60, %v306_v59  ;;  %v310_v1 = vpop.f32.mrf.mxu0  ;;  %v695_v3 = vpack.c.bf16 %v671_v55, %v669_v57  ;;  %v641_v7 = vmul.f32 0.01, %v609_v58 }
 0x10b   :  { %v551_v2 = vpop.f32.mrf.mxu1  ;;  %v672_v25 = vmax.f32 %v608_v62, %v640_v11 }
 0x10c   :  { %v642_v4 = vmul.f32 0.01, %v610_v63  ;;  %v611_v5 = vadd.f32 %v1890_v10, %v548_v0  ;;  %895 = vmatprep.mubr.bf16.mxu0 %v695_v3  ;;  %v312_v8 = vpop.f32.mrf.mxu0  ;;  %v552_v14 = vadd.f32 %v551_v2, %v310_v1  ;;  %v673_v21 = vmax.f32 %v609_v58, %v641_v7 }
 0x10d   :  { %v553_v9 = vpop.f32.mrf.mxu1  ;;  %896 = vmatmul.mubr.bf16.gmra.mxu0 %v694_v6 }
 0x10e   :  { %v643_v13 = vmul.f32 0.01, %v611_v5  ;;  %v554_v15 = vadd.f32 %v553_v9, %v312_v8  ;;  %v314_v16 = vpop.f32.mrf.mxu0  ;;  %v674_v18 = vmax.f32 %v610_v63, %v642_v4  ;;  %v612_v26 = vadd.f32 %v1892_v12, %v552_v14 }
 0x10f   :  { %v555_v17 = vpop.f32.mrf.mxu1 }
 0x110   :  { %v675_v19 = vmax.f32 %v611_v5, %v643_v13  ;;  %v556_v20 = vadd.f32 %v555_v17, %v314_v16  ;;  %v613_v22 = vadd.f32 %v1890_v10, %v554_v15  ;;  %v316_v23 = vpop.f32.mrf.mxu0  ;;  %v696_v34 = vpack.c.bf16 %v674_v18, %v672_v25 }
 0x111   :  { %v557_v24 = vpop.f32.mrf.mxu1  ;;  %v644_v38 = vmul.f32 0.01, %v612_v26 }
 0x112   :  { %v614_v27 = vadd.f32 %v1892_v12, %v556_v20  ;;  %v558_v28 = vadd.f32 %v557_v24, %v316_v23  ;;  %v320_v29 = vpop.f32.mrf.mxu0  ;;  %v697_v31 = vpack.c.bf16 %v675_v19, %v673_v21  ;;  %v645_v35 = vmul.f32 0.01, %v613_v22 }
 0x113   :  { %v561_v30 = vpop.f32.mrf.mxu1  ;;  %v676_v51 = vmax.f32 %v612_v26, %v644_v38 }
 0x114   :  { %v646_v32 = vmul.f32 0.01, %v614_v27  ;;  %v615_v33 = vadd.f32 %v1890_v10, %v558_v28  ;;  %903 = vmatprep.mubr.bf16.mxu0 %v697_v31  ;;  %v322_v36 = vpop.f32.mrf.mxu0  ;;  %v562_v40 = vadd.f32 %v561_v30, %v320_v29  ;;  %v677_v47 = vmax.f32 %v613_v22, %v645_v35  ;;  %v1596_v35 = vld [vmem:[%s1978_s7] sm:$0xff]  }
 0x115   :  { %v563_v37 = vpop.f32.mrf.mxu1  ;;  %904 = vmatmul.mubr.bf16.gmra.mxu0 %v696_v34  ;;  %v1595_v34 = vld [vmem:[%s1978_s7 + $0x8] sm:$0xff]  }
 0x116   :  { %v647_v39 = vmul.f32 0.01, %v615_v33  ;;  %v564_v41 = vadd.f32 %v563_v37, %v322_v36  ;;  %v324_v42 = vpop.f32.mrf.mxu0  ;;  %v678_v44 = vmax.f32 %v614_v27, %v646_v32  ;;  %v616_v52 = vadd.f32 %v1892_v12, %v562_v40  ;;  %v1593_v32 = vld [vmem:[%s1978_s7 + $0x18] sm:$0xff]   ;;  %v1947_v37 = vld [vmem:[%s1977_s6] ss:$0 sm:$0xff] }
 0x117   :  { %v565_v43 = vpop.f32.mrf.mxu1 }
 0x118   :  { %v679_v45 = vmax.f32 %v615_v33, %v647_v39  ;;  %v566_v46 = vadd.f32 %v565_v43, %v324_v42  ;;  %v617_v48 = vadd.f32 %v1890_v10, %v564_v41  ;;  %v326_v49 = vpop.f32.mrf.mxu0  ;;  %v698_v60 = vpack.c.bf16 %v678_v44, %v676_v51  ;;  %v1594_v33 = vld [vmem:[%s1978_s7 + $0x10] sm:$0xff]  }
 0x119   :  { %v567_v50 = vpop.f32.mrf.mxu1  ;;  %v648_v0 = vmul.f32 0.01, %v616_v52 }
 0x11a   :  { %v618_v53 = vadd.f32 %v1892_v12, %v566_v46  ;;  %v568_v54 = vadd.f32 %v567_v50, %v326_v49  ;;  %v330_v55 = vpop.f32.mrf.mxu0  ;;  %v699_v57 = vpack.c.bf16 %v679_v45, %v677_v47  ;;  %v649_v61 = vmul.f32 0.01, %v617_v48 }
 0x11b   :  { %v571_v56 = vpop.f32.mrf.mxu1  ;;  %v680_v15 = vmax.f32 %v616_v52, %v648_v0 }
 0x11c   :  { %v650_v58 = vmul.f32 0.01, %v618_v53  ;;  %v619_v59 = vadd.f32 %v1890_v10, %v568_v54  ;;  %911 = vmatprep.mubr.bf16.mxu0 %v699_v57  ;;  %v332_v62 = vpop.f32.mrf.mxu0  ;;  %v572_v2 = vadd.f32 %v571_v56, %v330_v55  ;;  %v681_v11 = vmax.f32 %v617_v48, %v649_v61 }
 0x11d   :  { %v573_v63 = vpop.f32.mrf.mxu1  ;;  %912 = vmatmul.mubr.bf16.gmra.mxu0 %v698_v60 }
 0x11e   :  { %v651_v1 = vmul.f32 0.01, %v619_v59  ;;  %v574_v3 = vadd.f32 %v573_v63, %v332_v62  ;;  %v334_v4 = vpop.f32.mrf.mxu0  ;;  %v682_v6 = vmax.f32 %v618_v53, %v650_v58  ;;  %v620_v16 = vadd.f32 %v1892_v12, %v572_v2 }
 0x11f   :  { %v575_v5 = vpop.f32.mrf.mxu1 }
 0x120   :  { %v683_v7 = vmax.f32 %v619_v59, %v651_v1  ;;  %v621_v8 = vadd.f32 %v1890_v10, %v574_v3  ;;  %v576_v9 = vadd.f32 %v575_v5, %v334_v4  ;;  %v336_v13 = vpop.f32.mrf.mxu0  ;;  %v700_v23 = vpack.c.bf16 %v682_v6, %v680_v15 }
 0x121   :  { %v577_v14 = vpop.f32.mrf.mxu1  ;;  %v652_v24 = vmul.f32 0.01, %v620_v16 }
 0x122   :  { %v622_v17 = vadd.f32 %v1892_v12, %v576_v9  ;;  %v578_v18 = vadd.f32 %v577_v14, %v336_v13  ;;  %v701_v19 = vpack.c.bf16 %v683_v7, %v681_v11  ;;  %v653_v20 = vmul.f32 0.01, %v621_v8  ;;  %v1591_v12 = vld [vmem:[%s1978_s7 + $0x28] sm:$0xff]  }
 0x123   :  { %v684_v29 = vmax.f32 %v620_v16, %v652_v24  ;;  %1477 = vmatprep.subr.bf16.mxu1 %v1591_v12 }
 0x124   :  { %v654_v21 = vmul.f32 0.01, %v622_v17  ;;  %v623_v22 = vadd.f32 %v1890_v10, %v578_v18  ;;  %919 = vmatprep.mubr.bf16.mxu0 %v701_v19  ;;  %v685_v26 = vmax.f32 %v621_v8, %v653_v20  ;;  %1478 = vmatpush3.bf16.msra.mxu1 %v1591_v12  ;;  %v1592_v10 = vld [vmem:[%s1978_s7 + $0x20] sm:$0xff]  }
 0x125   :  { %920 = vmatmul.mubr.bf16.gmra.mxu0 %v700_v23  ;;  %1479 = vmatprep.subr.bf16.mxu1 %v1592_v10 }
 0x126   :  { %v655_v25 = vmul.f32 0.01, %v623_v22  ;;  %v686_v27 = vmax.f32 %v622_v17, %v654_v21 }
 0x128   :  { %v687_v28 = vmax.f32 %v623_v22, %v655_v25  ;;  %v702_v31 = vpack.c.bf16 %v686_v27, %v684_v29  ;;  %1480 = vmatpush3.bf16.msra.mxu1 %v1592_v10 }
 0x129   :  { %1481 = vmatprep.subr.bf16.mxu1 %v1593_v32 }
 0x12a   :  { %v703_v30 = vpack.c.bf16 %v687_v28, %v685_v26 }
 0x12c   :  { %927 = vmatprep.mubr.bf16.mxu0 %v703_v30  ;;  %1482 = vmatpush3.bf16.msra.mxu1 %v1593_v32 }
 0x12d   :  { %928 = vmatmul.mubr.bf16.gmra.mxu0 %v702_v31  ;;  %1483 = vmatprep.subr.bf16.mxu1 %v1594_v33 }
 0x130   :  { %1484 = vmatpush3.bf16.msra.mxu1 %v1594_v33 }
 0x131   :  { %1485 = vmatprep.subr.bf16.mxu1 %v1595_v34 }
 0x134   :  { %1486 = vmatpush3.bf16.msra.mxu1 %v1595_v34 }
 0x135   :  { %1487 = vmatprep.subr.bf16.mxu1 %v1596_v35 }
 0x138   :  { %1488 = vmatpush3.bf16.msra.mxu1 %v1596_v35 }
 0x1b5   :  { %v1409_v36 = vpop.f32.mrf.mxu0 }
 0x1b7   :  { %v1410_v38 = vpop.f32.mrf.mxu0 }
 0x1b8   :  { %v1411_v39 = vadd.f32 %v1410_v38, %v1409_v36 }
 0x1b9   :  { %v1412_v40 = vpop.f32.mrf.mxu0 }
 0x1ba   :  { %v874_v41 = vadd.f32 %v1411_v39, %v1947_v37 }
 0x1bb   :  { %v1413_v42 = vpop.f32.mrf.mxu0 }
 0x1bc   :  { %v1414_v43 = vadd.f32 %v1413_v42, %v1412_v40  ;;  %v936_v44 = vmul.f32 0.01, %v874_v41 }
 0x1bd   :  { %v1415_v46 = vpop.f32.mrf.mxu0 }
 0x1be   :  { %v877_v45 = vadd.f32 %v1414_v43, %v1947_v37  ;;  %v952_v50 = vmax.f32 %v874_v41, %v936_v44 }
 0x1bf   :  { %v1416_v48 = vpop.f32.mrf.mxu0 }
 0x1c0   :  { %v937_v47 = vmul.f32 0.01, %v877_v45  ;;  %v1417_v49 = vadd.f32 %v1416_v48, %v1415_v46 }
 0x1c1   :  { %v1418_v52 = vpop.f32.mrf.mxu0 }
 0x1c2   :  { %v953_v51 = vmax.f32 %v877_v45, %v937_v47  ;;  %v882_v53 = vadd.f32 %v1417_v49, %v1947_v37 }
 0x1c3   :  { %v1419_v54 = vpop.f32.mrf.mxu0 }
 0x1c4   :  { %v968_v55 = vpack.c.bf16 %v953_v51, %v952_v50  ;;  %v1420_v56 = vadd.f32 %v1419_v54, %v1418_v52  ;;  %v938_v58 = vmul.f32 0.01, %v882_v53 }
 0x1c5   :  { %v1421_v57 = vpop.f32.mrf.mxu0 }
 0x1c6   :  { %1489 = vmatprep.mubr.bf16.mxu1 %v968_v55  ;;  %v885_v59 = vadd.f32 %v1420_v56, %v1947_v37  ;;  %v954_v0 = vmax.f32 %v882_v53, %v938_v58 }
 0x1c7   :  { %v1422_v60 = vpop.f32.mrf.mxu0 }
 0x1c8   :  { %v939_v61 = vmul.f32 0.01, %v885_v59  ;;  %v1423_v62 = vadd.f32 %v1422_v60, %v1421_v57 }
 0x1c9   :  { %v1424_v63 = vpop.f32.mrf.mxu0 }
 0x1ca   :  { %v955_v1 = vmax.f32 %v885_v59, %v939_v61  ;;  %v890_v2 = vadd.f32 %v1423_v62, %v1947_v37 }
 0x1cb   :  { %v1425_v3 = vpop.f32.mrf.mxu0 }
 0x1cc   :  { %v969_v4 = vpack.c.bf16 %v955_v1, %v954_v0  ;;  %v1426_v5 = vadd.f32 %v1425_v3, %v1424_v63  ;;  %v940_v7 = vmul.f32 0.01, %v890_v2 }
 0x1cd   :  { %v1427_v6 = vpop.f32.mrf.mxu0 }
 0x1ce   :  { %v893_v8 = vadd.f32 %v1426_v5, %v1947_v37  ;;  %1490 = vmatmul.mubr.bf16.vlgmr.msra.gmra.mxu1 %v969_v4  ;;  %v956_v15 = vmax.f32 %v890_v2, %v940_v7 }
 0x1cf   :  { %v1428_v9 = vpop.f32.mrf.mxu0 }
 0x1d0   :  { %v941_v11 = vmul.f32 0.01, %v893_v8  ;;  %v1429_v13 = vadd.f32 %v1428_v9, %v1427_v6 }
 0x1d1   :  { %v1430_v14 = vpop.f32.mrf.mxu0 }
 0x1d2   :  { %v957_v16 = vmax.f32 %v893_v8, %v941_v11  ;;  %v898_v17 = vadd.f32 %v1429_v13, %v1947_v37 }
 0x1d3   :  { %v1431_v18 = vpop.f32.mrf.mxu0 }
 0x1d4   :  { %v1432_v19 = vadd.f32 %v1431_v18, %v1430_v14  ;;  %v970_v20 = vpack.c.bf16 %v957_v16, %v956_v15  ;;  %v942_v22 = vmul.f32 0.01, %v898_v17 }
 0x1d5   :  { %v1433_v21 = vpop.f32.mrf.mxu0 }
 0x1d6   :  { %v901_v23 = vadd.f32 %v1432_v19, %v1947_v37  ;;  %1493 = vmatprep.mubr.bf16.mxu1 %v970_v20  ;;  %v958_v28 = vmax.f32 %v898_v17, %v942_v22  ;;  %v1305_v17 = vld [vmem:[%s1979_s8] ss:$0 sm:$0xff]  ;;  %s1620_s8 = smov [#allocation2]  }
 0x1d7   :  { %v1434_v24 = vpop.f32.mrf.mxu0  ;;  %s1229_s19 = sshll.u32 %s1620_s8, 4  ;;  %s1230_s19 = int_to_ptr.vmem [resolvable:$true] %s1229_s19 }
 0x1d8   :  { %v943_v25 = vmul.f32 0.01, %v901_v23  ;;  %v1435_v26 = vadd.f32 %v1434_v24, %v1433_v21  ;;  %s1597_s20 = scalar_lea.vmem %s1230_s19, 1024  ;;  %p1602_p1 = scmp.lt.s32.totalorder %s1230_s19, %s1230_s19 }
 0x1d9   :  { %v1436_v27 = vpop.f32.mrf.mxu0  ;;  %p1598_p0 = scmp.ne.s32.totalorder %s1230_s19, %s1597_s20  ;;  %p1603_p2 = scmp.lt.s32.totalorder %s1597_s20, %s1597_s20 }
 0x1da   :  { %v959_v29 = vmax.f32 %v901_v23, %v943_v25  ;;  %v906_v30 = vadd.f32 %v1435_v26, %v1947_v37 }
 0x1db   :  { %v1437_v31 = vpop.f32.mrf.mxu0  ;;  %p1604_p3 = por %p1603_p2, %p1602_p1 }
 0x1dc   :  { %v1438_v12 = vadd.f32 %v1437_v31, %v1436_v27  ;;  %v971_v10 = vpack.c.bf16 %v959_v29, %v958_v28  ;;  %v944_v33 = vmul.f32 0.01, %v906_v30 }
 0x1dd   :  { %v1439_v32 = vpop.f32.mrf.mxu0  ;;  %p1605_p4 = pnand %p1604_p3, %p1598_p0 }
 0x1de   :  { %v909_v34 = vadd.f32 %v1438_v12, %v1947_v37  ;;  %1494 = vmatmul.mubr.bf16.gmra.mxu1 %v971_v10  ;;  %v960_v40 = vmax.f32 %v906_v30, %v944_v33 }
 0x1df   :  { %v1440_v35 = vpop.f32.mrf.mxu0 }
 0x1e0   :  { %v945_v36 = vmul.f32 0.01, %v909_v34  ;;  %v1441_v38 = vadd.f32 %v1440_v35, %v1439_v32 }
 0x1e1   :  { %v1442_v39 = vpop.f32.mrf.mxu0 }
 0x1e2   :  { %v961_v41 = vmax.f32 %v909_v34, %v945_v36  ;;  %v914_v42 = vadd.f32 %v1441_v38, %v1947_v37 }
 0x1e3   :  { %v1443_v43 = vpop.f32.mrf.mxu0 }
 0x1e4   :  { %v1444_v44 = vadd.f32 %v1443_v43, %v1442_v39  ;;  %v972_v45 = vpack.c.bf16 %v961_v41, %v960_v40  ;;  %v946_v47 = vmul.f32 0.01, %v914_v42 }
 0x1e5   :  { %v1445_v46 = vpop.f32.mrf.mxu0 }
 0x1e6   :  { %v917_v48 = vadd.f32 %v1444_v44, %v1947_v37  ;;  %1497 = vmatprep.mubr.bf16.mxu1 %v972_v45  ;;  %v962_v53 = vmax.f32 %v914_v42, %v946_v47 }
 0x1e7   :  { %v1446_v49 = vpop.f32.mrf.mxu0 }
 0x1e8   :  { %v947_v50 = vmul.f32 0.01, %v917_v48  ;;  %v1447_v51 = vadd.f32 %v1446_v49, %v1445_v46 }
 0x1e9   :  { %v1448_v52 = vpop.f32.mrf.mxu0 }
 0x1ea   :  { %v963_v54 = vmax.f32 %v917_v48, %v947_v50  ;;  %v922_v55 = vadd.f32 %v1447_v51, %v1947_v37 }
 0x1eb   :  { %v1449_v56 = vpop.f32.mrf.mxu0 }
 0x1ec   :  { %v1450_v57 = vadd.f32 %v1449_v56, %v1448_v52  ;;  %v973_v58 = vpack.c.bf16 %v963_v54, %v962_v53  ;;  %v948_v60 = vmul.f32 0.01, %v922_v55 }
 0x1ed   :  { %v1451_v59 = vpop.f32.mrf.mxu0 }
 0x1ee   :  { %v925_v61 = vadd.f32 %v1450_v57, %v1947_v37  ;;  %1498 = vmatmul.mubr.bf16.gmra.mxu1 %v973_v58  ;;  %v964_v2 = vmax.f32 %v922_v55, %v948_v60 }
 0x1ef   :  { %v1452_v62 = vpop.f32.mrf.mxu0 }
 0x1f0   :  { %v949_v63 = vmul.f32 0.01, %v925_v61  ;;  %v1453_v0 = vadd.f32 %v1452_v62, %v1451_v59 }
 0x1f1   :  { %v1454_v1 = vpop.f32.mrf.mxu0 }
 0x1f2   :  { %v965_v3 = vmax.f32 %v925_v61, %v949_v63  ;;  %v930_v4 = vadd.f32 %v1453_v0, %v1947_v37 }
 0x1f3   :  { %v1455_v5 = vpop.f32.mrf.mxu0 }
 0x1f4   :  { %v1456_v6 = vadd.f32 %v1455_v5, %v1454_v1  ;;  %v974_v7 = vpack.c.bf16 %v965_v3, %v964_v2  ;;  %v950_v8 = vmul.f32 0.01, %v930_v4 }
 0x1f6   :  { %v933_v9 = vadd.f32 %v1456_v6, %v1947_v37  ;;  %1501 = vmatprep.mubr.bf16.mxu1 %v974_v7  ;;  %v966_v13 = vmax.f32 %v930_v4, %v950_v8 }
 0x1f8   :  { %v951_v11 = vmul.f32 0.01, %v933_v9 }
 0x1fa   :  { %v967_v14 = vmax.f32 %v933_v9, %v951_v11 }
 0x1fc   :  { %v975_v15 = vpack.c.bf16 %v967_v14, %v966_v13 }
 0x1fe   :  { %1502 = vmatmul.mubr.bf16.gmra.mxu1 %v975_v15 }
 0x28e   :  { %v1491_v16 = vpop.f32.mrf.mxu1 }
 0x28f   :  { %v1090_v20 = vadd.f32 %v1491_v16, %v1305_v17 }
 0x290   :  { %v1081_v18 = vpop.f32.mrf.mxu1 }
 0x291   :  { %v1082_v23 = vadd.f32 %v1305_v17, %v1081_v18 }
 0x292   :  { %v1492_v19 = vpop.f32.mrf.mxu1 }
 0x293   :  { %v1093_v21 = vadd.f32 %v1492_v19, %v1305_v17 }
 0x294   :  { %v1084_v22 = vpop.f32.mrf.mxu1 }
 0x295   :  { %v1354_v24 = vpack.c.bf16 %v1093_v21, %v1090_v20  ;;  %v1085_v25 = vadd.f32 %v1305_v17, %v1084_v22 }
 0x297   :  { %1386 = vst [vmem:[#allocation2 + $0x8] sm:$0xff] %v1354_v24   ;;  %v1349_v37 = vpack.c.bf16 %v1085_v25, %v1082_v23 }
 0x299   :  { %1350 = vst [vmem:[#allocation2] sm:$0xff] %v1349_v37  }
 0x29e   :  { %v1495_v26 = vpop.f32.mrf.mxu1 }
 0x29f   :  { %v1106_v29 = vadd.f32 %v1495_v26, %v1305_v17 }
 0x2a0   :  { %v1097_v27 = vpop.f32.mrf.mxu1 }
 0x2a1   :  { %v1098_v12 = vadd.f32 %v1305_v17, %v1097_v27 }
 0x2a2   :  { %v1496_v28 = vpop.f32.mrf.mxu1 }
 0x2a3   :  { %v1109_v30 = vadd.f32 %v1496_v28, %v1305_v17 }
 0x2a4   :  { %v1100_v31 = vpop.f32.mrf.mxu1 }
 0x2a5   :  { %v1364_v10 = vpack.c.bf16 %v1109_v30, %v1106_v29  ;;  %v1101_v32 = vadd.f32 %v1305_v17, %v1100_v31 }
 0x2a7   :  { %1388 = vst [vmem:[#allocation2 + $0x18] sm:$0xff] %v1364_v10   ;;  %v1359_v33 = vpack.c.bf16 %v1101_v32, %v1098_v12 }
 0x2a9   :  { %1387 = vst [vmem:[#allocation2 + $0x10] sm:$0xff] %v1359_v33  }
 0x2ae   :  { %v1499_v34 = vpop.f32.mrf.mxu1 }
 0x2af   :  { %v1122_v38 = vadd.f32 %v1499_v34, %v1305_v17 }
 0x2b0   :  { %v1113_v35 = vpop.f32.mrf.mxu1 }
 0x2b1   :  { %v1114_v41 = vadd.f32 %v1305_v17, %v1113_v35 }
 0x2b2   :  { %v1500_v36 = vpop.f32.mrf.mxu1 }
 0x2b3   :  { %v1125_v39 = vadd.f32 %v1500_v36, %v1305_v17 }
 0x2b4   :  { %v1116_v40 = vpop.f32.mrf.mxu1 }
 0x2b5   :  { %v1374_v42 = vpack.c.bf16 %v1125_v39, %v1122_v38  ;;  %v1117_v43 = vadd.f32 %v1305_v17, %v1116_v40 }
 0x2b7   :  { %1390 = vst [vmem:[#allocation2 + $0x28] sm:$0xff] %v1374_v42   ;;  %v1369_v44 = vpack.c.bf16 %v1117_v43, %v1114_v41 }
 0x2b9   :  { %1389 = vst [vmem:[#allocation2 + $0x20] sm:$0xff] %v1369_v44  }
 0x2be   :  { %v1503_v45 = vpop.f32.mrf.mxu1 }
 0x2bf   :  { %v1138_v48 = vadd.f32 %v1503_v45, %v1305_v17 }
 0x2c0   :  { %v1129_v46 = vpop.f32.mrf.mxu1 }
 0x2c1   :  { %v1130_v51 = vadd.f32 %v1305_v17, %v1129_v46 }
 0x2c2   :  { %v1504_v47 = vpop.f32.mrf.mxu1 }
 0x2c3   :  { %v1141_v49 = vadd.f32 %v1504_v47, %v1305_v17 }
 0x2c4   :  { %v1132_v50 = vpop.f32.mrf.mxu1 }
 0x2c5   :  { %v1384_v52 = vpack.c.bf16 %v1141_v49, %v1138_v48  ;;  %v1133_v53 = vadd.f32 %v1305_v17, %v1132_v50 }
 0x2c7   :  { %1392 = vst [vmem:[#allocation2 + $0x38] sm:$0xff] %v1384_v52   ;;  %v1379_v54 = vpack.c.bf16 %v1133_v53, %v1130_v51 }
 0x2c9   :  { %1391 = vst [vmem:[#allocation2 + $0x30] sm:$0xff] %v1379_v54  }
 0x2ca   :  { %1608 = shalt.err (!%p1605_p4)
}
 0x2cb   :  { %s1621_s21 = smov 64   ;;  %s1622_s22 = smov 4  }
 0x2cc   :  { %1235 = dma.vmem_to_hbm [thread:$0]  %s1230_s19, 1024, %s1980_s9, [#allocation3], %s1621_s21, %s1621_s21, %s1622_s22  }
 0x2cd   :  { %1617 = dma.done.wait [#allocation3], 1024  }
 0x2ce   :  { %1618 = vsyncadd [#allocation3], 4294966272 }
 0x2cf   :  { %1239 = vsyncpa [#allocation3], 1 }

</bundles_post_ra>
